<compile_context>
chip_gen: v6e
topology: v6e:2x2x1
jax: 0.10.0
libtpu: 0.0.40
codegen_flags: <defaults>
</compile_context>

<pallas_src>
import functools

import jax
import jax.numpy as jnp
import numpy as np
from jax import lax
from jax.experimental import pallas as pl
from jax.experimental.pallas import tpu as pltpu


# ---------------------------------------------------------------------------
# Pallas kernel.
# Grid = (batch, H-tiles).  Batch axis is "parallel" (megacore); the H-tile
# axis is "arbitrary" (sequential: it reuses the per-plane conv1 scratch).
# ---------------------------------------------------------------------------
def _bottleneck_kernel(x_ref, w1_ref, b1_ref, w2_ref, b2_ref, w3_ref, b3_ref,
                       o_ref, pad_ref, *, H, W, TH):
    # x_ref:   (H*W, Cin_pad)       bf16  one image plane, spatially flattened
    # w1_ref:  (Cin_pad, P)         bf16  conv1 1x1 weight (BN1 scale folded)
    # b1_ref:  (1, P)               f32   BN1 bias
    # w2_ref:  (9*P, P)             bf16  conv2 3x3 weight, im2col (ky,kx,ci)
    # b2_ref:  (1, P)               f32   BN2 bias
    # w3_ref:  (P + Cin_pad, Cout)  bf16  stacked [conv3*s3 ; shortcut*ssc]
    # b3_ref:  (1, Cout)            f32   combined bias (b3 + b_shortcut)
    # o_ref:   (TH*W, Cout)         bf16  output tile (TH rows, flattened)
    # pad_ref: (H+2, W+2, P)        bf16  full-plane halo scratch for the 3x3
    # P, Cout, Cin_pad are multiples of 128 (padded by the wrapper).
    P = w1_ref.shape[1]
    j = pl.program_id(1)

    # ---- once per image plane: conv1 (1x1) + BN1 bias + relu -------------
    # Written into the padded bf16 halo scratch so every H-tile (including
    # its halo rows) reads it back without boundary special-cases.  Border
    # zeroing is amortized over all H-tiles of the plane.
    @pl.when(j == 0)
    def _():
        xm = x_ref[...].astype(jnp.bfloat16)                   # (HW, Cin_pad)
        h1 = jnp.dot(xm, w1_ref[...], preferred_element_type=jnp.float32)
        h1 = jnp.maximum(h1 + b1_ref[...], 0.0).astype(pad_ref.dtype)
        pad_ref[0:1, :, :] = jnp.zeros((1, W + 2, P), pad_ref.dtype)
        pad_ref[H + 1:H + 2, :, :] = jnp.zeros((1, W + 2, P), pad_ref.dtype)
        pad_ref[:, 0:1, :] = jnp.zeros((H + 2, 1, P), pad_ref.dtype)
        pad_ref[:, W + 1:W + 2, :] = jnp.zeros((H + 2, 1, P), pad_ref.dtype)
        pad_ref[1:H + 1, 1:W + 1, :] = h1.reshape(H, W, P)

    # ---- per H-tile: conv2 (3x3, stride 1, pad 1) as one wide-K matmul ---
    row0 = j * TH                                  # first output row of tile
    tile = pad_ref[pl.ds(row0, TH + 2), :, :]      # (TH+2, W+2, P) bf16, halo
    patches = jnp.concatenate(
        [tile[dy:dy + TH, dx:dx + W, :] for dy in range(3) for dx in range(3)],
        axis=-1).reshape(TH * W, 9 * P)            # bf16, lane-aligned concat
    h2 = jnp.dot(patches, w2_ref[...], preferred_element_type=jnp.float32)
    h2 = jnp.maximum(h2 + b2_ref[...], 0.0).astype(jnp.bfloat16)  # (TH*W, P)

    # ---- conv3 (1x1) + projection shortcut fused into one matmul ---------
    # Residual add falls out of the MXU accumulation; single combined bias.
    xs = x_ref[pl.ds(row0 * W, TH * W), :].astype(jnp.bfloat16)  # (TH*W, Cin_pad)
    kcat = jnp.concatenate([h2, xs], axis=-1)                    # lane aligned
    out = jnp.dot(kcat, w3_ref[...], preferred_element_type=jnp.float32)
    out = jnp.maximum(out + b3_ref[...], 0.0)
    o_ref[...] = out.astype(o_ref.dtype)


# ---------------------------------------------------------------------------
# Wrapper helpers
# ---------------------------------------------------------------------------
def _round_up(x, m):
    return ((x + m - 1) // m) * m


def _vmem_limit_bytes():
    """Generation-aware VMEM budget (~52 MiB on v7x, ~105 MiB on v5e/v6e)."""
    try:
        cap = int(pltpu.get_tpu_info().vmem_capacity_bytes)
    except Exception:                       # query unavailable -> safe default
        return 64 * 1024 * 1024
    return min(int(cap * 0.82), 112 * 1024 * 1024)


def _pick_block_h(h, w, cin_pad, p_pad, cout_pad, vmem_limit):
    """Largest H-tile (divisor of h with an (8,128)-tileable output block)
    whose estimated per-step VMEM footprint fits in ~60% of the budget."""
    weights = 2 * (cin_pad * p_pad + 9 * p_pad * p_pad
                   + (p_pad + cin_pad) * cout_pad)        # bf16, single-buffer
    x_blk = 2 * 2 * h * w * cin_pad                       # bf16, double-buffer
    pad_scr = 2 * (h + 2) * (w + 2) * p_pad               # bf16 scratch
    fixed = weights + x_blk + pad_scr
    budget = int(vmem_limit * 0.6)
    cands = [d for d in range(h, 0, -1)
             if h % d == 0 and (d == h or (d * w) % 8 == 0)]
    for th in cands:
        out_blk = 2 * 2 * th * w * cout_pad               # bf16, double-buffer
        patches = 2 * th * w * 9 * p_pad                  # bf16 temporary
        f32_tmp = 4 * th * w * (2 * p_pad + cout_pad)     # f32 matmul results
        if fixed + out_blk + patches + f32_tmp <= budget:
            return th
    return cands[-1]


def _fold_and_pad_params(params, cin, cin_pad, p_pad, cout_pad):
    """Fold BN scales into conv weights (in f32), combine the final biases,
    zero-pad channel dims up to lane multiples (128), cast weights to bf16."""
    (w1, sb1, w2, sb2, w3, sb3, wsc, sbsc) = params
    p = w1.shape[1]
    cout = w3.shape[1]
    s1, b1 = sb1[0], sb1[1]
    s2, b2 = sb2[0], sb2[1]
    s3, b3 = sb3[0], sb3[1]
    ssc, bsc = sbsc[0], sbsc[1]

    w1s = jnp.zeros((cin_pad, p_pad), jnp.float32).at[:cin, :p].set(w1 * s1)
    b1p = jnp.zeros((1, p_pad), jnp.float32).at[0, :p].set(b1)

    w2s = jnp.zeros((3, 3, p_pad, p_pad), jnp.float32)
    w2s = w2s.at[:, :, :p, :p].set(w2 * s2)          # scale on output channel
    w2s = w2s.reshape(9 * p_pad, p_pad)              # im2col (ky, kx, ci) rows
    b2p = jnp.zeros((1, p_pad), jnp.float32).at[0, :p].set(b2)

    w3cat = jnp.zeros((p_pad + cin_pad, cout_pad), jnp.float32)
    w3cat = w3cat.at[:p, :cout].set(w3 * s3)                     # conv3 rows
    w3cat = w3cat.at[p_pad:p_pad + cin, :cout].set(wsc * ssc)    # shortcut rows
    b3p = jnp.zeros((1, cout_pad), jnp.float32).at[0, :cout].set(b3 + bsc)

    return (w1s.astype(jnp.bfloat16), b1p,
            w2s.astype(jnp.bfloat16), b2p,
            w3cat.astype(jnp.bfloat16), b3p)


def _const_spec(shape, buffered):
    nd = len(shape)
    idx = lambda *_, _nd=nd: (0,) * _nd
    if buffered:
        # Constant index_map: double-buffering buys nothing -> single buffer.
        return pl.BlockSpec(shape, idx, pipeline_mode=pl.Buffered(1))
    return pl.BlockSpec(shape, idx)


@functools.partial(jax.jit,
                   static_argnames=("block_h", "buffered_weights", "vmem_limit"))
def _bottleneck_nhwc_jit(x_nhwc, params, *, block_h, buffered_weights,
                         vmem_limit):
    n, h, w, cin = x_nhwc.shape
    p = params[0].shape[1]
    cout = params[4].shape[1]
    cin_pad = _round_up(cin, 128)
    p_pad = _round_up(p, 128)
    cout_pad = _round_up(cout, 128)
    th = block_h
    n_tiles = h // th

    w1s, b1, w2s, b2, w3s, b3 = _fold_and_pad_params(
        params, cin, cin_pad, p_pad, cout_pad)

    # bf16 activations, lane-padded Cin, spatial dims flattened in HBM.
    x_flat = jnp.pad(x_nhwc.astype(jnp.bfloat16),
                     ((0, 0), (0, 0), (0, 0), (0, cin_pad - cin))
                     ).reshape(n, h * w, cin_pad)

    kernel = functools.partial(_bottleneck_kernel, H=h, W=w, TH=th)
    out = pl.pallas_call(
        kernel,
        out_shape=jax.ShapeDtypeStruct((n, h * w, cout_pad), jnp.bfloat16),
        grid_spec=pltpu.PrefetchScalarGridSpec(
            num_scalar_prefetch=0,
            grid=(n, n_tiles),
            in_specs=[
                pl.BlockSpec((None, h * w, cin_pad), lambda i, j: (i, 0, 0)),
                _const_spec(w1s.shape, buffered_weights),
                _const_spec(b1.shape, buffered_weights),
                _const_spec(w2s.shape, buffered_weights),
                _const_spec(b2.shape, buffered_weights),
                _const_spec(w3s.shape, buffered_weights),
                _const_spec(b3.shape, buffered_weights),
            ],
            out_specs=pl.BlockSpec((None, th * w, cout_pad),
                                   lambda i, j: (i, j, 0)),
            scratch_shapes=[pltpu.VMEM((h + 2, w + 2, p_pad), jnp.bfloat16)],
        ),
        compiler_params=pltpu.CompilerParams(
            dimension_semantics=("parallel", "arbitrary"),
            vmem_limit_bytes=vmem_limit),
    )(x_flat, w1s, b1, w2s, b2, w3s, b3)
    return out[:, :, :cout].reshape(n, h, w, cout)       # bf16 NHWC


def bottleneck_forward_nhwc(x_nhwc, params, block_h=None):
    """Fused bottleneck, NHWC in / bf16 NHWC out (stride=1, projection
    shortcut, inference-mode BN).  Preferred entry point (no layout round
    trip); accepts f32 or bf16 activations (cast to bf16 internally)."""
    n, h, w, cin = x_nhwc.shape
    p = params[0].shape[1]
    cout = params[4].shape[1]
    cin_pad = _round_up(cin, 128)
    p_pad = _round_up(p, 128)
    cout_pad = _round_up(cout, 128)
    vmem_limit = _vmem_limit_bytes()
    if block_h is None:
        block_h = _pick_block_h(h, w, cin_pad, p_pad, cout_pad, vmem_limit)
    if h % block_h != 0 or not (block_h == h or (block_h * w) % 8 == 0):
        raise ValueError(
            f"block_h={block_h} must divide H={h} and keep the output block "
            f"(8,128)-tileable")
    try:
        return _bottleneck_nhwc_jit(x_nhwc, params, block_h=block_h,
                                    buffered_weights=True,
                                    vmem_limit=vmem_limit)
    except Exception:
        # Fallback if this runtime rejects pl.Buffered(1) single-buffering.
        return _bottleneck_nhwc_jit(x_nhwc, params, block_h=block_h,
                                    buffered_weights=False,
                                    vmem_limit=vmem_limit)


def bottleneck_forward(x_nchw, params, block_h=None):
    """PyTorch-layout interface (NCHW f32 in / f32 out).  The transposes and
    f32<->bf16 casts here exist only for parity with the nn.Module; use
    bottleneck_forward_nhwc end-to-end (bf16) to avoid the HBM round trips."""
    x_nhwc = jnp.transpose(x_nchw, (0, 2, 3, 1))
    out_nhwc = bottleneck_forward_nhwc(x_nhwc, params, block_h=block_h)
    return jnp.transpose(out_nhwc, (0, 3, 1, 2)).astype(jnp.float32)


# ---------------------------------------------------------------------------
# Deterministic parameter construction (folded BN) and a pure-JAX reference.
# ---------------------------------------------------------------------------
def fold_bn(key, c, eps=1e-5):
    k1, k2, k3, k4 = jax.random.split(key, 4)
    gamma = jax.random.uniform(k1, (c,), jnp.float32, 0.5, 1.5)
    beta = 0.1 * jax.random.normal(k2, (c,), jnp.float32)
    rmean = 0.1 * jax.random.normal(k3, (c,), jnp.float32)
    rvar = jax.random.uniform(k4, (c,), jnp.float32, 0.5, 1.5)
    scale = gamma / jnp.sqrt(rvar + eps)
    bias = beta - rmean * scale
    return jnp.stack([scale, bias], axis=0)       # (2, c)


def make_params(key, in_planes, planes, expansion=4):
    keys = jax.random.split(key, 8)
    cout = expansion * planes
    w1 = 0.2 * jax.random.normal(keys[0], (in_planes, planes), jnp.float32)
    w2 = 0.2 * jax.random.normal(keys[1], (3, 3, planes, planes), jnp.float32)
    w3 = 0.2 * jax.random.normal(keys[2], (planes, cout), jnp.float32)
    wsc = 0.2 * jax.random.normal(keys[3], (in_planes, cout), jnp.float32)
    sb1 = fold_bn(keys[4], planes)
    sb2 = fold_bn(keys[5], planes)
    sb3 = fold_bn(keys[6], cout)
    sbsc = fold_bn(keys[7], cout)
    return (w1, sb1, w2, sb2, w3, sb3, wsc, sbsc)


def reference_forward(x_nchw, params):
    """Pure-JAX f32 reference (mirrors the PyTorch forward, inference BN)."""
    (w1, sb1, w2, sb2, w3, sb3, wsc, sbsc) = params
    x = jnp.transpose(x_nchw, (0, 2, 3, 1))

    h = jnp.einsum("nhwc,cp->nhwp", x, w1)
    h = jax.nn.relu(h * sb1[0] + sb1[1])

    h = lax.conv_general_dilated(
        h, w2, window_strides=(1, 1), padding=((1, 1), (1, 1)),
        dimension_numbers=("NHWC", "HWIO", "NHWC"))
    h = jax.nn.relu(h * sb2[0] + sb2[1])

    h = jnp.einsum("nhwp,pc->nhwc", h, w3) * sb3[0] + sb3[1]
    sc = jnp.einsum("nhwc,co->nhwo", x, wsc) * sbsc[0] + sbsc[1]
    out = jax.nn.relu(h + sc)
    return jnp.transpose(out, (0, 3, 1, 2))


if __name__ == "__main__":
    key = jax.random.PRNGKey(0)
    kx, kp = jax.random.split(key)

    N, IN_PLANES, PLANES, H, W = 2, 4, 4, 16, 16   # stride = 1
    x = jax.random.normal(kx, (N, IN_PLANES, H, W), jnp.float32)
    params = make_params(kp, IN_PLANES, PLANES)

    ref = jax.block_until_ready(reference_forward(x, params))

    # block_h=8 exercises the H-tiled (multi-tile) path; None the auto path.
    for bh in (8, None):
        out = jax.block_until_ready(bottleneck_forward(x, params, block_h=bh))
        assert out.shape == (N, 4 * PLANES, H, W), out.shape
        # bf16 activations + bf16 matmul operands (f32 accumulation) ->
        # tolerance loosened vs the pure-f32 reference.
        np.testing.assert_allclose(np.asarray(out), np.asarray(ref),
                                   rtol=5e-2, atol=1e-1)
        assert float(jnp.mean(jnp.abs(out - ref))) < 2e-2
    print("KERNEL_OK")
</pallas_src>

<mosaic_0001>
module attributes {stable_mosaic.version = 11 : i64} {
  func.func @_bottleneck_kernel(%arg0: i32, %arg1: i32, %arg2: memref<1x256x128xbf16, #tpu.memory_space<vmem>>, %arg3: memref<128x128xbf16, #tpu.memory_space<vmem>>, %arg4: memref<1x128xf32, #tpu.memory_space<vmem>>, %arg5: memref<1152x128xbf16, #tpu.memory_space<vmem>>, %arg6: memref<1x128xf32, #tpu.memory_space<vmem>>, %arg7: memref<256x128xbf16, #tpu.memory_space<vmem>>, %arg8: memref<1x128xf32, #tpu.memory_space<vmem>>, %arg9: memref<1x128x128xbf16, #tpu.memory_space<vmem>>, %arg10: memref<18x18x128xbf16, #tpu.memory_space<vmem>>) attributes {dimension_semantics = [#tpu.dimension_semantics<parallel>, #tpu.dimension_semantics<arbitrary>], iteration_bounds = array<i64: 2, 2>, scalar_prefetch = 0 : i64, scratch_operands = 1 : i64, tpu.core_type = #tpu.core_type<tc>, window_params = [{transform_indices = @transform_0, window_bounds = array<i64: 1, 256, 128>}, {pipeline_mode = #tpu.pipeline_mode<synchronous>, transform_indices = @transform_1, window_bounds = array<i64: 128, 128>}, {pipeline_mode = #tpu.pipeline_mode<synchronous>, transform_indices = @transform_2, window_bounds = array<i64: 1, 128>}, {pipeline_mode = #tpu.pipeline_mode<synchronous>, transform_indices = @transform_3, window_bounds = array<i64: 1152, 128>}, {pipeline_mode = #tpu.pipeline_mode<synchronous>, transform_indices = @transform_4, window_bounds = array<i64: 1, 128>}, {pipeline_mode = #tpu.pipeline_mode<synchronous>, transform_indices = @transform_5, window_bounds = array<i64: 256, 128>}, {pipeline_mode = #tpu.pipeline_mode<synchronous>, transform_indices = @transform_6, window_bounds = array<i64: 1, 128>}, {transform_indices = @transform_7, window_bounds = array<i64: 1, 128, 128>}]} {
    %c0_i32 = arith.constant 0 : i32
    %0 = arith.cmpi eq, %arg1, %c0_i32 : i32
    %1 = arith.extui %0 : i1 to i32
    %c0_i32_0 = arith.constant 0 : i32
    %2 = arith.cmpi ne, %1, %c0_i32_0 : i32
    scf.if %2 {
      %c0_18 = arith.constant 0 : index
      %c0_19 = arith.constant 0 : index
      %c0_20 = arith.constant 0 : index
      %41 = vector.load %arg2[%c0_18, %c0_19, %c0_20] : memref<1x256x128xbf16, #tpu.memory_space<vmem>>, vector<1x256x128xbf16>
      %42 = vector.shape_cast %41 : vector<1x256x128xbf16> to vector<256x128xbf16>
      %c0_21 = arith.constant 0 : index
      %c0_22 = arith.constant 0 : index
      %43 = vector.load %arg3[%c0_21, %c0_22] : memref<128x128xbf16, #tpu.memory_space<vmem>>, vector<128x128xbf16>
      %cst_23 = arith.constant dense<0.000000e+00> : vector<256x128xf32>
      %44 = tpu.matmul %42, %43, %cst_23 {dimension_numbers = #tpu.dot_dimension_numbers<[1], [0], [0], [1], [0, 0, 1, 1], [], []>} : vector<256x128xbf16>, vector<128x128xbf16>, vector<256x128xf32> -> vector<256x128xf32>
      %c0_24 = arith.constant 0 : index
      %c0_25 = arith.constant 0 : index
      %45 = vector.load %arg4[%c0_24, %c0_25] : memref<1x128xf32, #tpu.memory_space<vmem>>, vector<1x128xf32>
      %46 = vector.broadcast %45 : vector<1x128xf32> to vector<256x128xf32>
      %47 = arith.addf %44, %46 : vector<256x128xf32>
      %cst_26 = arith.constant 0.000000e+00 : f32
      %48 = vector.broadcast %cst_26 : f32 to vector<256x128xf32>
      %49 = arith.maximumf %47, %48 : vector<256x128xf32>
      %50 = arith.truncf %49 : vector<256x128xf32> to vector<256x128xbf16>
      %cst_27 = arith.constant 0.000000e+00 : bf16
      %51 = vector.broadcast %cst_27 : bf16 to vector<1x18x128xbf16>
      %c0_28 = arith.constant 0 : index
      %c0_29 = arith.constant 0 : index
      %c0_30 = arith.constant 0 : index
      %52 = vector.load %arg10[%c0_28, %c0_29, %c0_30] : memref<18x18x128xbf16, #tpu.memory_space<vmem>>, vector<1x18x128xbf16>
      tpu.vector_store %arg10[%c0_28, %c0_29, %c0_30], %51 {strides = array<i32>} : memref<18x18x128xbf16, #tpu.memory_space<vmem>>, vector<1x18x128xbf16>,
      %cst_31 = arith.constant 0.000000e+00 : bf16
      %53 = vector.broadcast %cst_31 : bf16 to vector<1x18x128xbf16>
      %c17 = arith.constant 17 : index
      %c0_32 = arith.constant 0 : index
      %c0_33 = arith.constant 0 : index
      %54 = vector.load %arg10[%c17, %c0_32, %c0_33] : memref<18x18x128xbf16, #tpu.memory_space<vmem>>, vector<1x18x128xbf16>
      tpu.vector_store %arg10[%c17, %c0_32, %c0_33], %53 {strides = array<i32>} : memref<18x18x128xbf16, #tpu.memory_space<vmem>>, vector<1x18x128xbf16>,
      %cst_34 = arith.constant 0.000000e+00 : bf16
      %55 = vector.broadcast %cst_34 : bf16 to vector<18x1x128xbf16>
      %c0_35 = arith.constant 0 : index
      %c0_36 = arith.constant 0 : index
      %c0_37 = arith.constant 0 : index
      %56 = vector.load %arg10[%c0_35, %c0_36, %c0_37] : memref<18x18x128xbf16, #tpu.memory_space<vmem>>, vector<18x1x128xbf16>
      tpu.vector_store %arg10[%c0_35, %c0_36, %c0_37], %55 {strides = array<i32>} : memref<18x18x128xbf16, #tpu.memory_space<vmem>>, vector<18x1x128xbf16>,
      %cst_38 = arith.constant 0.000000e+00 : bf16
      %57 = vector.broadcast %cst_38 : bf16 to vector<18x1x128xbf16>
      %c0_39 = arith.constant 0 : index
      %c17_40 = arith.constant 17 : index
      %c0_41 = arith.constant 0 : index
      %58 = vector.load %arg10[%c0_39, %c17_40, %c0_41] : memref<18x18x128xbf16, #tpu.memory_space<vmem>>, vector<18x1x128xbf16>
      tpu.vector_store %arg10[%c0_39, %c17_40, %c0_41], %57 {strides = array<i32>} : memref<18x18x128xbf16, #tpu.memory_space<vmem>>, vector<18x1x128xbf16>,
      %59 = vector.shape_cast %50 : vector<256x128xbf16> to vector<16x16x128xbf16>
      %c1 = arith.constant 1 : index
      %c1_42 = arith.constant 1 : index
      %c0_43 = arith.constant 0 : index
      %60 = vector.load %arg10[%c1, %c1_42, %c0_43] : memref<18x18x128xbf16, #tpu.memory_space<vmem>>, vector<16x16x128xbf16>
      tpu.vector_store %arg10[%c1, %c1_42, %c0_43], %59 {strides = array<i32>} : memref<18x18x128xbf16, #tpu.memory_space<vmem>>, vector<16x16x128xbf16>,
    } else {
    }
    %c8_i32 = arith.constant 8 : i32
    %3 = arith.muli %arg1, %c8_i32 : i32
    %4 = arith.index_cast %3 : i32 to index
    %c0 = arith.constant 0 : index
    %c0_1 = arith.constant 0 : index
    %5 = vector.load %arg10[%4, %c0, %c0_1] : memref<18x18x128xbf16, #tpu.memory_space<vmem>>, vector<10x18x128xbf16>
    %6 = vector.extract_strided_slice %5 {offsets = [0, 0, 0], sizes = [8, 16, 128], strides = [1, 1, 1]} : vector<10x18x128xbf16> to vector<8x16x128xbf16>
    %7 = vector.extract_strided_slice %5 {offsets = [0, 1, 0], sizes = [8, 16, 128], strides = [1, 1, 1]} : vector<10x18x128xbf16> to vector<8x16x128xbf16>
    %8 = vector.extract_strided_slice %5 {offsets = [0, 2, 0], sizes = [8, 16, 128], strides = [1, 1, 1]} : vector<10x18x128xbf16> to vector<8x16x128xbf16>
    %9 = vector.extract_strided_slice %5 {offsets = [1, 0, 0], sizes = [8, 16, 128], strides = [1, 1, 1]} : vector<10x18x128xbf16> to vector<8x16x128xbf16>
    %10 = vector.extract_strided_slice %5 {offsets = [1, 1, 0], sizes = [8, 16, 128], strides = [1, 1, 1]} : vector<10x18x128xbf16> to vector<8x16x128xbf16>
    %11 = vector.extract_strided_slice %5 {offsets = [1, 2, 0], sizes = [8, 16, 128], strides = [1, 1, 1]} : vector<10x18x128xbf16> to vector<8x16x128xbf16>
    %12 = vector.extract_strided_slice %5 {offsets = [2, 0, 0], sizes = [8, 16, 128], strides = [1, 1, 1]} : vector<10x18x128xbf16> to vector<8x16x128xbf16>
    %13 = vector.extract_strided_slice %5 {offsets = [2, 1, 0], sizes = [8, 16, 128], strides = [1, 1, 1]} : vector<10x18x128xbf16> to vector<8x16x128xbf16>
    %14 = vector.extract_strided_slice %5 {offsets = [2, 2, 0], sizes = [8, 16, 128], strides = [1, 1, 1]} : vector<10x18x128xbf16> to vector<8x16x128xbf16>
    %15 = tpu.concatenate %6, %7, %8, %9, %10, %11, %12, %13, %14 in 2 : vector<8x16x128xbf16>, vector<8x16x128xbf16>, vector<8x16x128xbf16>, vector<8x16x128xbf16>, vector<8x16x128xbf16>, vector<8x16x128xbf16>, vector<8x16x128xbf16>, vector<8x16x128xbf16>, vector<8x16x128xbf16> -> vector<8x16x1152xbf16>
    %16 = vector.shape_cast %15 : vector<8x16x1152xbf16> to vector<128x1152xbf16>
    %c0_2 = arith.constant 0 : index
    %c0_3 = arith.constant 0 : index
    %17 = vector.load %arg5[%c0_2, %c0_3] : memref<1152x128xbf16, #tpu.memory_space<vmem>>, vector<1152x128xbf16>
    %cst = arith.constant dense<0.000000e+00> : vector<128x128xf32>
    %18 = tpu.matmul %16, %17, %cst {dimension_numbers = #tpu.dot_dimension_numbers<[1], [0], [0], [1], [0, 0, 1, 1], [], []>} : vector<128x1152xbf16>, vector<1152x128xbf16>, vector<128x128xf32> -> vector<128x128xf32>
    %c0_4 = arith.constant 0 : index
    %c0_5 = arith.constant 0 : index
    %19 = vector.load %arg6[%c0_4, %c0_5] : memref<1x128xf32, #tpu.memory_space<vmem>>, vector<1x128xf32>
    %20 = vector.broadcast %19 : vector<1x128xf32> to vector<128x128xf32>
    %21 = arith.addf %18, %20 : vector<128x128xf32>
    %cst_6 = arith.constant 0.000000e+00 : f32
    %22 = vector.broadcast %cst_6 : f32 to vector<128x128xf32>
    %23 = arith.maximumf %21, %22 : vector<128x128xf32>
    %24 = arith.truncf %23 : vector<128x128xf32> to vector<128x128xbf16>
    %c16_i32 = arith.constant 16 : i32
    %25 = arith.muli %3, %c16_i32 : i32
    %c0_7 = arith.constant 0 : index
    %26 = arith.index_cast %25 : i32 to index
    %c0_8 = arith.constant 0 : index
    %27 = vector.load %arg2[%c0_7, %26, %c0_8] : memref<1x256x128xbf16, #tpu.memory_space<vmem>>, vector<1x128x128xbf16>
    %28 = vector.shape_cast %27 : vector<1x128x128xbf16> to vector<128x128xbf16>
    %29 = tpu.concatenate %24, %28 in 1 : vector<128x128xbf16>, vector<128x128xbf16> -> vector<128x256xbf16>
    %c0_9 = arith.constant 0 : index
    %c0_10 = arith.constant 0 : index
    %30 = vector.load %arg7[%c0_9, %c0_10] : memref<256x128xbf16, #tpu.memory_space<vmem>>, vector<256x128xbf16>
    %cst_11 = arith.constant dense<0.000000e+00> : vector<128x128xf32>
    %31 = tpu.matmul %29, %30, %cst_11 {dimension_numbers = #tpu.dot_dimension_numbers<[1], [0], [0], [1], [0, 0, 1, 1], [], []>} : vector<128x256xbf16>, vector<256x128xbf16>, vector<128x128xf32> -> vector<128x128xf32>
    %c0_12 = arith.constant 0 : index
    %c0_13 = arith.constant 0 : index
    %32 = vector.load %arg8[%c0_12, %c0_13] : memref<1x128xf32, #tpu.memory_space<vmem>>, vector<1x128xf32>
    %33 = vector.broadcast %32 : vector<1x128xf32> to vector<128x128xf32>
    %34 = arith.addf %31, %33 : vector<128x128xf32>
    %cst_14 = arith.constant 0.000000e+00 : f32
    %35 = vector.broadcast %cst_14 : f32 to vector<128x128xf32>
    %36 = arith.maximumf %34, %35 : vector<128x128xf32>
    %37 = arith.truncf %36 : vector<128x128xf32> to vector<128x128xbf16>
    %c0_15 = arith.constant 0 : index
    %c0_16 = arith.constant 0 : index
    %c0_17 = arith.constant 0 : index
    %38 = vector.load %arg9[%c0_15, %c0_16, %c0_17] : memref<1x128x128xbf16, #tpu.memory_space<vmem>>, vector<1x128x128xbf16>
    %39 = vector.shape_cast %38 : vector<1x128x128xbf16> to vector<128x128xbf16>
    %40 = vector.shape_cast %37 : vector<128x128xbf16> to vector<1x128x128xbf16>
    tpu.vector_store %arg9[%c0_15, %c0_16, %c0_17], %40 {strides = array<i32>} : memref<1x128x128xbf16, #tpu.memory_space<vmem>>, vector<1x128x128xbf16>,
    return
  }
  func.func @transform_0(%arg0: i32, %arg1: i32) -> (i32, i32, i32) {
    %c0_i32 = arith.constant 0 : i32
    %c0_i32_0 = arith.constant 0 : i32
    %c0_i32_1 = arith.constant 0 : i32
    return %arg0, %c0_i32, %c0_i32_0 : i32, i32, i32
  }
  func.func @transform_1(%arg0: i32, %arg1: i32) -> (i32, i32) {
    %c0_i32 = arith.constant 0 : i32
    %c0_i32_0 = arith.constant 0 : i32
    %c0_i32_1 = arith.constant 0 : i32
    return %c0_i32, %c0_i32_0 : i32, i32
  }
  func.func @transform_2(%arg0: i32, %arg1: i32) -> (i32, i32) {
    %c0_i32 = arith.constant 0 : i32
    %c0_i32_0 = arith.constant 0 : i32
    %c0_i32_1 = arith.constant 0 : i32
    return %c0_i32, %c0_i32_0 : i32, i32
  }
  func.func @transform_3(%arg0: i32, %arg1: i32) -> (i32, i32) {
    %c0_i32 = arith.constant 0 : i32
    %c0_i32_0 = arith.constant 0 : i32
    %c0_i32_1 = arith.constant 0 : i32
    return %c0_i32, %c0_i32_0 : i32, i32
  }
  func.func @transform_4(%arg0: i32, %arg1: i32) -> (i32, i32) {
    %c0_i32 = arith.constant 0 : i32
    %c0_i32_0 = arith.constant 0 : i32
    %c0_i32_1 = arith.constant 0 : i32
    return %c0_i32, %c0_i32_0 : i32, i32
  }
  func.func @transform_5(%arg0: i32, %arg1: i32) -> (i32, i32) {
    %c0_i32 = arith.constant 0 : i32
    %c0_i32_0 = arith.constant 0 : i32
    %c0_i32_1 = arith.constant 0 : i32
    return %c0_i32, %c0_i32_0 : i32, i32
  }
  func.func @transform_6(%arg0: i32, %arg1: i32) -> (i32, i32) {
    %c0_i32 = arith.constant 0 : i32
    %c0_i32_0 = arith.constant 0 : i32
    %c0_i32_1 = arith.constant 0 : i32
    return %c0_i32, %c0_i32_0 : i32, i32
  }
  func.func @transform_7(%arg0: i32, %arg1: i32) -> (i32, i32, i32) {
    %c0_i32 = arith.constant 0 : i32
    %c0_i32_0 = arith.constant 0 : i32
    return %arg0, %arg1, %c0_i32 : i32, i32, i32
  }
}

module attributes {stable_mosaic.version = 11 : i64} {
  func.func @_bottleneck_kernel(%arg0: i32, %arg1: i32, %arg2: memref<1x256x128xbf16, #tpu.memory_space<vmem>>, %arg3: memref<128x128xbf16, #tpu.memory_space<vmem>>, %arg4: memref<1x128xf32, #tpu.memory_space<vmem>>, %arg5: memref<1152x128xbf16, #tpu.memory_space<vmem>>, %arg6: memref<1x128xf32, #tpu.memory_space<vmem>>, %arg7: memref<256x128xbf16, #tpu.memory_space<vmem>>, %arg8: memref<1x128xf32, #tpu.memory_space<vmem>>, %arg9: memref<1x128x128xbf16, #tpu.memory_space<vmem>>, %arg10: memref<18x18x128xbf16, #tpu.memory_space<vmem>>) attributes {dimension_semantics = [#tpu.dimension_semantics<parallel>, #tpu.dimension_semantics<arbitrary>], iteration_bounds = array<i64: 2, 2>, scalar_prefetch = 0 : i64, scratch_operands = 1 : i64, tpu.core_type = #tpu.core_type<tc>, window_params = [{transform_indices = @transform_0, window_bounds = array<i64: 1, 256, 128>}, {pipeline_mode = #tpu.pipeline_mode<synchronous>, transform_indices = @transform_1, window_bounds = array<i64: 128, 128>}, {pipeline_mode = #tpu.pipeline_mode<synchronous>, transform_indices = @transform_2, window_bounds = array<i64: 1, 128>}, {pipeline_mode = #tpu.pipeline_mode<synchronous>, transform_indices = @transform_3, window_bounds = array<i64: 1152, 128>}, {pipeline_mode = #tpu.pipeline_mode<synchronous>, transform_indices = @transform_4, window_bounds = array<i64: 1, 128>}, {pipeline_mode = #tpu.pipeline_mode<synchronous>, transform_indices = @transform_5, window_bounds = array<i64: 256, 128>}, {pipeline_mode = #tpu.pipeline_mode<synchronous>, transform_indices = @transform_6, window_bounds = array<i64: 1, 128>}, {transform_indices = @transform_7, window_bounds = array<i64: 1, 128, 128>}]} {
    %c0_i32 = arith.constant 0 : i32
    %0 = arith.cmpi eq, %arg1, %c0_i32 : i32
    %1 = arith.extui %0 : i1 to i32
    %c0_i32_0 = arith.constant 0 : i32
    %2 = arith.cmpi ne, %1, %c0_i32_0 : i32
    scf.if %2 {
      %c0_18 = arith.constant 0 : index
      %c0_19 = arith.constant 0 : index
      %c0_20 = arith.constant 0 : index
      %41 = vector.load %arg2[%c0_18, %c0_19, %c0_20] : memref<1x256x128xbf16, #tpu.memory_space<vmem>>, vector<1x256x128xbf16>
      %42 = vector.shape_cast %41 : vector<1x256x128xbf16> to vector<256x128xbf16>
      %c0_21 = arith.constant 0 : index
      %c0_22 = arith.constant 0 : index
      %43 = vector.load %arg3[%c0_21, %c0_22] : memref<128x128xbf16, #tpu.memory_space<vmem>>, vector<128x128xbf16>
      %cst_23 = arith.constant dense<0.000000e+00> : vector<256x128xf32>
      %44 = tpu.matmul %42, %43, %cst_23 {dimension_numbers = #tpu.dot_dimension_numbers<[1], [0], [0], [1], [0, 0, 1, 1], [], []>} : vector<256x128xbf16>, vector<128x128xbf16>, vector<256x128xf32> -> vector<256x128xf32>
      %c0_24 = arith.constant 0 : index
      %c0_25 = arith.constant 0 : index
      %45 = vector.load %arg4[%c0_24, %c0_25] : memref<1x128xf32, #tpu.memory_space<vmem>>, vector<1x128xf32>
      %46 = vector.broadcast %45 : vector<1x128xf32> to vector<256x128xf32>
      %47 = arith.addf %44, %46 : vector<256x128xf32>
      %cst_26 = arith.constant 0.000000e+00 : f32
      %48 = vector.broadcast %cst_26 : f32 to vector<256x128xf32>
      %49 = arith.maximumf %47, %48 : vector<256x128xf32>
      %50 = arith.truncf %49 : vector<256x128xf32> to vector<256x128xbf16>
      %cst_27 = arith.constant 0.000000e+00 : bf16
      %51 = vector.broadcast %cst_27 : bf16 to vector<1x18x128xbf16>
      %c0_28 = arith.constant 0 : index
      %c0_29 = arith.constant 0 : index
      %c0_30 = arith.constant 0 : index
      %52 = vector.load %arg10[%c0_28, %c0_29, %c0_30] : memref<18x18x128xbf16, #tpu.memory_space<vmem>>, vector<1x18x128xbf16>
      tpu.vector_store %arg10[%c0_28, %c0_29, %c0_30], %51 {strides = array<i32>} : memref<18x18x128xbf16, #tpu.memory_space<vmem>>, vector<1x18x128xbf16>,
      %cst_31 = arith.constant 0.000000e+00 : bf16
      %53 = vector.broadcast %cst_31 : bf16 to vector<1x18x128xbf16>
      %c17 = arith.constant 17 : index
      %c0_32 = arith.constant 0 : index
      %c0_33 = arith.constant 0 : index
      %54 = vector.load %arg10[%c17, %c0_32, %c0_33] : memref<18x18x128xbf16, #tpu.memory_space<vmem>>, vector<1x18x128xbf16>
      tpu.vector_store %arg10[%c17, %c0_32, %c0_33], %53 {strides = array<i32>} : memref<18x18x128xbf16, #tpu.memory_space<vmem>>, vector<1x18x128xbf16>,
      %cst_34 = arith.constant 0.000000e+00 : bf16
      %55 = vector.broadcast %cst_34 : bf16 to vector<18x1x128xbf16>
      %c0_35 = arith.constant 0 : index
      %c0_36 = arith.constant 0 : index
      %c0_37 = arith.constant 0 : index
      %56 = vector.load %arg10[%c0_35, %c0_36, %c0_37] : memref<18x18x128xbf16, #tpu.memory_space<vmem>>, vector<18x1x128xbf16>
      tpu.vector_store %arg10[%c0_35, %c0_36, %c0_37], %55 {strides = array<i32>} : memref<18x18x128xbf16, #tpu.memory_space<vmem>>, vector<18x1x128xbf16>,
      %cst_38 = arith.constant 0.000000e+00 : bf16
      %57 = vector.broadcast %cst_38 : bf16 to vector<18x1x128xbf16>
      %c0_39 = arith.constant 0 : index
      %c17_40 = arith.constant 17 : index
      %c0_41 = arith.constant 0 : index
      %58 = vector.load %arg10[%c0_39, %c17_40, %c0_41] : memref<18x18x128xbf16, #tpu.memory_space<vmem>>, vector<18x1x128xbf16>
      tpu.vector_store %arg10[%c0_39, %c17_40, %c0_41], %57 {strides = array<i32>} : memref<18x18x128xbf16, #tpu.memory_space<vmem>>, vector<18x1x128xbf16>,
      %59 = vector.shape_cast %50 : vector<256x128xbf16> to vector<16x16x128xbf16>
      %c1 = arith.constant 1 : index
      %c1_42 = arith.constant 1 : index
      %c0_43 = arith.constant 0 : index
      %60 = vector.load %arg10[%c1, %c1_42, %c0_43] : memref<18x18x128xbf16, #tpu.memory_space<vmem>>, vector<16x16x128xbf16>
      tpu.vector_store %arg10[%c1, %c1_42, %c0_43], %59 {strides = array<i32>} : memref<18x18x128xbf16, #tpu.memory_space<vmem>>, vector<16x16x128xbf16>,
    } else {
    }
    %c8_i32 = arith.constant 8 : i32
    %3 = arith.muli %arg1, %c8_i32 : i32
    %4 = arith.index_cast %3 : i32 to index
    %c0 = arith.constant 0 : index
    %c0_1 = arith.constant 0 : index
    %5 = vector.load %arg10[%4, %c0, %c0_1] : memref<18x18x128xbf16, #tpu.memory_space<vmem>>, vector<10x18x128xbf16>
    %6 = vector.extract_strided_slice %5 {offsets = [0, 0, 0], sizes = [8, 16, 128], strides = [1, 1, 1]} : vector<10x18x128xbf16> to vector<8x16x128xbf16>
    %7 = vector.extract_strided_slice %5 {offsets = [0, 1, 0], sizes = [8, 16, 128], strides = [1, 1, 1]} : vector<10x18x128xbf16> to vector<8x16x128xbf16>
    %8 = vector.extract_strided_slice %5 {offsets = [0, 2, 0], sizes = [8, 16, 128], strides = [1, 1, 1]} : vector<10x18x128xbf16> to vector<8x16x128xbf16>
    %9 = vector.extract_strided_slice %5 {offsets = [1, 0, 0], sizes = [8, 16, 128], strides = [1, 1, 1]} : vector<10x18x128xbf16> to vector<8x16x128xbf16>
    %10 = vector.extract_strided_slice %5 {offsets = [1, 1, 0], sizes = [8, 16, 128], strides = [1, 1, 1]} : vector<10x18x128xbf16> to vector<8x16x128xbf16>
    %11 = vector.extract_strided_slice %5 {offsets = [1, 2, 0], sizes = [8, 16, 128], strides = [1, 1, 1]} : vector<10x18x128xbf16> to vector<8x16x128xbf16>
    %12 = vector.extract_strided_slice %5 {offsets = [2, 0, 0], sizes = [8, 16, 128], strides = [1, 1, 1]} : vector<10x18x128xbf16> to vector<8x16x128xbf16>
    %13 = vector.extract_strided_slice %5 {offsets = [2, 1, 0], sizes = [8, 16, 128], strides = [1, 1, 1]} : vector<10x18x128xbf16> to vector<8x16x128xbf16>
    %14 = vector.extract_strided_slice %5 {offsets = [2, 2, 0], sizes = [8, 16, 128], strides = [1, 1, 1]} : vector<10x18x128xbf16> to vector<8x16x128xbf16>
    %15 = tpu.concatenate %6, %7, %8, %9, %10, %11, %12, %13, %14 in 2 : vector<8x16x128xbf16>, vector<8x16x128xbf16>, vector<8x16x128xbf16>, vector<8x16x128xbf16>, vector<8x16x128xbf16>, vector<8x16x128xbf16>, vector<8x16x128xbf16>, vector<8x16x128xbf16>, vector<8x16x128xbf16> -> vector<8x16x1152xbf16>
    %16 = vector.shape_cast %15 : vector<8x16x1152xbf16> to vector<128x1152xbf16>
    %c0_2 = arith.constant 0 : index
    %c0_3 = arith.constant 0 : index
    %17 = vector.load %arg5[%c0_2, %c0_3] : memref<1152x128xbf16, #tpu.memory_space<vmem>>, vector<1152x128xbf16>
    %cst = arith.constant dense<0.000000e+00> : vector<128x128xf32>
    %18 = tpu.matmul %16, %17, %cst {dimension_numbers = #tpu.dot_dimension_numbers<[1], [0], [0], [1], [0, 0, 1, 1], [], []>} : vector<128x1152xbf16>, vector<1152x128xbf16>, vector<128x128xf32> -> vector<128x128xf32>
    %c0_4 = arith.constant 0 : index
    %c0_5 = arith.constant 0 : index
    %19 = vector.load %arg6[%c0_4, %c0_5] : memref<1x128xf32, #tpu.memory_space<vmem>>, vector<1x128xf32>
    %20 = vector.broadcast %19 : vector<1x128xf32> to vector<128x128xf32>
    %21 = arith.addf %18, %20 : vector<128x128xf32>
    %cst_6 = arith.constant 0.000000e+00 : f32
    %22 = vector.broadcast %cst_6 : f32 to vector<128x128xf32>
    %23 = arith.maximumf %21, %22 : vector<128x128xf32>
    %24 = arith.truncf %23 : vector<128x128xf32> to vector<128x128xbf16>
    %c16_i32 = arith.constant 16 : i32
    %25 = arith.muli %3, %c16_i32 : i32
    %c0_7 = arith.constant 0 : index
    %26 = arith.index_cast %25 : i32 to index
    %c0_8 = arith.constant 0 : index
    %27 = vector.load %arg2[%c0_7, %26, %c0_8] : memref<1x256x128xbf16, #tpu.memory_space<vmem>>, vector<1x128x128xbf16>
    %28 = vector.shape_cast %27 : vector<1x128x128xbf16> to vector<128x128xbf16>
    %29 = tpu.concatenate %24, %28 in 1 : vector<128x128xbf16>, vector<128x128xbf16> -> vector<128x256xbf16>
    %c0_9 = arith.constant 0 : index
    %c0_10 = arith.constant 0 : index
    %30 = vector.load %arg7[%c0_9, %c0_10] : memref<256x128xbf16, #tpu.memory_space<vmem>>, vector<256x128xbf16>
    %cst_11 = arith.constant dense<0.000000e+00> : vector<128x128xf32>
    %31 = tpu.matmul %29, %30, %cst_11 {dimension_numbers = #tpu.dot_dimension_numbers<[1], [0], [0], [1], [0, 0, 1, 1], [], []>} : vector<128x256xbf16>, vector<256x128xbf16>, vector<128x128xf32> -> vector<128x128xf32>
    %c0_12 = arith.constant 0 : index
    %c0_13 = arith.constant 0 : index
    %32 = vector.load %arg8[%c0_12, %c0_13] : memref<1x128xf32, #tpu.memory_space<vmem>>, vector<1x128xf32>
    %33 = vector.broadcast %32 : vector<1x128xf32> to vector<128x128xf32>
    %34 = arith.addf %31, %33 : vector<128x128xf32>
    %cst_14 = arith.constant 0.000000e+00 : f32
    %35 = vector.broadcast %cst_14 : f32 to vector<128x128xf32>
    %36 = arith.maximumf %34, %35 : vector<128x128xf32>
    %37 = arith.truncf %36 : vector<128x128xf32> to vector<128x128xbf16>
    %c0_15 = arith.constant 0 : index
    %c0_16 = arith.constant 0 : index
    %c0_17 = arith.constant 0 : index
    %38 = vector.load %arg9[%c0_15, %c0_16, %c0_17] : memref<1x128x128xbf16, #tpu.memory_space<vmem>>, vector<1x128x128xbf16>
    %39 = vector.shape_cast %38 : vector<1x128x128xbf16> to vector<128x128xbf16>
    %40 = vector.shape_cast %37 : vector<128x128xbf16> to vector<1x128x128xbf16>
    tpu.vector_store %arg9[%c0_15, %c0_16, %c0_17], %40 {strides = array<i32>} : memref<1x128x128xbf16, #tpu.memory_space<vmem>>, vector<1x128x128xbf16>,
    return
  }
  func.func @transform_0(%arg0: i32, %arg1: i32) -> (i32, i32, i32) {
    %c0_i32 = arith.constant 0 : i32
    %c0_i32_0 = arith.constant 0 : i32
    %c0_i32_1 = arith.constant 0 : i32
    return %arg0, %c0_i32, %c0_i32_0 : i32, i32, i32
  }
  func.func @transform_1(%arg0: i32, %arg1: i32) -> (i32, i32) {
    %c0_i32 = arith.constant 0 : i32
    %c0_i32_0 = arith.constant 0 : i32
    %c0_i32_1 = arith.constant 0 : i32
    return %c0_i32, %c0_i32_0 : i32, i32
  }
  func.func @transform_2(%arg0: i32, %arg1: i32) -> (i32, i32) {
    %c0_i32 = arith.constant 0 : i32
    %c0_i32_0 = arith.constant 0 : i32
    %c0_i32_1 = arith.constant 0 : i32
    return %c0_i32, %c0_i32_0 : i32, i32
  }
  func.func @transform_3(%arg0: i32, %arg1: i32) -> (i32, i32) {
    %c0_i32 = arith.constant 0 : i32
    %c0_i32_0 = arith.constant 0 : i32
    %c0_i32_1 = arith.constant 0 : i32
    return %c0_i32, %c0_i32_0 : i32, i32
  }
  func.func @transform_4(%arg0: i32, %arg1: i32) -> (i32, i32) {
    %c0_i32 = arith.constant 0 : i32
    %c0_i32_0 = arith.constant 0 : i32
    %c0_i32_1 = arith.constant 0 : i32
    return %c0_i32, %c0_i32_0 : i32, i32
  }
  func.func @transform_5(%arg0: i32, %arg1: i32) -> (i32, i32) {
    %c0_i32 = arith.constant 0 : i32
    %c0_i32_0 = arith.constant 0 : i32
    %c0_i32_1 = arith.constant 0 : i32
    return %c0_i32, %c0_i32_0 : i32, i32
  }
  func.func @transform_6(%arg0: i32, %arg1: i32) -> (i32, i32) {
    %c0_i32 = arith.constant 0 : i32
    %c0_i32_0 = arith.constant 0 : i32
    %c0_i32_1 = arith.constant 0 : i32
    return %c0_i32, %c0_i32_0 : i32, i32
  }
  func.func @transform_7(%arg0: i32, %arg1: i32) -> (i32, i32, i32) {
    %c0_i32 = arith.constant 0 : i32
    %c0_i32_0 = arith.constant 0 : i32
    return %arg0, %arg1, %c0_i32 : i32, i32, i32
  }
}

</mosaic_0001>

<bundles_post_ra>
// kernel: _bottleneck_nhwc_jit.1
= control target key start
LH: loop header
LB: loop body
LE: loop exit
PB: predicated region body
PF: predicated region fallthrough
CT: control target
= control target key end

     0   :  { %s5539_s0 = inlined_call_operand.vmem [shape: bf16[2,256,128], index: 0, kind: input, shape index: {}]   ;;  %s5540_s1 = inlined_call_operand.vmem [shape: bf16[128,128], index: 1, kind: input, shape index: {}]   ;;  %s5541_s2 = inlined_call_operand.vmem [shape: f32[1,128], index: 2, kind: input, shape index: {}]   ;;  %s5542_s3 = inlined_call_operand.vmem [shape: bf16[1152,128], index: 3, kind: input, shape index: {}]   ;;  %s5543_s4 = inlined_call_operand.vmem [shape: f32[1,128], index: 4, kind: input, shape index: {}]   ;;  %s5544_s5 = inlined_call_operand.vmem [shape: bf16[256,128], index: 5, kind: input, shape index: {}]   ;;  %s5545_s6 = inlined_call_operand.vmem [shape: f32[1,128], index: 6, kind: input, shape index: {}]   ;;  %s5546_s7 = inlined_call_operand.hbm [shape: bf16[2,256,128], index: 7, kind: output, shape index: {}]  }
   0x1   :  { %5549 = sst [smem:[#allocation36_spill]] %s5539_s0 }
   0x2   :  { %5550 = sst [smem:[#allocation37_spill]] %s5540_s1 }
   0x3   :  { %12 = vsyncpa [#allocation4], 0 }
   0x4   :  { %14 = vsyncpa [#allocation4 + $0x1], 0  ;;  %s4355_s24 = smov 0   ;;  %s4357_s25 = smov 0  }
   0x5   :  { %s4359_s26 = smov 0   ;;  %s4361_s27 = smov 0  }
   0x6   :  { %s4363_s28 = smov 0   ;;  %s4365_s29 = smov 0  }
   0x7   :  { %s4367_s30 = smov 0   ;;  %s4369_s8 = smov 0  }
   0x8 LB: > { %s3223_s9 = sadd.s32 4294967295, %s4309_s8   ;;  %s3224_s10 = sadd.s32 4294967294, %s4309_s8   ;;  %s4309_s8 = sphi %s4369_s8, %s20_s8   ;;  %s4305_s30 = sphi %s4367_s30, %s5630_s30   ;;  %s4301_s29 = sphi %s4365_s29, %s5629_s29   ;;  %s4297_s28 = sphi %s4363_s28, %s5628_s28   ;;  %s4293_s27 = sphi %s4361_s27, %s5627_s27   ;;  %s4289_s26 = sphi %s4359_s26, %s5626_s26   ;;  %s4285_s25 = sphi %s4357_s25, %s5625_s25   ;;  %s4281_s24 = sphi %s4355_s24, %s5624_s24  }
   0x9   : > { %s29_s11 = sadd.s32 1, %s4301_s29  ;;  %s32_s12 = sadd.s32 1, %s4305_s30 }
   0xa   : > { %p30_p0 = scmp.ge.s32.totalorder %s29_s11, 2  ;;  %p203_p1 = scmp.ne.s32.totalorder %s4289_s26, %s4285_s25 }
   0xb   : > { %p204_p2 = scmp.eq.s32.totalorder %s3223_s9, 3  ;;  %p209_p5 = scmp.ne.s32.totalorder %s4285_s25, %s4281_s24 }
   0xc   : > { %s5632_s11 = smov (%p30_p0, %s29_s11), 0  ;;  %s5634_s12 = smov (!%p30_p0, %s32_s12), %s4305_s30 }
   0xd   : > { %s189_s13 = ssub.s32 %s4301_s29, %s5632_s11  ;;  %p4406_p3 = por %p204_p2, %p203_p1 }
   0xe   : > { %p34_p4 = scmp.ge.s32.totalorder %s5634_s12, 2  ;;  %p210_p6 = scmp.eq.s32.totalorder %s3224_s10, 3 }
   0xf   : > { %p3227_p7 = scmp.ge.s32.totalorder %s4309_s8, 1  ;;  %p254_p9 = scmp.lt.s32.totalorder %s4309_s8, 5 }
  0x10   : > { %s5636_s12 = smov (%p34_p4, %s5634_s12), 0  ;;  %p4415_p8 = por %p210_p6, %p209_p5 }
  0x11   : > { %5552 = sst [smem:[#allocation6_spill]] %s5636_s12  ;;  %s188_s16 = ssub.s32 %s4305_s30, %s5636_s12 }
  0x12   : > { %s193_s17 = sadd.s32 1, %s4289_s26  ;;  %s190_s18 = sor.u32 %s189_s13, %s188_s16 }
  0x13   : > { %p255_p10 = pnand %p3227_p7, %p254_p9  ;;  %p191_p11 = scmp.eq.s32.totalorder %s190_s18, 0 }
  0x15   : > { %s4424_s19 = scalar_select %p191_p11, %s4289_s26, %s193_s17  }
  0x16   : > { %258 = sbr.rel (%p255_p10) target bundleno = 980 (0x3d4), region = 48 }
  0x1b   : > { %s5548_s20 = sand.u32 1, %s4285_s25   ;;  %p286_p12 = scmp.lt.s32.totalorder %s4297_s28, 1 }
  0x1c   : > { %s3228_s21 = sshll.u32 %s5548_s20, 6  ;;  %s5554_s0 = sld [smem:[#allocation36_spill]] }
  0x1d   : > { %s287_s22 = scalar_select %p286_p12, %s4297_s28, 1 }
  0x1e   : > { %s4436_s13 = scalar_lea.vmem [#allocation3], %s3228_s21  ;;  %p3231_p13 = scmp.ne.s32.totalorder %s4293_s27, 0 }
  0x1f   : > { %s3434_s23 = sshll.u32 %s287_s22, 7  ;;  %s5555_s1 = sld [smem:[#allocation37_spill]] (!%p3231_p13) }
  0x20   : > { %296 = sbr.rel (%p3231_p13) target bundleno = 345 (0x159), region = 52 }
  0x22   : > { %s4434_s12 = scalar_lea.vmem %s5554_s0, %s3434_s23 }
  0x25   : > { %v4077_v0 = vld [vmem:[%s5555_s1 + $0x38] sm:$0xff]   ;;  %v4078_v1 = vld [vmem:[%s5555_s1 + $0x30] sm:$0xff]   ;;  %v4079_v2 = vld [vmem:[%s5555_s1 + $0x28] sm:$0xff]   ;;  %vm712_vm0 = vcmask 1040384   ;;  %vm713_vm1 = vsmask.f32 256 }
  0x26   : > { %3891 = vmatprep.subr.bf16.mxu0 %v4077_v0  ;;  %3971 = vmatprep.subr.bf16.mxu1 %v4077_v0  ;;  %v4080_v3 = vld [vmem:[%s5555_s1 + $0x20] sm:$0xff]   ;;  %v4081_v6 = vld [vmem:[%s5555_s1 + $0x18] sm:$0xff]   ;;  %v4082_v7 = vld [vmem:[%s5555_s1 + $0x10] sm:$0xff]   ;;  %vm769_vm3 = vsmask.f32 7938  ;;  %vm1228_vm5 = vcmask 1043456  }
  0x27   : > { %3892 = vmatpush3.bf16.msra.mxu0 %v4077_v0  ;;  %3979 = vmatpush3.bf16.msra.mxu1 %v4077_v0  ;;  %v4085_v4 = vld [vmem:[%s4434_s12] sm:$0xff]   ;;  %v4083_v8 = vld [vmem:[%s5555_s1 + $0x8] sm:$0xff]   ;;  %v4089_v12 = vld [vmem:[%s4434_s12 + $0x10] sm:$0xff]   ;;  %vm905_vm6 = vsmask.f32 4368 }
  0x28   : > { %3893 = vmatprep.subr.bf16.mxu0 %v4078_v1  ;;  %3972 = vmatprep.subr.bf16.mxu1 %v4078_v1  ;;  %v4086_v5 = vld [vmem:[%s4434_s12 + $0x40] sm:$0xff]   ;;  %v4087_v10 = vld [vmem:[%s4434_s12 + $0x8] sm:$0xff]   ;;  %v4090_v13 = vld [vmem:[%s4434_s12 + $0x50] sm:$0xff]  }
  0x29   : > { %3907 = vmatprep.mubr.bf16.mxu0 %v4085_v4  ;;  %3923 = vmatprep.mubr.bf16.mxu1 %v4086_v5  ;;  %v4084_v9 = vld [vmem:[%s5555_s1] sm:$0xff]   ;;  %v4088_v11 = vld [vmem:[%s4434_s12 + $0x48] sm:$0xff]   ;;  %v4091_v14 = vld [vmem:[%s4434_s12 + $0x18] sm:$0xff]  }
  0x2a   : > { %v4092_v15 = vld [vmem:[%s4434_s12 + $0x58] sm:$0xff]   ;;  %v4093_v16 = vld [vmem:[%s4434_s12 + $0x20] sm:$0xff]   ;;  %v4095_v18 = vld [vmem:[%s4434_s12 + $0x28] sm:$0xff]  }
  0x2b   : > { %3894 = vmatpush3.bf16.msra.mxu0 %v4078_v1  ;;  %3980 = vmatpush3.bf16.msra.mxu1 %v4078_v1  ;;  %v4094_v17 = vld [vmem:[%s4434_s12 + $0x60] sm:$0xff]   ;;  %v4096_v19 = vld [vmem:[%s4434_s12 + $0x68] sm:$0xff]   ;;  %v4097_v20 = vld [vmem:[%s4434_s12 + $0x30] sm:$0xff]  }
  0x2c   : > { %3895 = vmatprep.subr.bf16.mxu0 %v4079_v2  ;;  %3973 = vmatprep.subr.bf16.mxu1 %v4079_v2  ;;  %v4098_v21 = vld [vmem:[%s4434_s12 + $0x70] sm:$0xff]   ;;  %v4099_v22 = vld [vmem:[%s4434_s12 + $0x38] sm:$0xff]   ;;  %vm4480_vm2 = vmand %vm712_vm0, %vm713_vm1 }
  0x2d   : > { %v4100_v23 = vld [vmem:[%s4434_s12 + $0x78] sm:$0xff]   ;;  %v718_v29 = vld [vmem:[#allocation2 + $0xc] sm:$0x1]  ;;  %vm4489_vm4 = vmand %vm712_vm0, %vm769_vm3 }
  0x2e   : > { %v721_v25 = vld [vmem:[#allocation2 + $0x18] sm:$0x1]  ;;  %v719_v31 = vsel %vm4480_vm2, 0, %v718_v29  ;;  %v742_v32 = vld [vmem:[#allocation2 + $0x6c] sm:$0x1]  ;;  %vm4580_vm7 = vmand %vm1228_vm5, %vm769_vm3 }
  0x2f   : > { %3896 = vmatpush3.bf16.msra.mxu0 %v4079_v2  ;;  %3981 = vmatpush3.bf16.msra.mxu1 %v4079_v2  ;;  %v745_v26 = vld [vmem:[#allocation2 + $0x78] sm:$0x1]  ;;  %v722_v27 = vsel %vm4480_vm2, 0, %v721_v25  ;;  %720 = vst [vmem:[#allocation2 + $0xc] sm:$0x1] %v719_v31  ;;  %v743_v33 = vsel %vm4480_vm2, 0, %v742_v32  ;;  %vm4608_vm8 = vmor %vm713_vm1, %vm905_vm6 }
  0x30   : > { %3897 = vmatprep.subr.bf16.mxu0 %v4080_v3  ;;  %3974 = vmatprep.subr.bf16.mxu1 %v4080_v3  ;;  %v746_v28 = vsel %vm4480_vm2, 0, %v745_v26  ;;  %723 = vst [vmem:[#allocation2 + $0x18] sm:$0x1] %v722_v27  ;;  %744 = vst [vmem:[#allocation2 + $0x6c] sm:$0x1] %v743_v33  ;;  %v4311_v27 = vmov 0  }
  0x31   : > { %747 = vst [vmem:[#allocation2 + $0x78] sm:$0x1] %v746_v28  ;;  %v777_v34 = vld [vmem:[#allocation2 + $0x20] sm:$0x1]  ;;  %v774_v38 = vld [vmem:[#allocation2 + $0x14] sm:$0x1] }
  0x32   : > { %v778_v35 = vsel %vm4489_vm4, 0, %v777_v34  ;;  %v801_v36 = vld [vmem:[#allocation2 + $0x80] sm:$0x1]  ;;  %v775_v39 = vsel %vm4489_vm4, 0, %v774_v38  ;;  %v798_v40 = vld [vmem:[#allocation2 + $0x74] sm:$0x1] }
  0x33   : > { %3898 = vmatpush3.bf16.msra.mxu0 %v4080_v3  ;;  %3982 = vmatpush3.bf16.msra.mxu1 %v4080_v3  ;;  %779 = vst [vmem:[#allocation2 + $0x20] sm:$0x1] %v778_v35  ;;  %v802_v37 = vsel %vm4489_vm4, 0, %v801_v36  ;;  %776 = vst [vmem:[#allocation2 + $0x14] sm:$0x1] %v775_v39  ;;  %v799_v41 = vsel %vm4489_vm4, 0, %v798_v40 }
  0x34   : > { %3899 = vmatprep.subr.bf16.mxu0 %v4081_v6  ;;  %3975 = vmatprep.subr.bf16.mxu1 %v4081_v6  ;;  %803 = vst [vmem:[#allocation2 + $0x80] sm:$0x1] %v802_v37  ;;  %800 = vst [vmem:[#allocation2 + $0x74] sm:$0x1] %v799_v41  ;;  %v727_v42 = vld [vmem:[#allocation2 + $0x30] sm:$0x1] }
  0x35   : > { %v728_v43 = vsel %vm4480_vm2, 0, %v727_v42  ;;  %v751_v44 = vld [vmem:[#allocation2 + $0x90] sm:$0x1]  ;;  %v724_v46 = vld [vmem:[#allocation2 + $0x24] sm:$0x1] }
  0x36   : > { %729 = vst [vmem:[#allocation2 + $0x30] sm:$0x1] %v728_v43  ;;  %v752_v45 = vsel %vm4480_vm2, 0, %v751_v44  ;;  %v748_v47 = vld [vmem:[#allocation2 + $0x84] sm:$0x1]  ;;  %v725_v48 = vsel %vm4480_vm2, 0, %v724_v46 }
  0x37   : > { %3900 = vmatpush3.bf16.msra.mxu0 %v4081_v6  ;;  %3983 = vmatpush3.bf16.msra.mxu1 %v4081_v6  ;;  %753 = vst [vmem:[#allocation2 + $0x90] sm:$0x1] %v752_v45  ;;  %v749_v49 = vsel %vm4480_vm2, 0, %v748_v47  ;;  %726 = vst [vmem:[#allocation2 + $0x24] sm:$0x1] %v725_v48 }
  0x38   : > { %3901 = vmatprep.subr.bf16.mxu0 %v4082_v7  ;;  %3976 = vmatprep.subr.bf16.mxu1 %v4082_v7  ;;  %750 = vst [vmem:[#allocation2 + $0x84] sm:$0x1] %v749_v49  ;;  %v783_v50 = vld [vmem:[#allocation2 + $0x38] sm:$0x1]  ;;  %v780_v54 = vld [vmem:[#allocation2 + $0x2c] sm:$0x1] }
  0x39   : > { %v784_v51 = vsel %vm4489_vm4, 0, %v783_v50  ;;  %v807_v52 = vld [vmem:[#allocation2 + $0x98] sm:$0x1]  ;;  %v781_v55 = vsel %vm4489_vm4, 0, %v780_v54  ;;  %v804_v56 = vld [vmem:[#allocation2 + $0x8c] sm:$0x1] }
  0x3a   : > { %785 = vst [vmem:[#allocation2 + $0x38] sm:$0x1] %v784_v51  ;;  %v808_v53 = vsel %vm4489_vm4, 0, %v807_v52  ;;  %782 = vst [vmem:[#allocation2 + $0x2c] sm:$0x1] %v781_v55  ;;  %v805_v57 = vsel %vm4489_vm4, 0, %v804_v56 }
  0x3b   : > { %3902 = vmatpush3.bf16.msra.mxu0 %v4082_v7  ;;  %3984 = vmatpush3.bf16.msra.mxu1 %v4082_v7  ;;  %809 = vst [vmem:[#allocation2 + $0x98] sm:$0x1] %v808_v53  ;;  %806 = vst [vmem:[#allocation2 + $0x8c] sm:$0x1] %v805_v57  ;;  %v733_v58 = vld [vmem:[#allocation2 + $0x48] sm:$0x1] }
  0x3c   : > { %3903 = vmatprep.subr.bf16.mxu0 %v4083_v8  ;;  %3977 = vmatprep.subr.bf16.mxu1 %v4083_v8  ;;  %v734_v59 = vsel %vm4480_vm2, 0, %v733_v58  ;;  %v757_v60 = vld [vmem:[#allocation2 + $0xa8] sm:$0x1]  ;;  %v730_v62 = vld [vmem:[#allocation2 + $0x3c] sm:$0x1] }
  0x3d   : > { %735 = vst [vmem:[#allocation2 + $0x48] sm:$0x1] %v734_v59  ;;  %v758_v61 = vsel %vm4480_vm2, 0, %v757_v60  ;;  %v731_v63 = vsel %vm4480_vm2, 0, %v730_v62  ;;  %v754_v0 = vld [vmem:[#allocation2 + $0x9c] sm:$0x1] }
  0x3e   : > { %759 = vst [vmem:[#allocation2 + $0xa8] sm:$0x1] %v758_v61  ;;  %732 = vst [vmem:[#allocation2 + $0x3c] sm:$0x1] %v731_v63  ;;  %v755_v1 = vsel %vm4480_vm2, 0, %v754_v0 }
  0x3f   : > { %3904 = vmatpush3.bf16.msra.mxu0 %v4083_v8  ;;  %3985 = vmatpush3.bf16.msra.mxu1 %v4083_v8  ;;  %756 = vst [vmem:[#allocation2 + $0x9c] sm:$0x1] %v755_v1  ;;  %v789_v2 = vld [vmem:[#allocation2 + $0x50] sm:$0x1]  ;;  %v786_v6 = vld [vmem:[#allocation2 + $0x44] sm:$0x1] }
  0x40   : > { %3905 = vmatprep.subr.bf16.mxu0 %v4084_v9  ;;  %3978 = vmatprep.subr.bf16.mxu1 %v4084_v9  ;;  %v790_v3 = vsel %vm4489_vm4, 0, %v789_v2  ;;  %v813_v4 = vld [vmem:[#allocation2 + $0xb0] sm:$0x1]  ;;  %v787_v7 = vsel %vm4489_vm4, 0, %v786_v6  ;;  %v810_v8 = vld [vmem:[#allocation2 + $0xa4] sm:$0x1] }
  0x41   : > { %791 = vst [vmem:[#allocation2 + $0x50] sm:$0x1] %v790_v3  ;;  %v814_v5 = vsel %vm4489_vm4, 0, %v813_v4  ;;  %788 = vst [vmem:[#allocation2 + $0x44] sm:$0x1] %v787_v7 }
  0x42   : > { %815 = vst [vmem:[#allocation2 + $0xb0] sm:$0x1] %v814_v5  ;;  %v816_v25 = vld [vmem:[#allocation2 + $0xbc] sm:$0x1]  ;;  %705 = vst [vmem:[#allocation2] sm:$0xf] %v4311_v27 }
  0x43   : > { %3906 = vmatpush3.bf16.msra.mxu0 %v4084_v9  ;;  %3986 = vmatpush3.bf16.msra.mxu1 %v4084_v9  ;;  %v811_v9 = vsel %vm4489_vm4, 0, %v810_v8  ;;  %v817_v26 = vsel %vm4489_vm4, 0, %v816_v25  ;;  %706 = vst [vmem:[#allocation2 + $0x4] sm:$0xf] %v4311_v27  ;;  %707 = vst [vmem:[#allocation2 + $0x8] sm:$0x1] %v4311_v27 }
  0x44   : > { %812 = vst [vmem:[#allocation2 + $0xa4] sm:$0x1] %v811_v9  ;;  %818 = vst [vmem:[#allocation2 + $0xbc] sm:$0x1] %v817_v26  ;;  %v4564_v37 = vld [vmem:[%s5541_s2] ss:$0 sm:$0xff] }
  0x45   : > { %709 = vst [vmem:[#allocation2 + $0xcc] sm:$0xf] %v4311_v27  ;;  %710 = vst [vmem:[#allocation2 + $0xd0] sm:$0xf] %v4311_v27  ;;  %v1237_v2 = vld [vmem:[#allocation2 + $0x18] sm:$0xf] }
  0x46   : > { %3908 = vmatmul.mubr.bf16.vlgmr.msra.gmra.mxu0 %v4087_v10  ;;  %3924 = vmatmul.mubr.bf16.vlgmr.msra.gmra.mxu1 %v4088_v11  ;;  %v739_v10 = vld [vmem:[#allocation2 + $0x60] sm:$0x1]  ;;  %711 = vst [vmem:[#allocation2 + $0xd4] sm:$0x1] %v4311_v27  ;;  %v1293_v7 = vld [vmem:[#allocation2 + $0x78] sm:$0xf] }
  0x47   : > { %3911 = vmatprep.mubr.bf16.mxu0 %v4089_v12  ;;  %3927 = vmatprep.mubr.bf16.mxu1 %v4090_v13  ;;  %v740_v11 = vsel %vm4480_vm2, 0, %v739_v10  ;;  %v763_v12 = vld [vmem:[#allocation2 + $0xc0] sm:$0x1]  ;;  %v1230_v25 = vld [vmem:[#allocation2 + $0xc] sm:$0xf] }
  0x48   : > { %741 = vst [vmem:[#allocation2 + $0x60] sm:$0x1] %v740_v11  ;;  %v764_v13 = vsel %vm4480_vm2, 0, %v763_v12  ;;  %v1286_v26 = vld [vmem:[#allocation2 + $0x6c] sm:$0xf] }
  0x49   : > { %765 = vst [vmem:[#allocation2 + $0xc0] sm:$0x1] %v764_v13  ;;  %v715_v28 = vld [vmem:[#allocation2] sm:$0x1] }
  0x4a   : > { %v716_v29 = vsel %vm4480_vm2, 0, %v715_v28  ;;  %v771_v32 = vld [vmem:[#allocation2 + $0x8] sm:$0x1] }
  0x4b   : > { %717 = vst [vmem:[#allocation2] sm:$0x1] %v716_v29  ;;  %v772_v34 = vsel %vm4489_vm4, 0, %v771_v32 }
  0x4c   : > { %v766_v31 = vld [vmem:[#allocation2 + $0xcc] sm:$0x1]  ;;  %773 = vst [vmem:[#allocation2 + $0x8] sm:$0x1] %v772_v34 }
  0x4d   : > { %v767_v33 = vsel %vm4480_vm2, 0, %v766_v31  ;;  %v822_v35 = vld [vmem:[#allocation2 + $0xd4] sm:$0x1] }
  0x4e   : > { %3912 = vmatmul.mubr.bf16.gmra.mxu0 %v4091_v14  ;;  %3928 = vmatmul.mubr.bf16.gmra.mxu1 %v4092_v15  ;;  %v736_v14 = vld [vmem:[#allocation2 + $0x54] sm:$0x1]  ;;  %768 = vst [vmem:[#allocation2 + $0xcc] sm:$0x1] %v767_v33  ;;  %v823_v36 = vsel %vm4489_vm4, 0, %v822_v35 }
  0x4f   : > { %3915 = vmatprep.mubr.bf16.mxu0 %v4093_v16  ;;  %3931 = vmatprep.mubr.bf16.mxu1 %v4094_v17  ;;  %v760_v15 = vld [vmem:[#allocation2 + $0xb4] sm:$0x1]  ;;  %v737_v16 = vsel %vm4480_vm2, 0, %v736_v14  ;;  %824 = vst [vmem:[#allocation2 + $0xd4] sm:$0x1] %v823_v36 }
  0x50   : > { %v761_v17 = vsel %vm4480_vm2, 0, %v760_v15  ;;  %738 = vst [vmem:[#allocation2 + $0x54] sm:$0x1] %v737_v16 }
  0x51   : > { %762 = vst [vmem:[#allocation2 + $0xb4] sm:$0x1] %v761_v17 }
  0x56   : > { %3916 = vmatmul.mubr.bf16.gmra.mxu0 %v4095_v18  ;;  %3932 = vmatmul.mubr.bf16.gmra.mxu1 %v4096_v19  ;;  %v795_v18 = vld [vmem:[#allocation2 + $0x68] sm:$0x1] }
  0x57   : > { %3919 = vmatprep.mubr.bf16.mxu0 %v4097_v20  ;;  %3935 = vmatprep.mubr.bf16.mxu1 %v4098_v21  ;;  %v796_v19 = vsel %vm4489_vm4, 0, %v795_v18  ;;  %v819_v20 = vld [vmem:[#allocation2 + $0xc8] sm:$0x1] }
  0x58   : > { %797 = vst [vmem:[#allocation2 + $0x68] sm:$0x1] %v796_v19  ;;  %v820_v21 = vsel %vm4489_vm4, 0, %v819_v20 }
  0x59   : > { %821 = vst [vmem:[#allocation2 + $0xc8] sm:$0x1] %v820_v21 }
  0x5e   : > { %3920 = vmatmul.mubr.bf16.gmra.mxu0 %v4099_v22  ;;  %3936 = vmatmul.mubr.bf16.gmra.mxu1 %v4100_v23  ;;  %v792_v22 = vld [vmem:[#allocation2 + $0x5c] sm:$0x1] }
  0x5f   : > { %v793_v23 = vsel %vm4489_vm4, 0, %v792_v22 }
  0x60   : > { %794 = vst [vmem:[#allocation2 + $0x5c] sm:$0x1] %v793_v23 }
 0x106   : > { %v3909_v38 = vpop.f32.mrf.mxu0  ;;  %v3925_v39 = vpop.f32.mrf.mxu1 }
 0x107   : > { %v539_v40 = vadd.f32 %v3909_v38, %v4564_v37  ;;  %v603_v41 = vadd.f32 %v3925_v39, %v4564_v37 }
 0x108   : > { %v530_v42 = vpop.f32.mrf.mxu0  ;;  %v594_v43 = vpop.f32.mrf.mxu1 }
 0x109   : > { %v659_v44 = vmax.f32 %v539_v40, 0.0  ;;  %v675_v45 = vmax.f32 %v603_v41, 0.0  ;;  %v531_v46 = vadd.f32 %v4564_v37, %v530_v42  ;;  %v595_v30 = vadd.f32 %v4564_v37, %v594_v43 }
 0x10a   : > { %v3910_v47 = vpop.f32.mrf.mxu0  ;;  %v3926_v48 = vpop.f32.mrf.mxu1 }
 0x10b   : > { %v3437_v49 = vpack.c.bf16 %v659_v44, %v659_v44  ;;  %v3453_v50 = vpack.c.bf16 %v675_v45, %v675_v45  ;;  %v657_v51 = vmax.f32 %v531_v46, 0.0  ;;  %v673_v52 = vmax.f32 %v595_v30, 0.0  ;;  %v1241_v46 = vld [vmem:[#allocation2 + $0x20] sm:$0x1] }
 0x10c   : > { %v542_v53 = vadd.f32 %v3910_v47, %v4564_v37  ;;  %v606_v54 = vadd.f32 %v3926_v48, %v4564_v37  ;;  %v533_v55 = vpop.f32.mrf.mxu0  ;;  %v597_v56 = vpop.f32.mrf.mxu1 }
 0x10d   : > { %v925_v57 = vshrl.u32 %v3437_v49, 16  ;;  %v928_v58 = vshll.u32 %v3437_v49, 16  ;;  %v1061_v59 = vshrl.u32 %v3453_v50, 16  ;;  %v1064_v60 = vshll.u32 %v3453_v50, 16  ;;  %v1297_v50 = vld [vmem:[#allocation2 + $0x80] sm:$0x1] }
 0x10e   : > { %v3435_v61 = vpack.c.bf16 %v657_v51, %v657_v51  ;;  %v3451_v62 = vpack.c.bf16 %v673_v52, %v673_v52  ;;  %v660_v63 = vmax.f32 %v542_v53, 0.0  ;;  %v676_v0 = vmax.f32 %v606_v54, 0.0  ;;  %v3913_v20 = vpop.f32.mrf.mxu0  ;;  %v3929_v21 = vpop.f32.mrf.mxu1 }
 0x10f   : > { %v4572_v1 = vrot.slane %v925_v57, 7  ;;  %v4574_v3 = vrot.slane %v1061_v59, 7  ;;  %v534_v4 = vadd.f32 %v4564_v37, %v533_v55  ;;  %v598_v5 = vadd.f32 %v4564_v37, %v597_v56 }
 0x110   : > { %v908_v8 = vshrl.u32 %v3435_v61, 16  ;;  %v911_v9 = vshll.u32 %v3435_v61, 16  ;;  %v1044_v10 = vshrl.u32 %v3451_v62, 16  ;;  %v1047_v11 = vshll.u32 %v3451_v62, 16  ;;  %v546_v43 = vpop.f32.mrf.mxu0  ;;  %v610_v44 = vpop.f32.mrf.mxu1 }
 0x111   : > { %v930_v12 = vor.u32 %v928_v58, %v4572_v1  ;;  %v931_v13 = vrot.slane %v4572_v1, 4  ;;  %v1066_v14 = vor.u32 %v1064_v60, %v4574_v3  ;;  %v1067_v15 = vrot.slane %v4574_v3, 4 }
 0x112   : > { %v4588_v16 = vrot.slane %v908_v8, 7  ;;  %v4590_v17 = vrot.slane %v1044_v10, 7  ;;  %v3438_v18 = vpack.c.bf16 %v660_v63, %v660_v63  ;;  %v3454_v19 = vpack.c.bf16 %v676_v0, %v676_v0  ;;  %v3914_v63 = vpop.f32.mrf.mxu0  ;;  %v3930_v0 = vpop.f32.mrf.mxu1 }
 0x113   : > { %v1238_v22 = vsel %vm4580_vm7, %v930_v12, %v1237_v2  ;;  %v1294_v23 = vsel %vm4580_vm7, %v1066_v14, %v1293_v7  ;;  %v658_v27 = vmax.f32 %v534_v4, 0.0  ;;  %v674_v28 = vmax.f32 %v598_v5, 0.0  ;;  %v1234_v5 = vld [vmem:[#allocation2 + $0x14] sm:$0x1] }
 0x114   : > { %1239 = vst [vmem:[#allocation2 + $0x18] sm:$0xf] %v1238_v22  ;;  %1295 = vst [vmem:[#allocation2 + $0x78] sm:$0xf] %v1294_v23  ;;  %v913_v29 = vor.u32 %v911_v9, %v4588_v16  ;;  %v914_v31 = vrot.slane %v4588_v16, 4  ;;  %v1049_v32 = vor.u32 %v1047_v11, %v4590_v17  ;;  %v1050_v33 = vrot.slane %v4590_v17, 4 }
 0x115   : > { %v933_v34 = vshrl.u32 %v3438_v18, 16  ;;  %v936_v35 = vshll.u32 %v3438_v18, 16  ;;  %v1069_v36 = vshrl.u32 %v3454_v19, 16  ;;  %v1072_v38 = vshll.u32 %v3454_v19, 16  ;;  %v1290_v7 = vld [vmem:[#allocation2 + $0x74] sm:$0x1] }
 0x116   : > { %v1231_v39 = vsel %vm4580_vm7, %v913_v29, %v1230_v25  ;;  %v1287_v40 = vsel %vm4580_vm7, %v1049_v32, %v1286_v26  ;;  %v3436_v41 = vpack.c.bf16 %v658_v27, %v658_v27  ;;  %v3452_v42 = vpack.c.bf16 %v674_v28, %v674_v28 }
 0x117   : > { %1232 = vst [vmem:[#allocation2 + $0xc] sm:$0xf] %v1231_v39  ;;  %1288 = vst [vmem:[#allocation2 + $0x6c] sm:$0xf] %v1287_v40  ;;  %v935_v45 = vrot.slane %v933_v34, 7  ;;  %v1071_v30 = vrot.slane %v1069_v36, 7  ;;  %v555_v47 = vadd.f32 %v3913_v20, %v4564_v37  ;;  %v619_v48 = vadd.f32 %v3929_v21, %v4564_v37  ;;  %v549_v20 = vpop.f32.mrf.mxu0  ;;  %v613_v21 = vpop.f32.mrf.mxu1 }
 0x118   : > { %v916_v51 = vshrl.u32 %v3436_v41, 16  ;;  %v919_v52 = vshll.u32 %v3436_v41, 16  ;;  %v1052_v53 = vshrl.u32 %v3452_v42, 16  ;;  %v1055_v54 = vshll.u32 %v3452_v42, 16  ;;  %v1251_v36 = vld [vmem:[#allocation2 + $0x30] sm:$0xf] }
 0x119   : > { %v938_v55 = vor.u32 %v936_v35, %v935_v45  ;;  %v940_v56 = vrot.slane %v935_v45, 4  ;;  %v1074_v57 = vor.u32 %v1072_v38, %v1071_v30  ;;  %v1076_v58 = vrot.slane %v1071_v30, 4  ;;  %v1307_v38 = vld [vmem:[#allocation2 + $0x90] sm:$0xf] }
 0x11a   : > { %v918_v59 = vrot.slane %v916_v51, 7  ;;  %v1054_v60 = vrot.slane %v1052_v53, 7  ;;  %v663_v61 = vmax.f32 %v555_v47, 0.0  ;;  %v679_v62 = vmax.f32 %v619_v48, 0.0  ;;  %v3917_v51 = vpop.f32.mrf.mxu0 }
 0x11b   : > { %v939_v1 = vsel %vm4608_vm8, %v931_v13, %v938_v55  ;;  %v1242_v2 = vsel %vm4480_vm2, %v940_v56, %v1241_v46  ;;  %v1075_v3 = vsel %vm4608_vm8, %v1067_v15, %v1074_v57  ;;  %v1298_v4 = vsel %vm4480_vm2, %v1076_v58, %v1297_v50  ;;  %v1244_v58 = vld [vmem:[#allocation2 + $0x24] sm:$0xf] }
 0x11c   : > { %1240 = vst [vmem:[#allocation2 + $0x1c] sm:$0xf] %v939_v1  ;;  %1243 = vst [vmem:[#allocation2 + $0x20] sm:$0x1] %v1242_v2  ;;  %v921_v8 = vor.u32 %v919_v52, %v918_v59  ;;  %v923_v9 = vrot.slane %v918_v59, 4  ;;  %v1057_v10 = vor.u32 %v1055_v54, %v1054_v60  ;;  %v1059_v11 = vrot.slane %v1054_v60, 4  ;;  %v3933_v52 = vpop.f32.mrf.mxu1 }
 0x11d   : > { %1296 = vst [vmem:[#allocation2 + $0x7c] sm:$0xf] %v1075_v3  ;;  %1299 = vst [vmem:[#allocation2 + $0x80] sm:$0x1] %v1298_v4  ;;  %v3441_v12 = vpack.c.bf16 %v663_v61, %v663_v61  ;;  %v3457_v13 = vpack.c.bf16 %v679_v62, %v679_v62  ;;  %v547_v14 = vadd.f32 %v4564_v37, %v546_v43  ;;  %v1300_v62 = vld [vmem:[#allocation2 + $0x84] sm:$0xf] }
 0x11e   : > { %v611_v16 = vadd.f32 %v4564_v37, %v610_v44  ;;  %v922_v15 = vsel %vm4608_vm8, %v914_v31, %v921_v8  ;;  %v1235_v17 = vsel %vm4480_vm2, %v923_v9, %v1234_v5  ;;  %v1058_v18 = vsel %vm4608_vm8, %v1050_v33, %v1057_v10  ;;  %v562_v8 = vpop.f32.mrf.mxu0  ;;  %v626_v9 = vpop.f32.mrf.mxu1 }
 0x11f   : > { %v1291_v19 = vsel %vm4480_vm2, %v1059_v11, %v1290_v7  ;;  %1233 = vst [vmem:[#allocation2 + $0x10] sm:$0xf] %v922_v15  ;;  %1236 = vst [vmem:[#allocation2 + $0x14] sm:$0x1] %v1235_v17  ;;  %v959_v22 = vshrl.u32 %v3441_v12, 16  ;;  %v962_v23 = vshll.u32 %v3441_v12, 16  ;;  %v558_v29 = vadd.f32 %v3914_v63, %v4564_v37 }
 0x120   : > { %1289 = vst [vmem:[#allocation2 + $0x70] sm:$0xf] %v1058_v18  ;;  %1292 = vst [vmem:[#allocation2 + $0x74] sm:$0x1] %v1291_v19  ;;  %v1095_v25 = vshrl.u32 %v3457_v13, 16  ;;  %v1098_v26 = vshll.u32 %v3457_v13, 16  ;;  %v622_v31 = vadd.f32 %v3930_v0, %v4564_v37  ;;  %v550_v34 = vadd.f32 %v4564_v37, %v549_v20 }
 0x121   : > { %v661_v27 = vmax.f32 %v547_v14, 0.0  ;;  %v677_v28 = vmax.f32 %v611_v16, 0.0  ;;  %v4632_v32 = vrot.slane %v959_v22, 7  ;;  %v614_v35 = vadd.f32 %v4564_v37, %v613_v21  ;;  %v1255_v15 = vld [vmem:[#allocation2 + $0x38] sm:$0x1] }
 0x122   : > { %v4634_v33 = vrot.slane %v1095_v25, 7  ;;  %v664_v41 = vmax.f32 %v558_v29, 0.0  ;;  %v680_v42 = vmax.f32 %v622_v31, 0.0  ;;  %v662_v60 = vmax.f32 %v550_v34, 0.0  ;;  %v1311_v17 = vld [vmem:[#allocation2 + $0x98] sm:$0x1]  ;;  %v3918_v29 = vpop.f32.mrf.mxu0  ;;  %v3934_v31 = vpop.f32.mrf.mxu1 }
 0x123   : > { %v3439_v39 = vpack.c.bf16 %v661_v27, %v661_v27  ;;  %v3455_v40 = vpack.c.bf16 %v677_v28, %v677_v28  ;;  %v964_v43 = vor.u32 %v962_v23, %v4632_v32  ;;  %v965_v44 = vrot.slane %v4632_v32, 4 }
 0x124   : > { %v1100_v45 = vor.u32 %v1098_v26, %v4634_v33  ;;  %v1101_v46 = vrot.slane %v4634_v33, 4  ;;  %v3442_v55 = vpack.c.bf16 %v664_v41, %v664_v41  ;;  %v3458_v56 = vpack.c.bf16 %v680_v42, %v680_v42  ;;  %v1248_v41 = vld [vmem:[#allocation2 + $0x2c] sm:$0x1] }
 0x125   : > { %v942_v30 = vshrl.u32 %v3439_v39, 16  ;;  %v945_v47 = vshll.u32 %v3439_v39, 16  ;;  %v1078_v48 = vshrl.u32 %v3455_v40, 16  ;;  %v1081_v50 = vshll.u32 %v3455_v40, 16  ;;  %v1304_v42 = vld [vmem:[#allocation2 + $0x8c] sm:$0x1] }
 0x126   : > { %v1252_v53 = vsel %vm4580_vm7, %v964_v43, %v1251_v36  ;;  %v1308_v54 = vsel %vm4580_vm7, %v1100_v45, %v1307_v38  ;;  %v678_v61 = vmax.f32 %v614_v35, 0.0  ;;  %v967_v63 = vshrl.u32 %v3442_v55, 16 }
 0x127   : > { %1253 = vst [vmem:[#allocation2 + $0x30] sm:$0xf] %v1252_v53  ;;  %1309 = vst [vmem:[#allocation2 + $0x90] sm:$0xf] %v1308_v54  ;;  %v4646_v57 = vrot.slane %v942_v30, 7  ;;  %v4648_v59 = vrot.slane %v1078_v48, 7  ;;  %v3440_v12 = vpack.c.bf16 %v662_v60, %v662_v60  ;;  %v571_v18 = vadd.f32 %v3917_v51, %v4564_v37  ;;  %v629_v60 = vpop.f32.mrf.mxu1 }
 0x128   : > { %v970_v0 = vshll.u32 %v3442_v55, 16  ;;  %v1103_v1 = vshrl.u32 %v3458_v56, 16  ;;  %v1106_v2 = vshll.u32 %v3458_v56, 16  ;;  %v969_v10 = vrot.slane %v967_v63, 7 }
 0x129   : > { %v947_v3 = vor.u32 %v945_v47, %v4646_v57  ;;  %v948_v4 = vrot.slane %v4646_v57, 4  ;;  %v1083_v5 = vor.u32 %v1081_v50, %v4648_v59  ;;  %v1084_v7 = vrot.slane %v4648_v59, 4  ;;  %v565_v59 = vpop.f32.mrf.mxu0 }
 0x12a   : > { %v1105_v11 = vrot.slane %v1103_v1, 7  ;;  %v3456_v13 = vpack.c.bf16 %v678_v61, %v678_v61  ;;  %v635_v19 = vadd.f32 %v3933_v52, %v4564_v37  ;;  %v972_v20 = vor.u32 %v970_v0, %v969_v10 }
 0x12b   : > { %v1245_v14 = vsel %vm4580_vm7, %v947_v3, %v1244_v58  ;;  %v1301_v16 = vsel %vm4580_vm7, %v1083_v5, %v1300_v62  ;;  %v974_v21 = vrot.slane %v969_v10, 4  ;;  %v950_v25 = vshrl.u32 %v3440_v12, 16 }
 0x12c   : > { %1246 = vst [vmem:[#allocation2 + $0x24] sm:$0xf] %v1245_v14  ;;  %1302 = vst [vmem:[#allocation2 + $0x84] sm:$0xf] %v1301_v16  ;;  %v1108_v22 = vor.u32 %v1106_v2, %v1105_v11  ;;  %v1110_v23 = vrot.slane %v1105_v11, 4  ;;  %v953_v26 = vshll.u32 %v3440_v12, 16  ;;  %v973_v32 = vsel %vm4608_vm8, %v965_v44, %v972_v20 }
 0x12d   : > { %v1086_v27 = vshrl.u32 %v3456_v13, 16  ;;  %v1089_v28 = vshll.u32 %v3456_v13, 16  ;;  %v1256_v33 = vsel %vm4480_vm2, %v974_v21, %v1255_v15  ;;  %1254 = vst [vmem:[#allocation2 + $0x34] sm:$0xf] %v973_v32  ;;  %v952_v36 = vrot.slane %v950_v25, 7  ;;  %v3921_v25 = vpop.f32.mrf.mxu0 }
 0x12e   : > { %v1109_v34 = vsel %vm4608_vm8, %v1101_v46, %v1108_v22  ;;  %v1312_v35 = vsel %vm4480_vm2, %v1110_v23, %v1311_v17  ;;  %1257 = vst [vmem:[#allocation2 + $0x38] sm:$0x1] %v1256_v33  ;;  %v667_v39 = vmax.f32 %v571_v18, 0.0  ;;  %v683_v40 = vmax.f32 %v635_v19, 0.0  ;;  %v1321_v11 = vld [vmem:[#allocation2 + $0xa8] sm:$0xf] }
 0x12f   : > { %1310 = vst [vmem:[#allocation2 + $0x94] sm:$0xf] %v1109_v34  ;;  %1313 = vst [vmem:[#allocation2 + $0x98] sm:$0x1] %v1312_v35  ;;  %v1088_v38 = vrot.slane %v1086_v27, 7  ;;  %v563_v43 = vadd.f32 %v4564_v37, %v562_v8  ;;  %v627_v44 = vadd.f32 %v4564_v37, %v626_v9  ;;  %v574_v45 = vadd.f32 %v3918_v29, %v4564_v37 }
 0x130   : > { %v638_v46 = vadd.f32 %v3934_v31, %v4564_v37  ;;  %v955_v30 = vor.u32 %v953_v26, %v952_v36  ;;  %v957_v47 = vrot.slane %v952_v36, 4  ;;  %v3445_v51 = vpack.c.bf16 %v667_v39, %v667_v39  ;;  %v3937_v26 = vpop.f32.mrf.mxu1  ;;  %v1258_v29 = vld [vmem:[#allocation2 + $0x3c] sm:$0xf] }
 0x131   : > { %v1091_v48 = vor.u32 %v1089_v28, %v1088_v38  ;;  %v1093_v50 = vrot.slane %v1088_v38, 4  ;;  %v3461_v52 = vpack.c.bf16 %v683_v40, %v683_v40  ;;  %v665_v53 = vmax.f32 %v563_v43, 0.0  ;;  %v1314_v31 = vld [vmem:[#allocation2 + $0x9c] sm:$0xf] }
 0x132   : > { %v681_v54 = vmax.f32 %v627_v44, 0.0  ;;  %v956_v55 = vsel %vm4608_vm8, %v948_v4, %v955_v30  ;;  %v1249_v56 = vsel %vm4480_vm2, %v957_v47, %v1248_v41  ;;  %v993_v61 = vshrl.u32 %v3445_v51, 16  ;;  %v578_v30 = vpop.f32.mrf.mxu0  ;;  %v642_v47 = vpop.f32.mrf.mxu1 }
 0x133   : > { %v1092_v57 = vsel %vm4608_vm8, %v1084_v7, %v1091_v48  ;;  %v1305_v58 = vsel %vm4480_vm2, %v1093_v50, %v1304_v42  ;;  %1247 = vst [vmem:[#allocation2 + $0x28] sm:$0xf] %v956_v55  ;;  %1250 = vst [vmem:[#allocation2 + $0x2c] sm:$0x1] %v1249_v56  ;;  %v996_v62 = vshll.u32 %v3445_v51, 16  ;;  %v1129_v63 = vshrl.u32 %v3461_v52, 16 }
 0x134   : > { %1303 = vst [vmem:[#allocation2 + $0x88] sm:$0xf] %v1092_v57  ;;  %1306 = vst [vmem:[#allocation2 + $0x8c] sm:$0x1] %v1305_v58  ;;  %v1132_v0 = vshll.u32 %v3461_v52, 16  ;;  %v3443_v1 = vpack.c.bf16 %v665_v53, %v665_v53  ;;  %v3459_v2 = vpack.c.bf16 %v681_v54, %v681_v54  ;;  %v668_v3 = vmax.f32 %v574_v45, 0.0 }
 0x135   : > { %v684_v4 = vmax.f32 %v638_v46, 0.0  ;;  %v4680_v5 = vrot.slane %v993_v61, 7  ;;  %v1265_v7 = vld [vmem:[#allocation2 + $0x48] sm:$0xf]  ;;  %v4682_v8 = vrot.slane %v1129_v63, 7  ;;  %v566_v9 = vadd.f32 %v4564_v37, %v565_v59 }
 0x136   : > { %v630_v10 = vadd.f32 %v4564_v37, %v629_v60  ;;  %v976_v12 = vshrl.u32 %v3443_v1, 16  ;;  %v979_v13 = vshll.u32 %v3443_v1, 16  ;;  %v1112_v14 = vshrl.u32 %v3459_v2, 16  ;;  %v1269_v50 = vld [vmem:[#allocation2 + $0x50] sm:$0x1] }
 0x137   : > { %v1115_v16 = vshll.u32 %v3459_v2, 16  ;;  %v998_v15 = vor.u32 %v996_v62, %v4680_v5  ;;  %v999_v17 = vrot.slane %v4680_v5, 4  ;;  %v1134_v18 = vor.u32 %v1132_v0, %v4682_v8  ;;  %v1325_v54 = vld [vmem:[#allocation2 + $0xb0] sm:$0x1] }
 0x138   : > { %v1135_v19 = vrot.slane %v4682_v8, 4  ;;  %v4690_v20 = vrot.slane %v976_v12, 7  ;;  %v4692_v21 = vrot.slane %v1112_v14, 7  ;;  %v3446_v22 = vpack.c.bf16 %v668_v3, %v668_v3  ;;  %v3922_v3 = vpop.f32.mrf.mxu0 }
 0x139   : > { %v3462_v23 = vpack.c.bf16 %v684_v4, %v684_v4  ;;  %v1266_v27 = vsel %vm4580_vm7, %v998_v15, %v1265_v7  ;;  %v1322_v28 = vsel %vm4580_vm7, %v1134_v18, %v1321_v11  ;;  %v666_v32 = vmax.f32 %v566_v9, 0.0  ;;  %v3938_v4 = vpop.f32.mrf.mxu1  ;;  %v1318_v11 = vld [vmem:[#allocation2 + $0xa4] sm:$0x1] }
 0x13a   : > { %v682_v33 = vmax.f32 %v630_v10, 0.0  ;;  %1267 = vst [vmem:[#allocation2 + $0x48] sm:$0xf] %v1266_v27  ;;  %1323 = vst [vmem:[#allocation2 + $0xa8] sm:$0xf] %v1322_v28  ;;  %v981_v34 = vor.u32 %v979_v13, %v4690_v20  ;;  %v982_v35 = vrot.slane %v4690_v20, 4  ;;  %v1117_v36 = vor.u32 %v1115_v16, %v4692_v21 }
 0x13b   : > { %v1118_v38 = vrot.slane %v4692_v21, 4  ;;  %v1001_v39 = vshrl.u32 %v3446_v22, 16  ;;  %v1004_v40 = vshll.u32 %v3446_v22, 16  ;;  %v1137_v41 = vshrl.u32 %v3462_v23, 16  ;;  %v1262_v10 = vld [vmem:[#allocation2 + $0x44] sm:$0x1] }
 0x13c   : > { %v1140_v42 = vshll.u32 %v3462_v23, 16  ;;  %v1259_v43 = vsel %vm4580_vm7, %v981_v34, %v1258_v29  ;;  %v1315_v44 = vsel %vm4580_vm7, %v1117_v36, %v1314_v31  ;;  %v3444_v45 = vpack.c.bf16 %v666_v32, %v666_v32 }
 0x13d   : > { %v3460_v46 = vpack.c.bf16 %v682_v33, %v682_v33  ;;  %1260 = vst [vmem:[#allocation2 + $0x3c] sm:$0xf] %v1259_v43  ;;  %1316 = vst [vmem:[#allocation2 + $0x9c] sm:$0xf] %v1315_v44  ;;  %v1003_v48 = vrot.slane %v1001_v39, 7  ;;  %v1139_v51 = vrot.slane %v1137_v41, 7  ;;  %v587_v52 = vadd.f32 %v3921_v25, %v4564_v37  ;;  %v581_v25 = vpop.f32.mrf.mxu0 }
 0x13e   : > { %v651_v53 = vadd.f32 %v3937_v26, %v4564_v37  ;;  %v984_v55 = vshrl.u32 %v3444_v45, 16  ;;  %v987_v56 = vshll.u32 %v3444_v45, 16  ;;  %v579_v18 = vadd.f32 %v4564_v37, %v578_v30  ;;  %v645_v26 = vpop.f32.mrf.mxu1  ;;  %v1279_v41 = vld [vmem:[#allocation2 + $0x60] sm:$0xf] }
 0x13f   : > { %v1120_v57 = vshrl.u32 %v3460_v46, 16  ;;  %v1123_v58 = vshll.u32 %v3460_v46, 16  ;;  %v1006_v59 = vor.u32 %v1004_v40, %v1003_v48  ;;  %v1008_v60 = vrot.slane %v1003_v48, 4 }
 0x140   : > { %v1142_v61 = vor.u32 %v1140_v42, %v1139_v51  ;;  %v1144_v62 = vrot.slane %v1139_v51, 4  ;;  %v986_v63 = vrot.slane %v984_v55, 7  ;;  %v671_v1 = vmax.f32 %v587_v52, 0.0  ;;  %v1335_v42 = vld [vmem:[#allocation2 + $0xc0] sm:$0xf] }
 0x141   : > { %v1122_v0 = vrot.slane %v1120_v57, 7  ;;  %v687_v2 = vmax.f32 %v651_v53, 0.0  ;;  %v1007_v5 = vsel %vm4608_vm8, %v999_v17, %v1006_v59  ;;  %v1270_v7 = vsel %vm4480_vm2, %v1008_v60, %v1269_v50  ;;  %v1272_v60 = vld [vmem:[#allocation2 + $0x54] sm:$0xf] }
 0x142   : > { %v1143_v8 = vsel %vm4608_vm8, %v1135_v19, %v1142_v61  ;;  %v1326_v9 = vsel %vm4480_vm2, %v1144_v62, %v1325_v54  ;;  %1268 = vst [vmem:[#allocation2 + $0x4c] sm:$0xf] %v1007_v5  ;;  %1271 = vst [vmem:[#allocation2 + $0x50] sm:$0x1] %v1270_v7  ;;  %v989_v12 = vor.u32 %v987_v56, %v986_v63  ;;  %v991_v13 = vrot.slane %v986_v63, 4 }
 0x143   : > { %1324 = vst [vmem:[#allocation2 + $0xac] sm:$0xf] %v1143_v8  ;;  %1327 = vst [vmem:[#allocation2 + $0xb0] sm:$0x1] %v1326_v9  ;;  %v1125_v14 = vor.u32 %v1123_v58, %v1122_v0  ;;  %v1127_v16 = vrot.slane %v1122_v0, 4  ;;  %v3449_v15 = vpack.c.bf16 %v671_v1, %v671_v1  ;;  %v3465_v17 = vpack.c.bf16 %v687_v2, %v687_v2 }
 0x144   : > { %v643_v20 = vadd.f32 %v4564_v37, %v642_v47  ;;  %v990_v19 = vsel %vm4608_vm8, %v982_v35, %v989_v12  ;;  %v1263_v21 = vsel %vm4480_vm2, %v991_v13, %v1262_v10  ;;  %v669_v32 = vmax.f32 %v579_v18, 0.0  ;;  %v1328_v61 = vld [vmem:[#allocation2 + $0xb4] sm:$0xf]  ;;  %v1283_v13 = vld [vmem:[#allocation2 + $0x68] sm:$0x1] }
 0x145   : > { %v1126_v22 = vsel %vm4608_vm8, %v1118_v38, %v1125_v14  ;;  %v1319_v23 = vsel %vm4480_vm2, %v1127_v16, %v1318_v11  ;;  %1261 = vst [vmem:[#allocation2 + $0x40] sm:$0xf] %v990_v19  ;;  %1264 = vst [vmem:[#allocation2 + $0x44] sm:$0x1] %v1263_v21  ;;  %v1027_v27 = vshrl.u32 %v3449_v15, 16  ;;  %v1030_v28 = vshll.u32 %v3449_v15, 16 }
 0x146   : > { %1317 = vst [vmem:[#allocation2 + $0xa0] sm:$0xf] %v1126_v22  ;;  %1320 = vst [vmem:[#allocation2 + $0xa4] sm:$0x1] %v1319_v23  ;;  %v1163_v29 = vshrl.u32 %v3465_v17, 16  ;;  %v1166_v31 = vshll.u32 %v3465_v17, 16  ;;  %v590_v34 = vadd.f32 %v3922_v3, %v4564_v37  ;;  %v654_v35 = vadd.f32 %v3938_v4, %v4564_v37 }
 0x147   : > { %v685_v33 = vmax.f32 %v643_v20, 0.0  ;;  %v1029_v36 = vrot.slane %v1027_v27, 7  ;;  %v582_v39 = vadd.f32 %v4564_v37, %v581_v25  ;;  %v646_v40 = vadd.f32 %v4564_v37, %v645_v26  ;;  %v1339_v14 = vld [vmem:[#allocation2 + $0xc8] sm:$0x1] }
 0x148   : > { %v1165_v38 = vrot.slane %v1163_v29, 7  ;;  %v3447_v43 = vpack.c.bf16 %v669_v32, %v669_v32  ;;  %v672_v45 = vmax.f32 %v590_v34, 0.0  ;;  %v688_v46 = vmax.f32 %v654_v35, 0.0  ;;  %v1276_v32 = vld [vmem:[#allocation2 + $0x5c] sm:$0x1] }
 0x149   : > { %v3463_v44 = vpack.c.bf16 %v685_v33, %v685_v33  ;;  %v1032_v30 = vor.u32 %v1030_v28, %v1029_v36  ;;  %v670_v58 = vmax.f32 %v582_v39, 0.0  ;;  %v686_v59 = vmax.f32 %v646_v40, 0.0  ;;  %v1332_v33 = vld [vmem:[#allocation2 + $0xbc] sm:$0x1] }
 0x14a   : > { %v1168_v47 = vor.u32 %v1166_v31, %v1165_v38  ;;  %v1010_v48 = vshrl.u32 %v3447_v43, 16  ;;  %v1013_v50 = vshll.u32 %v3447_v43, 16  ;;  %v3450_v55 = vpack.c.bf16 %v672_v45, %v672_v45 }
 0x14b   : > { %v1146_v51 = vshrl.u32 %v3463_v44, 16  ;;  %v1149_v52 = vshll.u32 %v3463_v44, 16  ;;  %v1280_v53 = vsel %vm4580_vm7, %v1032_v30, %v1279_v41  ;;  %v3466_v37 = vpack.c.bf16 %v688_v46, %v688_v46 }
 0x14c   : > { %v1336_v54 = vsel %vm4580_vm7, %v1168_v47, %v1335_v42  ;;  %1281 = vst [vmem:[#allocation2 + $0x60] sm:$0xf] %v1280_v53  ;;  %v1012_v56 = vrot.slane %v1010_v48, 7  ;;  %v1035_v62 = vshrl.u32 %v3450_v55, 16  ;;  %v1038_v2 = vshll.u32 %v3450_v55, 16 }
 0x14d   : > { %1337 = vst [vmem:[#allocation2 + $0xc0] sm:$0xf] %v1336_v54  ;;  %v1148_v57 = vrot.slane %v1146_v51, 7  ;;  %v1171_v63 = vshrl.u32 %v3466_v37, 16  ;;  %v1174_v3 = vshll.u32 %v3466_v37, 16  ;;  %v3448_v7 = vpack.c.bf16 %v670_v58, %v670_v58 }
 0x14e   : > { %v1015_v0 = vor.u32 %v1013_v50, %v1012_v56  ;;  %v1037_v4 = vrot.slane %v1035_v62, 7  ;;  %v3464_v8 = vpack.c.bf16 %v686_v59, %v686_v59  ;;  %v1033_v9 = vrot.slane %v1029_v36, 4 }
 0x14f   : > { %v1151_v1 = vor.u32 %v1149_v52, %v1148_v57  ;;  %v1173_v5 = vrot.slane %v1171_v63, 7  ;;  %v1169_v10 = vrot.slane %v1165_v38, 4  ;;  %v1018_v20 = vshrl.u32 %v3448_v7, 16 }
 0x150   : > { %v1273_v11 = vsel %vm4580_vm7, %v1015_v0, %v1272_v60  ;;  %v1040_v16 = vor.u32 %v1038_v2, %v1037_v4  ;;  %v1042_v15 = vrot.slane %v1037_v4, 4  ;;  %v1154_v19 = vshrl.u32 %v3464_v8, 16 }
 0x151   : > { %v1329_v12 = vsel %vm4580_vm7, %v1151_v1, %v1328_v61  ;;  %1274 = vst [vmem:[#allocation2 + $0x54] sm:$0xf] %v1273_v11  ;;  %v1176_v17 = vor.u32 %v1174_v3, %v1173_v5  ;;  %v1178_v18 = vrot.slane %v1173_v5, 4  ;;  %v1020_v25 = vrot.slane %v1018_v20, 7 }
 0x152   : > { %1330 = vst [vmem:[#allocation2 + $0xb4] sm:$0xf] %v1329_v12  ;;  %v1041_v21 = vsel %vm4608_vm8, %v1033_v9, %v1040_v16  ;;  %v1284_v22 = vsel %vm4480_vm2, %v1042_v15, %v1283_v13  ;;  %v1021_v26 = vshll.u32 %v3448_v7, 16  ;;  %v1156_v27 = vrot.slane %v1154_v19, 7 }
 0x153   : > { %v1177_v6 = vsel %vm4608_vm8, %v1169_v10, %v1176_v17  ;;  %v1340_v23 = vsel %vm4480_vm2, %v1178_v18, %v1339_v14  ;;  %1282 = vst [vmem:[#allocation2 + $0x64] sm:$0xf] %v1041_v21  ;;  %1285 = vst [vmem:[#allocation2 + $0x68] sm:$0x1] %v1284_v22  ;;  %v1157_v28 = vshll.u32 %v3464_v8, 16  ;;  %v1016_v29 = vrot.slane %v1012_v56, 4 }
 0x154   : > { %1338 = vst [vmem:[#allocation2 + $0xc4] sm:$0xf] %v1177_v6  ;;  %1341 = vst [vmem:[#allocation2 + $0xc8] sm:$0x1] %v1340_v23  ;;  %v1152_v31 = vrot.slane %v1148_v57, 4  ;;  %v1023_v34 = vor.u32 %v1021_v26, %v1020_v25  ;;  %v1025_v35 = vrot.slane %v1020_v25, 4 }
 0x155   : > { %v1159_v36 = vor.u32 %v1157_v28, %v1156_v27  ;;  %v1161_v38 = vrot.slane %v1156_v27, 4 }
 0x156   : > { %v1024_v39 = vsel %vm4608_vm8, %v1016_v29, %v1023_v34  ;;  %v1277_v40 = vsel %vm4480_vm2, %v1025_v35, %v1276_v32 }
 0x157   : > { %v1160_v41 = vsel %vm4608_vm8, %v1152_v31, %v1159_v36  ;;  %v1333_v42 = vsel %vm4480_vm2, %v1161_v38, %v1332_v33  ;;  %1275 = vst [vmem:[#allocation2 + $0x58] sm:$0xf] %v1024_v39  ;;  %1278 = vst [vmem:[#allocation2 + $0x5c] sm:$0x1] %v1277_v40 }
 0x158   : > { %1331 = vst [vmem:[#allocation2 + $0xb8] sm:$0xf] %v1160_v41  ;;  %1334 = vst [vmem:[#allocation2 + $0xbc] sm:$0x1] %v1333_v42 }
 0x159 PF: > { %v4101_v43 = vld [vmem:[%s5542_s3 + $0x78] sm:$0xff]   ;;  %v4105_v45 = vld [vmem:[%s5542_s3 + $0x70] sm:$0xff]   ;;  %v4109_v48 = vld [vmem:[%s5542_s3 + $0x68] sm:$0xff]   ;;  %s3467_s17 = smul.u32 96, %s4293_s27  ;;  %vm1448_vm9 = vsmask.f32 7424 }
 0x15a   : > { %v4102_v44 = vld [vmem:[%s5542_s3 + $0x38] sm:$0xff]   ;;  %3555 = vmatprep.subr.bf16.mxu0 %v4101_v43  ;;  %v4106_v46 = vld [vmem:[%s5542_s3 + $0x30] sm:$0xff]   ;;  %v4110_v50 = vld [vmem:[%s5542_s3 + $0x28] sm:$0xff]   ;;  %vm1553_vm10 = vcmask 1046528   ;;  %s3429_s0 = sshll.u32 %s4293_s27, 4  ;;  %s3430_s20 = sshll.u32 %s4297_s28, 5 }
 0x15b   : > { %v4103_v49 = vld [vmem:[%s5542_s3 + $0xf8] sm:$0xff]   ;;  %3556 = vmatpush3.bf16.msra.mxu0 %v4102_v44  ;;  %v4107_v30 = vld [vmem:[%s5542_s3 + $0xf0] sm:$0xff]   ;;  %v4111_v51 = vld [vmem:[%s5542_s3 + $0xe8] sm:$0xff]   ;;  %s4848_s18 = scalar_lea.vmem [#allocation2], %s3467_s17  ;;  %s3143_s16 = sshll.u32 %s4436_s13, 4  ;;  %s5483_s16 = int_to_ptr.vmem [resolvable:$true] %s3143_s16 }
 0x15c   : > { %v4104_v24 = vld [vmem:[%s5542_s3 + $0xb8] sm:$0xff]   ;;  %3619 = vmatprep.subr.bf16.mxu1 %v4103_v49  ;;  %3557 = vmatprep.subr.bf16.mxu0 %v4105_v45  ;;  %v4108_v47 = vld [vmem:[%s5542_s3 + $0xb0] sm:$0xff]   ;;  %v4112_v52 = vld [vmem:[%s5542_s3 + $0xa8] sm:$0xff]   ;;  %s5622_s22 = sand.u32 1, %s4285_s25  }
 0x15d   : > { %3620 = vmatpush3.bf16.msra.mxu1 %v4104_v24  ;;  %v4113_v53 = vld [vmem:[%s5542_s3 + $0x60] sm:$0xff]   ;;  %v4117_v56 = vld [vmem:[%s5542_s3 + $0x58] sm:$0xff]   ;;  %v4121_v60 = vld [vmem:[%s5542_s3 + $0x50] sm:$0xff]   ;;  %s5488_s1 = scalar_lea.sflag [#allocation4], %s5622_s22 }
 0x15e   : > { %3621 = vmatprep.subr.bf16.mxu1 %v4107_v30  ;;  %v4114_v54 = vld [vmem:[%s5542_s3 + $0x20] sm:$0xff]   ;;  %v4118_v57 = vld [vmem:[%s5542_s3 + $0x18] sm:$0xff]   ;;  %v4122_v61 = vld [vmem:[%s5542_s3 + $0x10] sm:$0xff]  }
 0x15f   : > { %3558 = vmatpush3.bf16.msra.mxu0 %v4106_v46  ;;  %v4115_v55 = vld [vmem:[%s5542_s3 + $0xe0] sm:$0xff]   ;;  %v4119_v58 = vld [vmem:[%s5542_s3 + $0xd8] sm:$0xff]   ;;  %v4123_v62 = vld [vmem:[%s5542_s3 + $0xd0] sm:$0xff]  }
 0x160   : > { %3559 = vmatprep.subr.bf16.mxu0 %v4109_v48  ;;  %v4116_v37 = vld [vmem:[%s5542_s3 + $0xa0] sm:$0xff]   ;;  %v4120_v59 = vld [vmem:[%s5542_s3 + $0x98] sm:$0xff]   ;;  %v4124_v63 = vld [vmem:[%s5542_s3 + $0x90] sm:$0xff]  }
 0x161   : > { %3622 = vmatpush3.bf16.msra.mxu1 %v4108_v47  ;;  %v4125_v0 = vld [vmem:[%s5542_s3 + $0x48] sm:$0xff]   ;;  %v4129_v4 = vld [vmem:[%s5542_s3 + $0x40] sm:$0xff]   ;;  %v4135_v14 = vld [vmem:[%s5542_s3 + $0x178] sm:$0xff]  }
 0x162   : > { %3623 = vmatprep.subr.bf16.mxu1 %v4111_v51  ;;  %v4126_v1 = vld [vmem:[%s5542_s3 + $0x8] sm:$0xff]   ;;  %v4130_v5 = vld [vmem:[%s5542_s3] sm:$0xff]   ;;  %v4137_v21 = vld [vmem:[%s5542_s3 + $0x138] sm:$0xff]  }
 0x163   : > { %3560 = vmatpush3.bf16.msra.mxu0 %v4110_v50  ;;  %v4127_v2 = vld [vmem:[%s5542_s3 + $0xc8] sm:$0xff]   ;;  %v4131_v7 = vld [vmem:[%s5542_s3 + $0xc0] sm:$0xff]   ;;  %v4138_v22 = vld [vmem:[%s4848_s18 + $0x14] ss:$0 sps:$4 sm:$0x11]  }
 0x164   : > { %3561 = vmatprep.subr.bf16.mxu0 %v4113_v53  ;;  %v4128_v3 = vld [vmem:[%s5542_s3 + $0x88] sm:$0xff]   ;;  %v4132_v8 = vld [vmem:[%s4848_s18] sm:$0xff]   ;;  %v1469_v28 = vshll.u32 %v4138_v22, 16  ;;  %v4139_v29 = vld [vmem:[%s5542_s3 + $0x170] sm:$0xff]   ;;  %v1558_v34 = vrot.slane %v4138_v22, 1 }
 0x165   : > { %3624 = vmatpush3.bf16.msra.mxu1 %v4112_v52  ;;  %v4133_v9 = vld [vmem:[%s4848_s18 + $0x8] ss:$0 sps:$4 sm:$0x11]   ;;  %v4134_v10 = vld [vmem:[%s5542_s3 + $0x80] sm:$0xff]   ;;  %v1450_v11 = vshrl.u32 %v4132_v8, 16  ;;  %v1452_v12 = vshll.u32 %v4132_v8, 16 }
 0x166   : > { %3625 = vmatprep.subr.bf16.mxu1 %v4115_v55  ;;  %v1457_v13 = vshll.u32 %v4133_v9, 16  ;;  %v4136_v17 = vld [vmem:[%s4848_s18 + $0xc] sm:$0xff]   ;;  %v1554_v18 = vrot.slane %v4132_v8, 1  ;;  %v1555_v20 = vrot.slane %v4133_v9, 1  ;;  %v4869_v31 = vld [vmem:[%s4848_s18 + $0x18] sm:$0xff]   ;;  %v1471_v36 = vrot.slane %v1469_v28, 1 }
 0x167   : > { %3562 = vmatpush3.bf16.msra.mxu0 %v4114_v54  ;;  %v1454_v16 = vrot.slane %v1452_v12, 1  ;;  %2350 = vmatprep.mubr.bf16.mxu1 %v4136_v17  ;;  %v1462_v6 = vshrl.u32 %v4136_v17, 16  ;;  %v1464_v23 = vshll.u32 %v4136_v17, 16  ;;  %v4141_v32 = vld [vmem:[%s5542_s3 + $0x130] sm:$0xff]   ;;  %v1557_v33 = vrot.slane %v4136_v17, 1  ;;  %v4143_v43 = vld [vmem:[%s5542_s3 + $0x168] sm:$0xff]  }
 0x168   : > { %3563 = vmatprep.subr.bf16.mxu0 %v4117_v56  ;;  %v1459_v15 = vrot.slane %v1457_v13, 1  ;;  %v1556_v25 = vsel %vm1553_vm10, %v1554_v18, %v1555_v20  ;;  %v4142_v38 = vld [vmem:[%s4848_s18 + $0x20] ss:$0 sps:$4 sm:$0x11]   ;;  %v1474_v39 = vshrl.u32 %v4869_v31, 16  ;;  %v1476_v40 = vshll.u32 %v4869_v31, 16 }
 0x169   : > { %3626 = vmatpush3.bf16.msra.mxu1 %v4116_v37  ;;  %v1455_v19 = vor.u32 %v1454_v16, %v1450_v11  ;;  %v1466_v27 = vrot.slane %v1464_v23, 1  ;;  %v1481_v42 = vshll.u32 %v4142_v38, 16  ;;  %v4886_v44 = vsel %vm1553_vm10, %v1557_v33, %v1558_v34  ;;  %v4889_v24 = vld [vmem:[%s4848_s18 + $0x24] sm:$0xff]   ;;  %v4146_v48 = vld [vmem:[%s4848_s18 + $0x2c] ss:$0 sps:$4 sm:$0x11]  }
 0x16a   : > { %3627 = vmatprep.subr.bf16.mxu1 %v4119_v58  ;;  %v1478_v49 = vrot.slane %v1476_v40, 1  ;;  %v4145_v46 = vld [vmem:[%s5542_s3 + $0x128] sm:$0xff]   ;;  %v1560_v30 = vrot.slane %v4869_v31, 1  ;;  %v1486_v50 = vshrl.u32 %v4889_v24, 16  ;;  %v1488_v51 = vshll.u32 %v4889_v24, 16  ;;  %v4147_v52 = vld [vmem:[%s5542_s3 + $0x160] sm:$0xff]  }
 0x16b   : > { %3564 = vmatpush3.bf16.msra.mxu0 %v4118_v57  ;;  %v1460_v26 = vsel %vm1448_vm9, %v1455_v19, %v1459_v15  ;;  %v1467_v35 = vor.u32 %v1466_v27, %v1462_v6  ;;  %v1483_v45 = vrot.slane %v1481_v42, 1  ;;  %v1561_v54 = vrot.slane %v4142_v38, 1  ;;  %v4907_v56 = vld [vmem:[%s4848_s18 + $0x30] sm:$0xff]   ;;  %v4149_v57 = vld [vmem:[%s5542_s3 + $0x120] sm:$0xff]   ;;  %v4163_v28 = vld [vmem:[%s5542_s3 + $0x1a8] sm:$0xff]  }
 0x16c   : > { %3565 = vmatprep.subr.bf16.mxu0 %v4121_v60  ;;  %2253 = vmatprep.mubr.bf16.mxu0 %v1460_v26  ;;  %v1479_v47 = vor.u32 %v1478_v49, %v1474_v39  ;;  %v1490_v55 = vrot.slane %v1488_v51, 1  ;;  %v1493_v37 = vshll.u32 %v4146_v48, 16  ;;  %v4150_v58 = vld [vmem:[%s4848_s18 + $0x38] ss:$0 sps:$4 sm:$0x11]   ;;  %v1564_v9 = vrot.slane %v4146_v48, 1 }
 0x16d   : > { %3628 = vmatpush3.bf16.msra.mxu1 %v4120_v59  ;;  %v4879_v41 = vsel %vm1448_vm9, %v1467_v35, %v1471_v36  ;;  %v4156_v11 = vld [vmem:[%s5542_s3 + $0x1f0] sm:$0xff]   ;;  %v4946_v12 = vld [vmem:[%s4848_s18 + $0x44] ss:$0 sps:$4 sm:$0x11]   ;;  %v1566_v18 = vrot.slane %v4907_v56, 1  ;;  %v4162_v26 = vld [vmem:[%s5542_s3 + $0x1e8] sm:$0xff]  }
 0x16e   : > { %3629 = vmatprep.subr.bf16.mxu1 %v4123_v62  ;;  %v4903_v53 = vsel %vm1448_vm9, %v1479_v47, %v1483_v45  ;;  %v1491_v59 = vor.u32 %v1490_v55, %v1486_v50  ;;  %v1495_v60 = vrot.slane %v1493_v37, 1  ;;  %v4916_v62 = vsel %vm1553_vm10, %v1560_v30, %v1561_v54  ;;  %v4158_v15 = vld [vmem:[%s5542_s3 + $0x1b0] sm:$0xff]   ;;  %v4166_v36 = vld [vmem:[%s5542_s3 + $0x1a0] sm:$0xff]   ;;  %v4167_v40 = vld [vmem:[%s5542_s3 + $0x148] sm:$0xff]  }
 0x16f   : > { %3566 = vmatpush3.bf16.msra.mxu0 %v4122_v61  ;;  %v1500_v61 = vshll.u32 %v4907_v56, 16  ;;  %v4159_v20 = vld [vmem:[%s5542_s3 + $0x150] sm:$0xff]   ;;  %v1567_v27 = vrot.slane %v4150_v58, 1  ;;  %v4169_v45 = vld [vmem:[%s5542_s3 + $0x108] sm:$0xff]   ;;  %v4170_v47 = vld [vmem:[%s5542_s3 + $0x1d8] sm:$0xff]   ;;  %v1570_v48 = vrot.slane %v4946_v12, 1 }
 0x170   : > { %3567 = vmatprep.subr.bf16.mxu0 %v4125_v0  ;;  %v1563_v0 = vrot.slane %v4889_v24, 1  ;;  %v4161_v6 = vld [vmem:[%s5542_s3 + $0x110] sm:$0xff]   ;;  %v4171_v50 = vld [vmem:[%s5542_s3 + $0x198] sm:$0xff]  }
 0x171   : > { %3630 = vmatpush3.bf16.msra.mxu1 %v4124_v63  ;;  %v4151_v63 = vld [vmem:[%s5542_s3 + $0x158] sm:$0xff]   ;;  %v4989_v38 = vsel %vm1553_vm10, %v1566_v18, %v1567_v27  ;;  %v4172_v51 = vld [vmem:[%s5542_s3 + $0x1d0] sm:$0xff]  }
 0x172   : > { %3631 = vmatprep.subr.bf16.mxu1 %v4127_v2  ;;  %v1505_v2 = vshll.u32 %v4150_v58, 16 }
 0x173   : > { %3568 = vmatpush3.bf16.msra.mxu0 %v4126_v1  ;;  %v1498_v1 = vshrl.u32 %v4907_v56, 16 }
 0x174   : > { %3569 = vmatprep.subr.bf16.mxu0 %v4129_v4  ;;  %v4153_v4 = vld [vmem:[%s5542_s3 + $0x118] sm:$0xff]   ;;  %v1507_v16 = vrot.slane %v1505_v2, 1 }
 0x175   : > { %3632 = vmatpush3.bf16.msra.mxu1 %v4128_v3  ;;  %v4924_v3 = vld [vmem:[%s4848_s18 + $0x3c] sm:$0xff]  }
 0x176   : > { %3633 = vmatprep.subr.bf16.mxu1 %v4131_v7  ;;  %v1502_v7 = vrot.slane %v1500_v61, 1  ;;  %v1512_v13 = vshll.u32 %v4924_v3, 16  ;;  %v1510_v19 = vshrl.u32 %v4924_v3, 16  ;;  %v1569_v39 = vrot.slane %v4924_v3, 1 }
 0x177   : > { %3570 = vmatpush3.bf16.msra.mxu0 %v4130_v5  ;;  %v4931_v5 = vsel %vm1448_vm9, %v1491_v59, %v1495_v60  ;;  %v4175_v59 = vld [vmem:[%s5542_s3 + $0x140] sm:$0xff]  }
 0x178   : > { %3683 = vmatprep.subr.bf16.mxu0 %v4135_v14  ;;  %v1503_v14 = vor.u32 %v1502_v7, %v1498_v1  ;;  %v1514_v22 = vrot.slane %v1512_v13, 1  ;;  %v5025_v58 = vsel %vm1553_vm10, %v1569_v39, %v1570_v48  ;;  %v4182_v13 = vld [vmem:[%s5542_s3 + $0x238] sm:$0xff]  }
 0x179   : > { %3634 = vmatpush3.bf16.msra.mxu1 %v4134_v10  ;;  %v4155_v10 = vld [vmem:[%s5542_s3 + $0x1b8] sm:$0xff]  }
 0x17a   : > { %2254 = vmatmul.mubr.bf16.vlgmr.msra.gmra.mxu0 %v4132_v8  ;;  %v4154_v8 = vld [vmem:[%s5542_s3 + $0x1f8] sm:$0xff]   ;;  %v4968_v23 = vsel %vm1448_vm9, %v1503_v14, %v1507_v16  ;;  %v1515_v34 = vor.u32 %v1514_v22, %v1510_v19  ;;  %v4181_v16 = vld [vmem:[%s5542_s3 + $0x180] sm:$0xff]  }
 0x17b   : > { %3684 = vmatpush3.bf16.msra.mxu0 %v4137_v21  ;;  %2261 = vmatprep.mubr.bf16.mxu0 %v4879_v41  ;;  %v4961_v21 = vld [vmem:[%s4848_s18 + $0x48] sm:$0xff]  }
 0x17c   : > { %2351 = vmatmul.mubr.bf16.vlgmr.msra.gmra.mxu1 %v1556_v25  ;;  %3685 = vmatprep.subr.bf16.mxu0 %v4139_v29  ;;  %v1517_v25 = vshll.u32 %v4946_v12, 16  ;;  %v4164_v29 = vld [vmem:[%s5542_s3 + $0x1e0] sm:$0xff]   ;;  %v1524_v33 = vshll.u32 %v4961_v21, 16  ;;  %v1522_v42 = vshrl.u32 %v4961_v21, 16  ;;  %v1572_v60 = vrot.slane %v4961_v21, 1 }
 0x17d   : > { %2358 = vmatprep.mubr.bf16.mxu1 %v4869_v31  ;;  %3747 = vmatprep.subr.bf16.mxu1 %v4154_v8  ;;  %v4179_v8 = vld [vmem:[%s5542_s3 + $0x188] sm:$0xff]  }
 0x17e   : > { %3748 = vmatpush3.bf16.msra.mxu1 %v4155_v10  ;;  %v1519_v35 = vrot.slane %v1517_v25, 1  ;;  %v1526_v49 = vrot.slane %v1524_v33, 1  ;;  %v5052_v10 = vld [vmem:[%s4848_s18 + $0x60] sm:$0xff]   ;;  %v4189_v25 = vld [vmem:[%s4848_s18 + $0x68] ss:$0 sps:$4 sm:$0x11]  }
 0x17f   : > { %3686 = vmatpush3.bf16.msra.mxu0 %v4141_v32  ;;  %3749 = vmatprep.subr.bf16.mxu1 %v4156_v11  ;;  %v4165_v32 = vld [vmem:[%s4848_s18 + $0x50] ss:$0 sps:$4 sm:$0x11]   ;;  %v1596_v22 = vshrl.u32 %v5052_v10, 16 }
 0x180   : > { %3687 = vmatprep.subr.bf16.mxu0 %v4143_v43  ;;  %v4997_v43 = vld [vmem:[%s4848_s18 + $0x54] sm:$0xff]   ;;  %v1529_v30 = vshll.u32 %v4165_v32, 16  ;;  %v1527_v55 = vor.u32 %v1526_v49, %v1522_v42  ;;  %v1573_v7 = vrot.slane %v4165_v32, 1  ;;  %v1609_v32 = vrot.slane %v4189_v25, 1  ;;  %v5079_v33 = vld [vmem:[%s4848_s18 + $0x6c] sm:$0xff]  }
 0x181   : > { %v1536_v54 = vshll.u32 %v4997_v43, 16  ;;  %v1534_v61 = vshrl.u32 %v4997_v43, 16  ;;  %v1622_v39 = vshrl.u32 %v5079_v33, 16  ;;  %v1634_v49 = vrot.slane %v5079_v33, 1 }
 0x182   : > { %2262 = vmatmul.mubr.bf16.gmra.mxu0 %v4136_v17  ;;  %v4953_v17 = vsel %vm1553_vm10, %v1563_v0, %v1564_v9  ;;  %3750 = vmatpush3.bf16.msra.mxu1 %v4158_v15  ;;  %v1531_v37 = vrot.slane %v1529_v30, 1  ;;  %v4177_v0 = vld [vmem:[%s5542_s3 + $0x100] sm:$0xff]   ;;  %v5058_v14 = vsel %vm1553_vm10, %v1572_v60, %v1573_v7  ;;  %v1598_v15 = vshll.u32 %v5052_v10, 16  ;;  %v4204_v60 = vld [vmem:[%s5544_s5 + $0x10] sm:$0xff]  }
 0x183   : > { %2269 = vmatprep.mubr.bf16.mxu0 %v4903_v53  ;;  %3688 = vmatpush3.bf16.msra.mxu0 %v4145_v46  ;;  %v5004_v46 = vsel %vm1448_vm9, %v1515_v34, %v1519_v35  ;;  %v4180_v9 = vld [vmem:[%s5542_s3 + $0x1c0] sm:$0xff]   ;;  %v4192_v34 = vld [vmem:[%s4848_s18 + $0x74] ss:$0 sps:$4 sm:$0x11]  }
 0x184   : > { %2359 = vmatmul.mubr.bf16.gmra.mxu1 %v4886_v44  ;;  %3689 = vmatprep.subr.bf16.mxu0 %v4147_v52  ;;  %v4173_v52 = vld [vmem:[%s4848_s18 + $0x5c] ss:$0 sps:$4 sm:$0x11]   ;;  %v5037_v1 = vsel %vm1448_vm9, %v1527_v55, %v1531_v37  ;;  %v1629_v42 = vshll.u32 %v4192_v34, 16  ;;  %v4203_v37 = vld [vmem:[%s5544_s5 + $0x50] sm:$0xff]   ;;  %s3385_s18 = sshll.u32 %s4293_s27, 7 }
 0x185   : > { %2366 = vmatprep.mubr.bf16.mxu1 %v4889_v24  ;;  %3751 = vmatprep.subr.bf16.mxu1 %v4162_v26  ;;  %v1541_v2 = vshll.u32 %v4173_v52, 16  ;;  %v1576_v19 = vrot.slane %v4173_v52, 1  ;;  %v1608_v26 = vrot.slane %v5052_v10, 1  ;;  %v4202_v55 = vld [vmem:[%s5544_s5 + $0x18] sm:$0xff]   ;;  %s2731_s21 = sshra.s32 %s3385_s18, 3  ;;  %s3140_s18 = sadd.s32 %s3430_s20, %s3429_s0 }
 0x186   : > { %3752 = vmatpush3.bf16.msra.mxu1 %v4163_v28  ;;  %v1631_v48 = vrot.slane %v1629_v42, 1  ;;  %s3386_s23 = sshll.u32 %s2731_s21, 2  ;;  %s3431_s10 = sshll.u32 %s3140_s18, 6 }
 0x187   : > { %3690 = vmatpush3.bf16.msra.mxu0 %v4149_v57  ;;  %3753 = vmatprep.subr.bf16.mxu1 %v4164_v29  ;;  %v4174_v57 = vld [vmem:[%s5542_s3 + $0x190] sm:$0xff]   ;;  %v1543_v12 = vrot.slane %v1541_v2, 1  ;;  %v1603_v29 = vshll.u32 %v4189_v25, 16  ;;  %s5212_s17 = scalar_lea.vmem %s4434_s12, %s3386_s23  ;;  %s5481_s28 = scalar_lea.hbm %s5546_s7, %s3431_s10 }
 0x188   : > { %3691 = vmatprep.subr.bf16.mxu0 %v4151_v63  ;;  %v1538_v63 = vrot.slane %v1536_v54, 1  ;;  %v4183_v54 = vld [vmem:[%s5542_s3 + $0x230] sm:$0xff]   ;;  %s4217_s23 = scalar_lea.vmem %s5483_s16, 1024 }
 0x189   : > { %v1605_v35 = vrot.slane %v1603_v29, 1  ;;  %p4218_p0 = scmp.ne.s32.totalorder %s5483_s16, %s4217_s23 }
 0x18a   : > { %2270 = vmatmul.mubr.bf16.gmra.mxu0 %v4869_v31  ;;  %3754 = vmatpush3.bf16.msra.mxu1 %v4166_v36  ;;  %v1539_v11 = vor.u32 %v1538_v63, %v1534_v61  ;;  %v5083_v36 = vsel %vm1553_vm10, %v1608_v26, %v1609_v32  ;;  %v5192_v63 = vld [vmem:[%s5543_s4] ss:$0 sm:$0xff] }
 0x18b   : > { %2277 = vmatprep.mubr.bf16.mxu0 %v4931_v5  ;;  %3692 = vmatpush3.bf16.msra.mxu0 %v4153_v4  ;;  %v4178_v4 = vld [vmem:[%s5542_s3 + $0x1c8] sm:$0xff]   ;;  %p4219_p1 = pnand %p4218_p0, %p4406_p3 }
 0x18c   : > { %2367 = vmatmul.mubr.bf16.gmra.mxu1 %v4916_v62  ;;  %3693 = vmatprep.subr.bf16.mxu0 %v4159_v20  ;;  %v5066_v18 = vsel %vm1448_vm9, %v1539_v11, %v1543_v12  ;;  %v1575_v20 = vrot.slane %v4997_v43, 1 }
 0x18d   : > { %2374 = vmatprep.mubr.bf16.mxu1 %v4907_v56  ;;  %3755 = vmatprep.subr.bf16.mxu1 %v4170_v47  ;;  %p4220_p2 = pneg %p4219_p1 }
 0x18e   : > { %3756 = vmatpush3.bf16.msra.mxu1 %v4171_v50  ;;  %v5076_v27 = vsel %vm1553_vm10, %v1575_v20, %v1576_v19  ;;  %v4208_v19 = vld [vmem:[%s5544_s5] sm:$0xff]  }
 0x18f   : > { %3694 = vmatpush3.bf16.msra.mxu0 %v4161_v6  ;;  %3757 = vmatprep.subr.bf16.mxu1 %v4172_v51  ;;  %v1600_v6 = vrot.slane %v1598_v15, 1  ;;  %v4207_v15 = vld [vmem:[%s5544_s5 + $0x40] sm:$0xff]  }
 0x190   : > { %3695 = vmatprep.subr.bf16.mxu0 %v4167_v40  ;;  %v1624_v40 = vshll.u32 %v5079_v33, 16 }
 0x191   : > { %v1601_v28 = vor.u32 %v1600_v6, %v1596_v22 }
 0x192   : > { %2278 = vmatmul.mubr.bf16.gmra.mxu0 %v4889_v24  ;;  %3758 = vmatpush3.bf16.msra.mxu1 %v4174_v57  ;;  %v1626_v47 = vrot.slane %v1624_v40, 1 }
 0x193   : > { %2285 = vmatprep.mubr.bf16.mxu0 %v4968_v23  ;;  %3696 = vmatpush3.bf16.msra.mxu0 %v4169_v45  ;;  %v1635_v45 = vrot.slane %v4192_v34, 1  ;;  %v1606_v30 = vsel %vm1448_vm9, %v1601_v28, %v1605_v35 }
 0x194   : > { %2375 = vmatmul.mubr.bf16.gmra.mxu1 %v4953_v17  ;;  %3697 = vmatprep.subr.bf16.mxu0 %v4175_v59  ;;  %v1627_v51 = vor.u32 %v1626_v47, %v1622_v39 }
 0x195   : > { %2382 = vmatprep.mubr.bf16.mxu1 %v4924_v3  ;;  %3759 = vmatprep.subr.bf16.mxu1 %v4178_v4  ;;  %v5093_v50 = vsel %vm1553_vm10, %v1634_v49, %v1635_v45  ;;  %v4205_v4 = vld [vmem:[%s5544_s5 + $0x48] sm:$0xff]  }
 0x196   : > { %3760 = vmatpush3.bf16.msra.mxu1 %v4179_v8  ;;  %v1632_v52 = vsel %vm1448_vm9, %v1627_v51, %v1631_v48  ;;  %v4211_v51 = vld [vmem:[%s5212_s17 + $0x10] sm:$0xff]  }
 0x197   : > { %3698 = vmatpush3.bf16.msra.mxu0 %v4177_v0  ;;  %3761 = vmatprep.subr.bf16.mxu1 %v4180_v9  ;;  %v4206_v9 = vld [vmem:[%s5544_s5 + $0x8] sm:$0xff]  }
 0x198   : > { %3939 = vmatprep.subr.bf16.mxu0 %v4182_v13 }
 0x19a   : > { %2286 = vmatmul.mubr.bf16.gmra.mxu0 %v4907_v56  ;;  %3762 = vmatpush3.bf16.msra.mxu1 %v4181_v16 }
 0x19b   : > { %2293 = vmatprep.mubr.bf16.mxu0 %v5004_v46 }
 0x19c   : > { %2383 = vmatmul.mubr.bf16.gmra.mxu1 %v4989_v38 }
 0x19d   : > { %2390 = vmatprep.mubr.bf16.mxu1 %v4961_v21 }
 0x1a2   : > { %2294 = vmatmul.mubr.bf16.gmra.mxu0 %v4924_v3 }
 0x1a3   : > { %2301 = vmatprep.mubr.bf16.mxu0 %v5037_v1 }
 0x1a4   : > { %2391 = vmatmul.mubr.bf16.gmra.mxu1 %v5025_v58 }
 0x1a5   : > { %2398 = vmatprep.mubr.bf16.mxu1 %v4997_v43 }
 0x1aa   : > { %2302 = vmatmul.mubr.bf16.gmra.mxu0 %v4961_v21 }
 0x1ab   : > { %2309 = vmatprep.mubr.bf16.mxu0 %v5066_v18 }
 0x1ac   : > { %2399 = vmatmul.mubr.bf16.gmra.mxu1 %v5058_v14 }
 0x1ad   : > { %2406 = vmatprep.mubr.bf16.mxu1 %v5052_v10 }
 0x1b2   : > { %2310 = vmatmul.mubr.bf16.gmra.mxu0 %v4997_v43 }
 0x1b3   : > { %2447 = vmatprep.mubr.bf16.mxu0 %v4886_v44  ;;  %v4184_v44 = vld [vmem:[%s5542_s3 + $0x228] sm:$0xff]  }
 0x1b4   : > { %2407 = vmatmul.mubr.bf16.gmra.mxu1 %v5076_v27 }
 0x1b5   : > { %2544 = vmatprep.mubr.bf16.mxu1 %v4903_v53 }
 0x1ba   : > { %2448 = vmatmul.mubr.bf16.vlgmr.msra.gmra.mxu0 %v4879_v41  ;;  %v4186_v41 = vld [vmem:[%s5542_s3 + $0x218] sm:$0xff]  }
 0x1bb   : > { %3940 = vmatpush3.bf16.msra.mxu0 %v4182_v13  ;;  %2455 = vmatprep.mubr.bf16.mxu0 %v4916_v62 }
 0x1bc   : > { %2545 = vmatmul.mubr.bf16.vlgmr.msra.gmra.mxu1 %v4869_v31  ;;  %3941 = vmatprep.subr.bf16.mxu0 %v4183_v54  ;;  %v4185_v31 = vld [vmem:[%s5542_s3 + $0x220] sm:$0xff]  }
 0x1bd   : > { %2552 = vmatprep.mubr.bf16.mxu1 %v4931_v5 }
 0x1bf   : > { %3942 = vmatpush3.bf16.msra.mxu0 %v4183_v54 }
 0x1c0   : > { %3943 = vmatprep.subr.bf16.mxu0 %v4184_v44 }
 0x1c2   : > { %2456 = vmatmul.mubr.bf16.gmra.mxu0 %v4903_v53  ;;  %v4188_v53 = vld [vmem:[%s5542_s3 + $0x208] sm:$0xff]  }
 0x1c3   : > { %2463 = vmatprep.mubr.bf16.mxu0 %v4953_v17  ;;  %3944 = vmatpush3.bf16.msra.mxu0 %v4184_v44 }
 0x1c4   : > { %2553 = vmatmul.mubr.bf16.gmra.mxu1 %v4889_v24  ;;  %3945 = vmatprep.subr.bf16.mxu0 %v4185_v31  ;;  %v4187_v24 = vld [vmem:[%s5542_s3 + $0x210] sm:$0xff]  }
 0x1c5   : > { %2560 = vmatprep.mubr.bf16.mxu1 %v4968_v23 }
 0x1c7   : > { %3946 = vmatpush3.bf16.msra.mxu0 %v4185_v31 }
 0x1c8   : > { %3947 = vmatprep.subr.bf16.mxu0 %v4186_v41 }
 0x1ca   : > { %2464 = vmatmul.mubr.bf16.gmra.mxu0 %v4931_v5  ;;  %v4195_v5 = vld [vmem:[%s5544_s5 + $0x70] sm:$0xff]  }
 0x1cb   : > { %2471 = vmatprep.mubr.bf16.mxu0 %v4989_v38  ;;  %3948 = vmatpush3.bf16.msra.mxu0 %v4186_v41 }
 0x1cc   : > { %2561 = vmatmul.mubr.bf16.gmra.mxu1 %v4907_v56  ;;  %3949 = vmatprep.subr.bf16.mxu0 %v4187_v24  ;;  %v4190_v56 = vld [vmem:[%s5542_s3 + $0x200] sm:$0xff]  }
 0x1cd   : > { %2568 = vmatprep.mubr.bf16.mxu1 %v5004_v46 }
 0x1cf   : > { %3950 = vmatpush3.bf16.msra.mxu0 %v4187_v24 }
 0x1d0   : > { %3951 = vmatprep.subr.bf16.mxu0 %v4188_v53 }
 0x1d2   : > { %2472 = vmatmul.mubr.bf16.gmra.mxu0 %v4968_v23  ;;  %v4198_v23 = vld [vmem:[%s5544_s5 + $0x28] sm:$0xff]  }
 0x1d3   : > { %2479 = vmatprep.mubr.bf16.mxu0 %v5025_v58  ;;  %3952 = vmatpush3.bf16.msra.mxu0 %v4188_v53 }
 0x1d4   : > { %2569 = vmatmul.mubr.bf16.gmra.mxu1 %v4924_v3  ;;  %3953 = vmatprep.subr.bf16.mxu0 %v4190_v56  ;;  %v4193_v3 = vld [vmem:[%s5544_s5 + $0x78] sm:$0xff]  }
 0x1d5   : > { %2576 = vmatprep.mubr.bf16.mxu1 %v5037_v1  ;;  %3987 = vmatprep.subr.bf16.mxu1 %v4193_v3 }
 0x1d7   : > { %3954 = vmatpush3.bf16.msra.mxu0 %v4190_v56 }
 0x1d8   : > { %3827 = vmatprep.subr.bf16.mxu0 %v4193_v3 }
 0x1da   : > { %2480 = vmatmul.mubr.bf16.gmra.mxu0 %v5004_v46  ;;  %v4201_v46 = vld [vmem:[%s5544_s5 + $0x58] sm:$0xff]  }
 0x1db   : > { %2487 = vmatprep.mubr.bf16.mxu0 %v5058_v14 }
 0x1dc   : > { %2577 = vmatmul.mubr.bf16.gmra.mxu1 %v4961_v21  ;;  %v4197_v21 = vld [vmem:[%s5544_s5 + $0x68] sm:$0xff]  }
 0x1dd   : > { %2584 = vmatprep.mubr.bf16.mxu1 %v5066_v18 }
 0x1e2   : > { %2488 = vmatmul.mubr.bf16.gmra.mxu0 %v5037_v1 }
 0x1e3   : > { %2495 = vmatprep.mubr.bf16.mxu0 %v5076_v27 }
 0x1e4   : > { %2585 = vmatmul.mubr.bf16.gmra.mxu1 %v4997_v43  ;;  %v4200_v43 = vld [vmem:[%s5544_s5 + $0x20] sm:$0xff]  }
 0x1e5   : > { %2592 = vmatprep.mubr.bf16.mxu1 %v1606_v30 }
 0x1ea   : > { %2496 = vmatmul.mubr.bf16.gmra.mxu0 %v5066_v18 }
 0x1eb   : > { %2503 = vmatprep.mubr.bf16.mxu0 %v5083_v36 }
 0x1ec   : > { %2593 = vmatmul.mubr.bf16.gmra.mxu1 %v5052_v10 }
 0x1ed   : > { %2600 = vmatprep.mubr.bf16.mxu1 %v1632_v52 }
 0x1f2   : > { %2504 = vmatmul.mubr.bf16.gmra.mxu0 %v1606_v30 }
 0x1f3   : > { %3955 = vmatprep.mubr.bf16.mxu0 %v4916_v62  ;;  %v4194_v62 = vld [vmem:[%s5544_s5 + $0x38] sm:$0xff]  }
 0x1f4   : > { %2601 = vmatmul.mubr.bf16.gmra.mxu1 %v5079_v33 }
 0x1f5   : > { %3995 = vmatpush3.bf16.msra.mxu1 %v4194_v62  ;;  %2982 = vmatprep.mubr.bf16.mxu1 %v4211_v51 }
 0x1f6   : > { %3988 = vmatprep.subr.bf16.mxu1 %v4195_v5 }
 0x1fa   : > { %3956 = vmatmul.mubr.bf16.vlgmr.msra.gmra.mxu0 %v4953_v17  ;;  %v4196_v17 = vld [vmem:[%s5544_s5 + $0x30] sm:$0xff]  }
 0x1fb   : > { %3959 = vmatprep.mubr.bf16.mxu0 %v4989_v38  ;;  %3828 = vmatpush3.bf16.msra.mxu0 %v4194_v62  ;;  %v4199_v38 = vld [vmem:[%s5544_s5 + $0x60] sm:$0xff]  }
 0x1fc   : > { %3829 = vmatprep.subr.bf16.mxu0 %v4195_v5  ;;  %3996 = vmatpush3.bf16.msra.mxu1 %v4196_v17 }
 0x1fd   : > { %3989 = vmatprep.subr.bf16.mxu1 %v4197_v21 }
 0x1ff   : > { %3830 = vmatpush3.bf16.msra.mxu0 %v4196_v17 }
 0x200   : > { %3831 = vmatprep.subr.bf16.mxu0 %v4197_v21  ;;  %3997 = vmatpush3.bf16.msra.mxu1 %v4198_v23 }
 0x201   : > { %3990 = vmatprep.subr.bf16.mxu1 %v4199_v38 }
 0x202   : > { %3960 = vmatmul.mubr.bf16.gmra.mxu0 %v5025_v58 }
 0x203   : > { %3963 = vmatprep.mubr.bf16.mxu0 %v5058_v14  ;;  %3832 = vmatpush3.bf16.msra.mxu0 %v4198_v23 }
 0x204   : > { %3833 = vmatprep.subr.bf16.mxu0 %v4199_v38  ;;  %3998 = vmatpush3.bf16.msra.mxu1 %v4200_v43 }
 0x205   : > { %3991 = vmatprep.subr.bf16.mxu1 %v4201_v46 }
 0x207   : > { %3834 = vmatpush3.bf16.msra.mxu0 %v4200_v43 }
 0x208   : > { %3835 = vmatprep.subr.bf16.mxu0 %v4201_v46  ;;  %3999 = vmatpush3.bf16.msra.mxu1 %v4202_v55 }
 0x209   : > { %3992 = vmatprep.subr.bf16.mxu1 %v4203_v37 }
 0x20a   : > { %3964 = vmatmul.mubr.bf16.gmra.mxu0 %v5076_v27  ;;  %v4209_v27 = vld [vmem:[%s5212_s17] sm:$0xff]  }
 0x20b   : > { %3967 = vmatprep.mubr.bf16.mxu0 %v5083_v36  ;;  %3836 = vmatpush3.bf16.msra.mxu0 %v4202_v55 }
 0x20c   : > { %3837 = vmatprep.subr.bf16.mxu0 %v4203_v37  ;;  %4000 = vmatpush3.bf16.msra.mxu1 %v4204_v60 }
 0x20d   : > { %3993 = vmatprep.subr.bf16.mxu1 %v4205_v4 }
 0x20f   : > { %3838 = vmatpush3.bf16.msra.mxu0 %v4204_v60 }
 0x210   : > { %3839 = vmatprep.subr.bf16.mxu0 %v4205_v4  ;;  %4001 = vmatpush3.bf16.msra.mxu1 %v4206_v9 }
 0x211   : > { %3994 = vmatprep.subr.bf16.mxu1 %v4207_v15 }
 0x212   : > { %3968 = vmatmul.mubr.bf16.gmra.mxu0 %v5093_v50 }
 0x213   : > { %3840 = vmatpush3.bf16.msra.mxu0 %v4206_v9  ;;  %2966 = vmatprep.mubr.bf16.mxu0 %v4209_v27 }
 0x214   : > { %3841 = vmatprep.subr.bf16.mxu0 %v4207_v15  ;;  %4002 = vmatpush3.bf16.msra.mxu1 %v4208_v19 }
 0x217   : > { %3842 = vmatpush3.bf16.msra.mxu0 %v4208_v19 }
 0x23a   : > { %v3571_v58 = vpop.f32.mrf.mxu0 }
 0x23c   : > { %v3635_v57 = vpop.f32.mrf.mxu1  ;;  %v3572_v0 = vpop.f32.mrf.mxu0 }
 0x23d   : > { %v3573_v2 = vadd.f32 %v3572_v0, %v3571_v58 }
 0x23e   : > { %v3636_v59 = vpop.f32.mrf.mxu1  ;;  %v3574_v7 = vpop.f32.mrf.mxu0 }
 0x23f   : > { %v3637_v61 = vadd.f32 %v3636_v59, %v3635_v57  ;;  %v2256_v10 = vadd.f32 %v3573_v2, %v5192_v63 }
 0x240   : > { %v3638_v1 = vpop.f32.mrf.mxu1  ;;  %v3575_v12 = vpop.f32.mrf.mxu0 }
 0x241   : > { %v5202_v14 = vadd.f32 %v3637_v61, %v2256_v10  ;;  %v3576_v16 = vadd.f32 %v3575_v12, %v3574_v7 }
 0x242   : > { %v3639_v8 = vpop.f32.mrf.mxu1  ;;  %v3577_v18 = vpop.f32.mrf.mxu0 }
 0x243   : > { %v3640_v11 = vadd.f32 %v3639_v8, %v3638_v1  ;;  %v2259_v22 = vadd.f32 %v3576_v16, %v5192_v63 }
 0x244   : > { %v3641_v13 = vpop.f32.mrf.mxu1  ;;  %v3578_v25 = vpop.f32.mrf.mxu0 }
 0x245   : > { %v5215_v28 = vadd.f32 %v3640_v11, %v2259_v22  ;;  %v3579_v29 = vadd.f32 %v3578_v25, %v3577_v18 }
 0x246   : > { %v3642_v20 = vpop.f32.mrf.mxu1  ;;  %v3580_v32 = vpop.f32.mrf.mxu0 }
 0x247   : > { %v3643_v6 = vadd.f32 %v3642_v20, %v3641_v13  ;;  %v2264_v34 = vadd.f32 %v3579_v29, %v5192_v63 }
 0x248   : > { %v3644_v26 = vpop.f32.mrf.mxu1  ;;  %v3581_v36 = vpop.f32.mrf.mxu0 }
 0x249   : > { %v5218_v40 = vadd.f32 %v3643_v6, %v2264_v34  ;;  %v3582_v42 = vadd.f32 %v3581_v36, %v3580_v32 }
 0x24a   : > { %v3645_v33 = vpop.f32.mrf.mxu1  ;;  %v3583_v49 = vpop.f32.mrf.mxu0 }
 0x24b   : > { %v3646_v35 = vadd.f32 %v3645_v33, %v3644_v26  ;;  %v2267_v30 = vadd.f32 %v3582_v42, %v5192_v63 }
 0x24c   : > { %v3647_v39 = vpop.f32.mrf.mxu1  ;;  %v3584_v48 = vpop.f32.mrf.mxu0 }
 0x24d   : > { %v5224_v52 = vadd.f32 %v3646_v35, %v2267_v30  ;;  %v3585_v54 = vadd.f32 %v3584_v48, %v3583_v49 }
 0x24e   : > { %v3648_v45 = vpop.f32.mrf.mxu1  ;;  %v3586_v44 = vpop.f32.mrf.mxu0 }
 0x24f   : > { %v3649_v47 = vadd.f32 %v3648_v45, %v3647_v39  ;;  %v2272_v41 = vadd.f32 %v3585_v54, %v5192_v63 }
 0x250   : > { %v5221_v50 = vpop.f32.mrf.mxu1  ;;  %v3587_v24 = vpop.f32.mrf.mxu0 }
 0x251   : > { %v5229_v56 = vadd.f32 %v3649_v47, %v2272_v41  ;;  %v5231_v3 = vadd.f32 %v3587_v24, %v3586_v44 }
 0x252   : > { %v5226_v31 = vpop.f32.mrf.mxu1  ;;  %v3589_v62 = vpop.f32.mrf.mxu0 }
 0x254   : > { %v3653_v53 = vpop.f32.mrf.mxu1  ;;  %v3590_v21 = vpop.f32.mrf.mxu0 }
 0x255   : > { %v3591_v38 = vadd.f32 %v3590_v21, %v3589_v62 }
 0x256   : > { %v3654_v5 = vpop.f32.mrf.mxu1  ;;  %v3592_v43 = vpop.f32.mrf.mxu0 }
 0x257   : > { %v3655_v17 = vadd.f32 %v3654_v5, %v3653_v53  ;;  %v2280_v55 = vadd.f32 %v3591_v38, %v5192_v63 }
 0x258   : > { %v5233_v23 = vpop.f32.mrf.mxu1  ;;  %v3593_v37 = vpop.f32.mrf.mxu0 }
 0x259   : > { %v5238_v58 = vadd.f32 %v3655_v17, %v2280_v55  ;;  %v5240_v59 = vadd.f32 %v3593_v37, %v3592_v43 }
 0x25a   : > { %v5235_v46 = vpop.f32.mrf.mxu1  ;;  %v3595_v60 = vpop.f32.mrf.mxu0 }
 0x25c   : > { %v3659_v57 = vpop.f32.mrf.mxu1  ;;  %v3596_v1 = vpop.f32.mrf.mxu0 }
 0x25d   : > { %v3597_v4 = vadd.f32 %v3596_v1, %v3595_v60 }
 0x25e   : > { %v3660_v61 = vpop.f32.mrf.mxu1  ;;  %v3598_v7 = vpop.f32.mrf.mxu0 }
 0x25f   : > { %v3661_v0 = vadd.f32 %v3660_v61, %v3659_v57  ;;  %v2288_v9 = vadd.f32 %v3597_v4, %v5192_v63 }
 0x260   : > { %v5242_v2 = vpop.f32.mrf.mxu1  ;;  %v3599_v10 = vpop.f32.mrf.mxu0 }
 0x261   : > { %v5247_v12 = vadd.f32 %v3661_v0, %v2288_v9  ;;  %v5249_v13 = vadd.f32 %v3599_v10, %v3598_v7 }
 0x262   : > { %v5244_v8 = vpop.f32.mrf.mxu1  ;;  %v3601_v16 = vpop.f32.mrf.mxu0 }
 0x263   : > { %5564 = vst [vmem:[#allocation7_spill] sm:$0xff] %v5247_v12 }
 0x264   : > { %v3665_v11 = vpop.f32.mrf.mxu1  ;;  %v3602_v20 = vpop.f32.mrf.mxu0 }
 0x265   : > { %v3603_v22 = vadd.f32 %v3602_v20, %v3601_v16 }
 0x266   : > { %v3666_v15 = vpop.f32.mrf.mxu1  ;;  %v3604_v6 = vpop.f32.mrf.mxu0 }
 0x267   : > { %v3667_v18 = vadd.f32 %v3666_v15, %v3665_v11  ;;  %v2296_v26 = vadd.f32 %v3603_v22, %v5192_v63 }
 0x268   : > { %v5251_v19 = vpop.f32.mrf.mxu1  ;;  %v3605_v27 = vpop.f32.mrf.mxu0 }
 0x269   : > { %v5256_v32 = vadd.f32 %v3667_v18, %v2296_v26  ;;  %v5258_v33 = vadd.f32 %v3605_v27, %v3604_v6 }
 0x26a   : > { %v5253_v25 = vpop.f32.mrf.mxu1  ;;  %v3607_v34 = vpop.f32.mrf.mxu0 }
 0x26b   : > { %5565 = vst [vmem:[#allocation8_spill] sm:$0xff] %v5256_v32 }
 0x26c   : > { %v3671_v29 = vpop.f32.mrf.mxu1  ;;  %v3608_v39 = vpop.f32.mrf.mxu0 }
 0x26d   : > { %v3609_v49 = vadd.f32 %v3608_v39, %v3607_v34 }
 0x26e   : > { %v3672_v35 = vpop.f32.mrf.mxu1  ;;  %v3610_v45 = vpop.f32.mrf.mxu0 }
 0x26f   : > { %v3673_v36 = vadd.f32 %v3672_v35, %v3671_v29  ;;  %v2304_v47 = vadd.f32 %v3609_v49, %v5192_v63 }
 0x270   : > { %v5260_v42 = vpop.f32.mrf.mxu1  ;;  %v3611_v48 = vpop.f32.mrf.mxu0 }
 0x271   : > { %5566 = vst [vmem:[#allocation9_spill] sm:$0xff] %v5260_v42  ;;  %v5265_v54 = vadd.f32 %v3673_v36, %v2304_v47  ;;  %v5267_v44 = vadd.f32 %v3611_v48, %v3610_v45 }
 0x272   : > { %v5262_v30 = vpop.f32.mrf.mxu1  ;;  %v3613_v41 = vpop.f32.mrf.mxu0 }
 0x273   : > { %5567 = vst [vmem:[#allocation10_spill] sm:$0xff] %v5262_v30  ;;  %5568 = vst [vmem:[#allocation11_spill] sm:$0xff] %v5265_v54 }
 0x274   : > { %v3677_v51 = vpop.f32.mrf.mxu1  ;;  %5569 = vst [vmem:[#allocation12_spill] sm:$0xff] %v5267_v44  ;;  %v3614_v62 = vpop.f32.mrf.mxu0 }
 0x275   : > { %v3615_v17 = vadd.f32 %v3614_v62, %v3613_v41 }
 0x276   : > { %v3678_v24 = vpop.f32.mrf.mxu1  ;;  %v3616_v21 = vpop.f32.mrf.mxu0 }
 0x277   : > { %v3679_v53 = vadd.f32 %v3678_v24, %v3677_v51  ;;  %v2312_v43 = vadd.f32 %v3615_v17, %v5192_v63 }
 0x278   : > { %v5269_v5 = vpop.f32.mrf.mxu1  ;;  %v3617_v55 = vpop.f32.mrf.mxu0 }
 0x279   : > { %5570 = vst [vmem:[#allocation13_spill] sm:$0xff] %v5269_v5  ;;  %v5276_v57 = vadd.f32 %v3679_v53, %v2312_v43  ;;  %v5278_v60 = vadd.f32 %v3617_v55, %v3616_v21 }
 0x27a   : > { %v5271_v38 = vpop.f32.mrf.mxu1  ;;  %v3699_v61 = vpop.f32.mrf.mxu0 }
 0x27b   : > { %5571 = vst [vmem:[#allocation14_spill] sm:$0xff] %v5271_v38  ;;  %5572 = vst [vmem:[#allocation15_spill] sm:$0xff] %v5276_v57 }
 0x27c   : > { %v5274_v37 = vpop.f32.mrf.mxu1  ;;  %5573 = vst [vmem:[#allocation16_spill] sm:$0xff] %v5278_v60  ;;  %v3700_v1 = vpop.f32.mrf.mxu0 }
 0x27d   : > { %v3701_v7 = vadd.f32 %v3700_v1, %v3699_v61 }
 0x27e   : > { %v5280_v0 = vpop.f32.mrf.mxu1  ;;  %v3702_v9 = vpop.f32.mrf.mxu0 }
 0x27f   : > { %v5287_v11 = vadd.f32 %v3701_v7, %v5202_v14 }
 0x280   : > { %v5282_v4 = vpop.f32.mrf.mxu1  ;;  %v3703_v16 = vpop.f32.mrf.mxu0 }
 0x282   : > { %v5284_v10 = vpop.f32.mrf.mxu1  ;;  %v3705_v18 = vpop.f32.mrf.mxu0 }
 0x284   : > { %v3769_v15 = vpop.f32.mrf.mxu1  ;;  %v3706_v22 = vpop.f32.mrf.mxu0 }
 0x285   : > { %v3707_v26 = vadd.f32 %v3706_v22, %v3705_v18 }
 0x286   : > { %v3770_v20 = vpop.f32.mrf.mxu1  ;;  %v3708_v27 = vpop.f32.mrf.mxu0 }
 0x287   : > { %v2458_v34 = vadd.f32 %v3707_v26, %v5218_v40 }
 0x288   : > { %v3772_v6 = vpop.f32.mrf.mxu1  ;;  %v3709_v35 = vpop.f32.mrf.mxu0 }
 0x28a   : > { %v3773_v29 = vpop.f32.mrf.mxu1  ;;  %v3711_v39 = vpop.f32.mrf.mxu0 }
 0x28c   : > { %v5290_v36 = vpop.f32.mrf.mxu1  ;;  %v3712_v45 = vpop.f32.mrf.mxu0 }
 0x28e   : > { %v5292_v49 = vpop.f32.mrf.mxu1  ;;  %v5296_v47 = vpop.f32.mrf.mxu0 }
 0x290   : > { %v5294_v14 = vpop.f32.mrf.mxu1  ;;  %v3715_v51 = vpop.f32.mrf.mxu0 }
 0x292   : > { %v5298_v48 = vpop.f32.mrf.mxu1  ;;  %v3717_v24 = vpop.f32.mrf.mxu0 }
 0x294   : > { %v5300_v41 = vpop.f32.mrf.mxu1  ;;  %v3718_v40 = vpop.f32.mrf.mxu0 }
 0x296   : > { %v5302_v53 = vpop.f32.mrf.mxu1  ;;  %v3720_v17 = vpop.f32.mrf.mxu0 }
 0x298   : > { %v5304_v62 = vpop.f32.mrf.mxu1  ;;  %v3721_v43 = vpop.f32.mrf.mxu0 }
 0x29a   : > { %v5306_v21 = vpop.f32.mrf.mxu1  ;;  %v5310_v61 = vpop.f32.mrf.mxu0 }
 0x29c   : > { %v5308_v55 = vpop.f32.mrf.mxu1  ;;  %v5314_v7 = vpop.f32.mrf.mxu0 }
 0x29d   : > { %5574 = vst [vmem:[#allocation17_spill] sm:$0xff] %v5308_v55 }
 0x29e   : > { %v5312_v1 = vpop.f32.mrf.mxu1  ;;  %v5318_v22 = vpop.f32.mrf.mxu0 }
 0x29f   : > { %5575 = vst [vmem:[#allocation18_spill] sm:$0xff] %v5312_v1  ;;  %5577 = vst [vmem:[#allocation20_spill] sm:$0xff] %v5318_v22 }
 0x2a0   : > { %v5316_v18 = vpop.f32.mrf.mxu1  ;;  %v5322_v54 = vpop.f32.mrf.mxu0 }
 0x2a1   : > { %5576 = vst [vmem:[#allocation19_spill] sm:$0xff] %v5316_v18  ;;  %5579 = vst [vmem:[#allocation22_spill] sm:$0xff] %v5322_v54  ;;  %v3710_v54 = vadd.f32 %v3709_v35, %v3708_v27 }
 0x2a2   : > { %v5320_v26 = vpop.f32.mrf.mxu1  ;;  %v5326_v30 = vpop.f32.mrf.mxu0 }
 0x2a3   : > { %5578 = vst [vmem:[#allocation21_spill] sm:$0xff] %v5320_v26 }
 0x2a4   : > { %v5324_v57 = vpop.f32.mrf.mxu1  ;;  %v5328_v42 = vpop.f32.mrf.mxu0 }
 0x2a5   : > { %5580 = vst [vmem:[#allocation23_spill] sm:$0xff] %v5324_v57 }
 0x2a6   : > { %v5330_v44 = vpop.f32.mrf.mxu1  ;;  %v5332_v60 = vpop.f32.mrf.mxu0 }
 0x2a7   : > { %5581 = vst [vmem:[#allocation24_spill] sm:$0xff] %v5330_v44 }
 0x2a8   : > { %v5334_v1 = vpop.f32.mrf.mxu0  ;;  %v5336_v55 = vpop.f32.mrf.mxu1 }
 0x2a9   : > { %5582 = vst [vmem:[#allocation25_spill] sm:$0xff] %v5334_v1  ;;  %5583 = vst [vmem:[#allocation26_spill] sm:$0xff] %v5336_v55  ;;  %v3704_v55 = vadd.f32 %v3703_v16, %v3702_v9  ;;  %v3765_v9 = vadd.f32 %v5280_v0, %v5274_v37  ;;  %v2461_v16 = vadd.f32 %v3710_v54, %v5224_v52 }
 0x2aa   : > { %v5338_v18 = vpop.f32.mrf.mxu0  ;;  %v5342_v26 = vpop.f32.mrf.mxu1  ;;  %v3664_v0 = vadd.f32 %v5244_v8, %v5242_v2  ;;  %v3786_v2 = vadd.f32 %v5306_v21, %v5304_v62 }
 0x2ab   : > { %5584 = vst [vmem:[#allocation27_spill] sm:$0xff] %v5338_v18  ;;  %v3771_v18 = vadd.f32 %v3770_v20, %v3769_v15  ;;  %v3774_v15 = vadd.f32 %v3773_v29, %v3772_v6  ;;  %v2547_v52 = vadd.f32 %v3765_v9, %v5287_v11  ;;  %v3670_v11 = vadd.f32 %v5253_v25, %v5251_v19  ;;  %v5596_v9 = vld [vmem:[#allocation8_spill] sm:$0xff] }
 0x2ac   : > { %v5340_v12 = vpop.f32.mrf.mxu0  ;;  %v5348_v57 = vpop.f32.mrf.mxu1  ;;  %v3731_v25 = vadd.f32 %v5328_v42, %v5326_v30  ;;  %v5594_v42 = vld [vmem:[#allocation20_spill] sm:$0xff]  ;;  %v5595_v30 = vld [vmem:[#allocation22_spill] sm:$0xff] }
 0x2ad   : > { %5585 = vst [vmem:[#allocation28_spill] sm:$0xff] %v5340_v12  ;;  %5588 = vst [vmem:[#allocation31_spill] sm:$0xff] %v5348_v57  ;;  %v2275_v12 = vadd.f32 %v5231_v3, %v5192_v63  ;;  %v2283_v57 = vadd.f32 %v5240_v59, %v5192_v63  ;;  %v2453_v3 = vadd.f32 %v3704_v55, %v5215_v28 }
 0x2ae   : > { %v5344_v38 = vpop.f32.mrf.mxu0  ;;  %v5354_v22 = vpop.f32.mrf.mxu1  ;;  %v3719_v59 = vadd.f32 %v3718_v40, %v3717_v24  ;;  %v2555_v27 = vadd.f32 %v3771_v18, %v2458_v34  ;;  %v2558_v54 = vadd.f32 %v3774_v15, %v2461_v16  ;;  %v2291_v28 = vadd.f32 %v5249_v13, %v5192_v63  ;;  %v5597_v15 = vld [vmem:[#allocation23_spill] sm:$0xff] }
 0x2af   : > { %5586 = vst [vmem:[#allocation29_spill] sm:$0xff] %v5344_v38  ;;  %5590 = vst [vmem:[#allocation33_spill] sm:$0xff] %v5354_v22  ;;  %v3652_v38 = vadd.f32 %v5226_v31, %v5221_v50  ;;  %v3768_v50 = vadd.f32 %v5284_v10, %v5282_v4  ;;  %v3716_v4 = vadd.f32 %v3715_v51, %v5296_v47 }
 0x2b0   : > { %v5346_v5 = vpop.f32.mrf.mxu0  ;;  %v5371_v20 = vpop.f32.mrf.mxu1  ;;  %v3777_v13 = vadd.f32 %v5292_v49, %v5290_v36  ;;  %v2299_v51 = vadd.f32 %v5258_v33, %v5192_v63  ;;  %v5593_v33 = vld [vmem:[#allocation25_spill] sm:$0xff]  ;;  %v2388_v18 = vadd.f32 %v3664_v0, %v2291_v28  ;;  %v2490_v16 = vadd.f32 %v3731_v25, %v5596_v9  ;;  %v5604_v0 = vld [vmem:[#allocation26_spill] sm:$0xff]  ;;  %v5609_v25 = vld [vmem:[#allocation12_spill] sm:$0xff] }
 0x2b1   : > { %5587 = vst [vmem:[#allocation30_spill] sm:$0xff] %v5346_v5  ;;  %v3658_v5 = vadd.f32 %v5235_v46, %v5233_v23  ;;  %v2372_v35 = vadd.f32 %v3652_v38, %v2275_v12  ;;  %v3713_v46 = vadd.f32 %v3712_v45, %v3711_v39  ;;  %v2550_v12 = vadd.f32 %v3768_v50, %v2453_v3  ;;  %v5598_v3 = vld [vmem:[#allocation24_spill] sm:$0xff] }
 0x2b2   : > { %v5350_v32 = vpop.f32.mrf.mxu0  ;;  %v3783_v38 = vadd.f32 %v5302_v53, %v5300_v41  ;;  %v3725_v53 = vadd.f32 %v5314_v7, %v5310_v61  ;;  %v3734_v21 = vadd.f32 %v5593_v33, %v5332_v60  ;;  %v3795_v50 = vadd.f32 %v5598_v3, %v5597_v15  ;;  %v5599_v60 = vld [vmem:[#allocation13_spill] sm:$0xff] }
 0x2b3   : > { %v2380_v23 = vadd.f32 %v3658_v5, %v2283_v57  ;;  %v2474_v5 = vadd.f32 %v3719_v59, %v5238_v58  ;;  %v2466_v29 = vadd.f32 %v3713_v46, %v5229_v56  ;;  %v2469_v19 = vadd.f32 %v3716_v4, %v2372_v35  ;;  %v5600_v35 = vld [vmem:[#allocation14_spill] sm:$0xff]  ;;  %v5601_v46 = vld [vmem:[#allocation7_spill] sm:$0xff] }
 0x2b4   : > { %v5352_v44 = vpop.f32.mrf.mxu0  ;;  %v3780_v56 = vadd.f32 %v5298_v48, %v5294_v14  ;;  %v2396_v7 = vadd.f32 %v3670_v11, %v2299_v51  ;;  %v3798_v4 = vadd.f32 %v5342_v26, %v5604_v0  ;;  %v5605_v11 = vld [vmem:[#allocation16_spill] sm:$0xff] }
 0x2b5   : > { %5589 = vst [vmem:[#allocation32_spill] sm:$0xff] %v5352_v44  ;;  %v2571_v24 = vadd.f32 %v3783_v38, %v2474_v5  ;;  %v2563_v40 = vadd.f32 %v3777_v13, %v2466_v29  ;;  %v2315_v29 = vadd.f32 %v5605_v11, %v5192_v63 }
 0x2b6   : > { %v5356_v1 = vpop.f32.mrf.mxu0  ;;  %v5616_v9 = vld [vmem:[#allocation29_spill] sm:$0xff] }
 0x2b7   : > { %5591 = vst [vmem:[#allocation34_spill] sm:$0xff] %v5356_v1  ;;  %v5376_v1 = vpop.f32.mrf.mxu1 }
 0x2b8   : > { %v5366_v44 = vpop.f32.mrf.mxu0 }
 0x2b9   : > { %5592 = vst [vmem:[#allocation35_spill] sm:$0xff] %v5366_v44  ;;  %v3722_v44 = vadd.f32 %v3721_v43, %v3720_v17  ;;  %v5394_v39 = vpop.f32.mrf.mxu1  ;;  %v4210_v17 = vld [vmem:[%s5212_s17 + $0x8] sm:$0xff]  }
 0x2ba   : > { %v3957_v31 = vpop.f32.mrf.mxu0 }
 0x2bb   : > { %v2652_v37 = vadd.f32 %v3957_v31, %v2555_v27  ;;  %v2477_v34 = vadd.f32 %v3722_v44, %v2380_v23  ;;  %v3806_v43 = vpop.f32.mrf.mxu1  ;;  %v2566_v27 = vadd.f32 %v3780_v56, %v2469_v19  ;;  %v3682_v23 = vadd.f32 %v5600_v35, %v5599_v60  ;;  %v5619_v60 = vld [vmem:[#allocation11_spill] sm:$0xff] }
 0x2bc   : > { %v2643_v22 = vpop.f32.mrf.mxu0  ;;  %v3807_v15 = vadd.f32 %v3806_v43, %v5394_v39 }
 0x2bd   : > { %v2644_v57 = vadd.f32 %v2643_v22, %v2547_v52  ;;  %v2708_v58 = vmax.f32 %v2652_v37, 0.0  ;;  %v2574_v48 = vadd.f32 %v3786_v2, %v2477_v34  ;;  %v3728_v22 = vadd.f32 %v5595_v30, %v5594_v42  ;;  %v5602_v52 = vld [vmem:[#allocation17_spill] sm:$0xff]  ;;  %v3808_v5 = vpop.f32.mrf.mxu1  ;;  %v5606_v2 = vld [vmem:[#allocation19_spill] sm:$0xff] }
 0x2be   : > { %v3958_v10 = vpop.f32.mrf.mxu0  ;;  %v2482_v37 = vadd.f32 %v3725_v53, %v5601_v46  ;;  %v5612_v53 = vld [vmem:[#allocation27_spill] sm:$0xff] }
 0x2bf   : > { %v2655_v6 = vadd.f32 %v3958_v10, %v2558_v54  ;;  %v2706_v49 = vmax.f32 %v2644_v57, 0.0  ;;  %v5603_v54 = vld [vmem:[#allocation18_spill] sm:$0xff]  ;;  %v2485_v13 = vadd.f32 %v3728_v22, %v2388_v18  ;;  %v3809_v18 = vpop.f32.mrf.mxu1  ;;  %v2412_v22 = vadd.f32 %v3682_v23, %v2315_v29  ;;  %v5620_v46 = vld [vmem:[#allocation31_spill] sm:$0xff]  ;;  %v4213_v29 = vld [vmem:[%s5212_s17 + $0x20] sm:$0xff]  }
 0x2c0   : > { %v2646_v8 = vpop.f32.mrf.mxu0  ;;  %v3789_v28 = vadd.f32 %v5603_v54, %v5602_v52  ;;  %v3810_v23 = vadd.f32 %v3809_v18, %v3808_v5 }
 0x2c1   : > { %v2709_v45 = vmax.f32 %v2655_v6, 0.0  ;;  %v2647_v47 = vadd.f32 %v2646_v8, %v2550_v12  ;;  %v2493_v12 = vadd.f32 %v3734_v21, %v2396_v7  ;;  %v5607_v8 = vld [vmem:[#allocation21_spill] sm:$0xff]  ;;  %v4212_v21 = vld [vmem:[%s5212_s17 + $0x18] sm:$0xff]  }
 0x2c2   : > { %v3961_v36 = vpop.f32.mrf.mxu0  ;;  %v3792_v34 = vadd.f32 %v5607_v8, %v5606_v2 }
 0x2c3   : > { %v2723_v41 = vpack.c.bf16 %v2709_v45, %v2708_v58  ;;  %v2707_v44 = vmax.f32 %v2647_v47, 0.0  ;;  %v2668_v14 = vadd.f32 %v3961_v36, %v2571_v24  ;;  %v2587_v58 = vadd.f32 %v3795_v50, %v2490_v16  ;;  %v5608_v47 = vld [vmem:[#allocation32_spill] sm:$0xff]  ;;  %v5617_v16 = vld [vmem:[#allocation30_spill] sm:$0xff] }
 0x2c4   : > { %v2659_v62 = vpop.f32.mrf.mxu0  ;;  %v3743_v26 = vadd.f32 %v5608_v47, %v5350_v32  ;;  %v2307_v36 = vadd.f32 %v5609_v25, %v5192_v63  ;;  %v2590_v30 = vadd.f32 %v3798_v4, %v2493_v12  ;;  %v3740_v63 = vadd.f32 %v5617_v16, %v5616_v9 }
 0x2c5   : > { %v2722_v55 = vpack.c.bf16 %v2707_v44, %v2706_v49  ;;  %v2660_v31 = vadd.f32 %v2659_v62, %v2563_v40  ;;  %v2712_v38 = vmax.f32 %v2668_v14, 0.0  ;;  %v5610_v49 = vld [vmem:[#allocation9_spill] sm:$0xff]  ;;  %v5611_v44 = vld [vmem:[#allocation10_spill] sm:$0xff]  ;;  %v5613_v40 = vld [vmem:[#allocation28_spill] sm:$0xff]  ;;  %v2582_v50 = vadd.f32 %v3792_v34, %v2485_v13 }
 0x2c6   : > { %v3962_v61 = vpop.f32.mrf.mxu0  ;;  %v3676_v24 = vadd.f32 %v5611_v44, %v5610_v49  ;;  %v3737_v62 = vadd.f32 %v5613_v40, %v5612_v53  ;;  %v5615_v14 = vld [vmem:[#allocation35_spill] sm:$0xff]  ;;  %v4214_v49 = vld [vmem:[%s5212_s17 + $0x28] sm:$0xff]  }
 0x2c7   : > { %v2671_v59 = vadd.f32 %v3962_v61, %v2574_v48  ;;  %2967 = vmatmul.mubr.bf16.vlgmr.msra.gmra.mxu0 %v2722_v55  ;;  %v2710_v51 = vmax.f32 %v2660_v31, 0.0  ;;  %v5614_v55 = vld [vmem:[#allocation34_spill] sm:$0xff]  ;;  %v5618_v61 = vld [vmem:[#allocation15_spill] sm:$0xff] }
 0x2c8   : > { %v2662_v10 = vpop.f32.mrf.mxu0  ;;  %2974 = vmatprep.mubr.bf16.mxu0 %v4210_v17  ;;  %v2579_v17 = vadd.f32 %v3789_v28, %v2482_v37  ;;  %v3746_v48 = vadd.f32 %v5615_v14, %v5614_v55  ;;  %v2506_v7 = vadd.f32 %v3743_v26, %v5618_v61  ;;  %v2498_v35 = vadd.f32 %v3737_v62, %v5619_v60  ;;  %v5621_v37 = vld [vmem:[#allocation33_spill] sm:$0xff]  ;;  %v4216_v53 = vld [vmem:[%s5212_s17 + $0x38] sm:$0xff]  }
 0x2c9   : > { %v2713_v57 = vmax.f32 %v2671_v59, 0.0  ;;  %v2663_v6 = vadd.f32 %v2662_v10, %v2566_v27  ;;  %v2404_v27 = vadd.f32 %v3676_v24, %v2307_v36  ;;  %v3801_v52 = vadd.f32 %v5621_v37, %v5620_v46  ;;  %v4215_v24 = vld [vmem:[%s5212_s17 + $0x30] sm:$0xff]   ;;  %s4312_s17 = smov [#allocation3]  }
 0x2ca   : > { %v3965_v45 = vpop.f32.mrf.mxu0  ;;  %v2509_v28 = vadd.f32 %v3746_v48, %v2412_v22  ;;  %v3804_v10 = vadd.f32 %v5376_v1, %v5371_v20  ;;  %s4221_s12 = sshll.u32 %s4312_s17, 4  ;;  %s4222_s12 = int_to_ptr.vmem [resolvable:$false] %s4221_s12 }
 0x2cb   : > { %v2725_v19 = vpack.c.bf16 %v2713_v57, %v2712_v38  ;;  %v2711_v56 = vmax.f32 %v2663_v6, 0.0  ;;  %v2684_v42 = vadd.f32 %v3965_v45, %v2587_v58  ;;  %v2501_v4 = vadd.f32 %v3740_v63, %v2404_v27  ;;  %s4223_s9 = scalar_lea.vmem %s4222_s12, 2048  ;;  %p4224_p4 = scmp.lt.s32.totalorder %s5483_s16, %s4222_s12 }
 0x2cc   : > { %v2675_v33 = vpop.f32.mrf.mxu0  ;;  %v2603_v6 = vadd.f32 %v3807_v15, %v2506_v7  ;;  %v2595_v5 = vadd.f32 %v3801_v52, %v2498_v35  ;;  %v2606_v8 = vadd.f32 %v3810_v23, %v2509_v28  ;;  %p4225_p5 = scmp.lt.s32.totalorder %s4223_s9, %s4217_s23 }
 0x2cd   : > { %v2724_v32 = vpack.c.bf16 %v2711_v56, %v2710_v51  ;;  %v2676_v31 = vadd.f32 %v2675_v33, %v2579_v17  ;;  %v2716_v39 = vmax.f32 %v2684_v42, 0.0  ;;  %v2598_v47 = vadd.f32 %v3804_v10, %v2501_v4  ;;  %v5450_v17 = vld [vmem:[%s5545_s6] ss:$0 sm:$0xff] }
 0x2ce   : > { %v3966_v3 = vpop.f32.mrf.mxu0  ;;  %p4226_p6 = por %p4225_p5, %p4224_p4 }
 0x2cf   : > { %v2687_v59 = vadd.f32 %v3966_v3, %v2590_v30  ;;  %2975 = vmatmul.mubr.bf16.gmra.mxu0 %v2723_v41  ;;  %2983 = vmatmul.mubr.bf16.vlgmr.msra.gmra.mxu1 %v2724_v32  ;;  %v2714_v12 = vmax.f32 %v2676_v31, 0.0 }
 0x2d0   : > { %v2678_v54 = vpop.f32.mrf.mxu0  ;;  %2990 = vmatprep.mubr.bf16.mxu1 %v4212_v21  ;;  %p4227_p7 = pnand %p4226_p6, %p4220_p2 }
 0x2d1   : > { %v2717_v43 = vmax.f32 %v2687_v59, 0.0  ;;  %v2679_v0 = vadd.f32 %v2678_v54, %v2582_v50 }
 0x2d2   : > { %v3969_v41 = vpop.f32.mrf.mxu0 }
 0x2d3   : > { %v2727_v38 = vpack.c.bf16 %v2717_v43, %v2716_v39  ;;  %v2715_v57 = vmax.f32 %v2679_v0, 0.0  ;;  %v2700_v2 = vadd.f32 %v3969_v41, %v2603_v6 }
 0x2d4   : > { %v2691_v11 = vpop.f32.mrf.mxu0 }
 0x2d5   : > { %v2726_v13 = vpack.c.bf16 %v2715_v57, %v2714_v12  ;;  %v2692_v58 = vadd.f32 %v2691_v11, %v2595_v5  ;;  %v2720_v20 = vmax.f32 %v2700_v2, 0.0 }
 0x2d6   : > { %v3970_v34 = vpop.f32.mrf.mxu0 }
 0x2d7   : > { %v2703_v45 = vadd.f32 %v3970_v34, %v2606_v8  ;;  %2991 = vmatmul.mubr.bf16.gmra.mxu1 %v2725_v19  ;;  %v2718_v56 = vmax.f32 %v2692_v58, 0.0 }
 0x2d8   : > { %v2694_v1 = vpop.f32.mrf.mxu0  ;;  %2998 = vmatprep.mubr.bf16.mxu1 %v4213_v29 }
 0x2d9   : > { %v2721_v26 = vmax.f32 %v2703_v45, 0.0  ;;  %v2695_v51 = vadd.f32 %v2694_v1, %v2598_v47 }
 0x2db   : > { %v2729_v25 = vpack.c.bf16 %v2721_v26, %v2720_v20  ;;  %v2719_v36 = vmax.f32 %v2695_v51, 0.0 }
 0x2dd   : > { %v2728_v44 = vpack.c.bf16 %v2719_v36, %v2718_v56 }
 0x2df   : > { %2999 = vmatmul.mubr.bf16.gmra.mxu1 %v2726_v13 }
 0x2e0   : > { %3006 = vmatprep.mubr.bf16.mxu1 %v4214_v49 }
 0x2e7   : > { %3007 = vmatmul.mubr.bf16.gmra.mxu1 %v2727_v38 }
 0x2e8   : > { %3014 = vmatprep.mubr.bf16.mxu1 %v4215_v24 }
 0x2ef   : > { %3015 = vmatmul.mubr.bf16.gmra.mxu1 %v2728_v44 }
 0x2f0   : > { %3022 = vmatprep.mubr.bf16.mxu1 %v4216_v53 }
 0x2f7   : > { %3023 = vmatmul.mubr.bf16.gmra.mxu1 %v2729_v25 }
 0x387   : > { %v3843_v19 = vpop.f32.mrf.mxu0 }
 0x389   : > { %v3844_v40 = vpop.f32.mrf.mxu0 }
 0x38a   : > { %v3845_v62 = vadd.f32 %v3844_v40, %v3843_v19 }
 0x38b   : > { %v3846_v33 = vpop.f32.mrf.mxu0 }
 0x38c   : > { %v2969_v55 = vadd.f32 %v3845_v62, %v5450_v17 }
 0x38d   : > { %v3847_v21 = vpop.f32.mrf.mxu0 }
 0x38e   : > { %v3848_v14 = vadd.f32 %v3847_v21, %v3846_v33  ;;  %v3031_v22 = vmax.f32 %v2969_v55, 0.0 }
 0x38f   : > { %v3849_v48 = vpop.f32.mrf.mxu0  ;;  %v3855_v18 = vpop.f32.mrf.mxu1 }
 0x390   : > { %v2972_v32 = vadd.f32 %v3848_v14, %v5450_v17 }
 0x391   : > { %v3850_v42 = vpop.f32.mrf.mxu0  ;;  %v3856_v30 = vpop.f32.mrf.mxu1 }
 0x392   : > { %v3032_v9 = vmax.f32 %v2972_v32, 0.0  ;;  %v3851_v16 = vadd.f32 %v3850_v42, %v3849_v48  ;;  %v3857_v63 = vadd.f32 %v3856_v30, %v3855_v18 }
 0x393   : > { %v3852_v15 = vpop.f32.mrf.mxu0  ;;  %v3858_v3 = vpop.f32.mrf.mxu1 }
 0x394   : > { %v3487_v50 = vpack.c.bf16 %v3032_v9, %v3031_v22  ;;  %v2977_v61 = vadd.f32 %v3851_v16, %v5450_v17  ;;  %v2985_v59 = vadd.f32 %v3857_v63, %v5450_v17 }
 0x395   : > { %v3853_v7 = vpop.f32.mrf.mxu0  ;;  %v3859_v31 = vpop.f32.mrf.mxu1 }
 0x396   : > { %3488 = vst [vmem:[%s4436_s13] sm:$0xff] %v3487_v50   ;;  %v3854_v27 = vadd.f32 %v3853_v7, %v3852_v15  ;;  %v3860_v60 = vadd.f32 %v3859_v31, %v3858_v3  ;;  %v3033_v52 = vmax.f32 %v2977_v61, 0.0  ;;  %v3035_v54 = vmax.f32 %v2985_v59, 0.0 }
 0x397   : > { %v3861_v35 = vpop.f32.mrf.mxu1 }
 0x398   : > { %v2980_v46 = vadd.f32 %v3854_v27, %v5450_v17  ;;  %v2988_v37 = vadd.f32 %v3860_v60, %v5450_v17 }
 0x399   : > { %v3862_v23 = vpop.f32.mrf.mxu1 }
 0x39a   : > { %v3034_v28 = vmax.f32 %v2980_v46, 0.0  ;;  %v3036_v39 = vmax.f32 %v2988_v37, 0.0  ;;  %v3863_v43 = vadd.f32 %v3862_v23, %v3861_v35 }
 0x39b   : > { %v3864_v0 = vpop.f32.mrf.mxu1 }
 0x39c   : > { %v3492_v4 = vpack.c.bf16 %v3034_v28, %v3033_v52  ;;  %v3497_v10 = vpack.c.bf16 %v3036_v39, %v3035_v54  ;;  %v2993_v12 = vadd.f32 %v3863_v43, %v5450_v17 }
 0x39d   : > { %v3865_v41 = vpop.f32.mrf.mxu1 }
 0x39e   : > { %3524 = vst [vmem:[%s4436_s13 + $0x8] sm:$0xff] %v3492_v4   ;;  %3525 = vst [vmem:[%s4436_s13 + $0x10] sm:$0xff] %v3497_v10   ;;  %v3866_v38 = vadd.f32 %v3865_v41, %v3864_v0  ;;  %v3037_v29 = vmax.f32 %v2993_v12, 0.0 }
 0x39f   : > { %v3867_v57 = vpop.f32.mrf.mxu1 }
 0x3a0   : > { %v2996_v6 = vadd.f32 %v3866_v38, %v5450_v17 }
 0x3a1   : > { %v3868_v11 = vpop.f32.mrf.mxu1 }
 0x3a2   : > { %v3038_v13 = vmax.f32 %v2996_v6, 0.0  ;;  %v3869_v2 = vadd.f32 %v3868_v11, %v3867_v57 }
 0x3a3   : > { %v3870_v5 = vpop.f32.mrf.mxu1 }
 0x3a4   : > { %v3502_v8 = vpack.c.bf16 %v3038_v13, %v3037_v29  ;;  %v3001_v58 = vadd.f32 %v3869_v2, %v5450_v17 }
 0x3a5   : > { %v3871_v34 = vpop.f32.mrf.mxu1 }
 0x3a6   : > { %3526 = vst [vmem:[%s4436_s13 + $0x18] sm:$0xff] %v3502_v8   ;;  %v3872_v45 = vadd.f32 %v3871_v34, %v3870_v5  ;;  %v3039_v26 = vmax.f32 %v3001_v58, 0.0 }
 0x3a7   : > { %v3873_v47 = vpop.f32.mrf.mxu1 }
 0x3a8   : > { %v3004_v1 = vadd.f32 %v3872_v45, %v5450_v17 }
 0x3a9   : > { %v3874_v20 = vpop.f32.mrf.mxu1 }
 0x3aa   : > { %v3040_v51 = vmax.f32 %v3004_v1, 0.0  ;;  %v3875_v56 = vadd.f32 %v3874_v20, %v3873_v47 }
 0x3ab   : > { %v3876_v25 = vpop.f32.mrf.mxu1 }
 0x3ac   : > { %v3507_v36 = vpack.c.bf16 %v3040_v51, %v3039_v26  ;;  %v3009_v44 = vadd.f32 %v3875_v56, %v5450_v17 }
 0x3ad   : > { %v3877_v49 = vpop.f32.mrf.mxu1 }
 0x3ae   : > { %3527 = vst [vmem:[%s4436_s13 + $0x20] sm:$0xff] %v3507_v36   ;;  %v3878_v24 = vadd.f32 %v3877_v49, %v3876_v25  ;;  %v3041_v62 = vmax.f32 %v3009_v44, 0.0 }
 0x3af   : > { %v3879_v53 = vpop.f32.mrf.mxu1 }
 0x3b0   : > { %v3012_v19 = vadd.f32 %v3878_v24, %v5450_v17 }
 0x3b1   : > { %v3880_v40 = vpop.f32.mrf.mxu1 }
 0x3b2   : > { %v3042_v33 = vmax.f32 %v3012_v19, 0.0  ;;  %v3881_v21 = vadd.f32 %v3880_v40, %v3879_v53 }
 0x3b3   : > { %v3882_v55 = vpop.f32.mrf.mxu1 }
 0x3b4   : > { %v3512_v14 = vpack.c.bf16 %v3042_v33, %v3041_v62  ;;  %v3017_v18 = vadd.f32 %v3881_v21, %v5450_v17 }
 0x3b5   : > { %v3883_v48 = vpop.f32.mrf.mxu1 }
 0x3b6   : > { %3528 = vst [vmem:[%s4436_s13 + $0x28] sm:$0xff] %v3512_v14   ;;  %v3884_v32 = vadd.f32 %v3883_v48, %v3882_v55  ;;  %v3043_v9 = vmax.f32 %v3017_v18, 0.0 }
 0x3b7   : > { %v3885_v42 = vpop.f32.mrf.mxu1 }
 0x3b8   : > { %v3020_v30 = vadd.f32 %v3884_v32, %v5450_v17 }
 0x3b9   : > { %v3886_v22 = vpop.f32.mrf.mxu1 }
 0x3ba   : > { %v3044_v16 = vmax.f32 %v3020_v30, 0.0  ;;  %v3887_v63 = vadd.f32 %v3886_v22, %v3885_v42 }
 0x3bb   : > { %v3888_v15 = vpop.f32.mrf.mxu1 }
 0x3bc   : > { %v3517_v3 = vpack.c.bf16 %v3044_v16, %v3043_v9  ;;  %v3025_v61 = vadd.f32 %v3887_v63, %v5450_v17 }
 0x3bd   : > { %v3889_v50 = vpop.f32.mrf.mxu1 }
 0x3be   : > { %3529 = vst [vmem:[%s4436_s13 + $0x30] sm:$0xff] %v3517_v3   ;;  %v3890_v7 = vadd.f32 %v3889_v50, %v3888_v15  ;;  %v3045_v59 = vmax.f32 %v3025_v61, 0.0 }
 0x3c0   : > { %v3028_v31 = vadd.f32 %v3890_v7, %v5450_v17 }
 0x3c2   : > { %v3046_v27 = vmax.f32 %v3028_v31, 0.0 }
 0x3c4   : > { %v3522_v60 = vpack.c.bf16 %v3046_v27, %v3045_v59 }
 0x3c6   : > { %3530 = vst [vmem:[%s4436_s13 + $0x38] sm:$0xff] %v3522_v60  }
 0x3c7   : > { %4230 = shalt.err (!%p4227_p7)
}
 0x3c8   : > { %s4231_s13 = scalar_lea.hbm %s5481_s28, 1024  ;;  %s4235_s18 = scalar_lea.hbm %s5546_s7, 4096 }
 0x3c9   : > { %p4232_p9 = scmp.ne.s32.totalorder %s5481_s28, %s4231_s13  ;;  %p4236_p12 = scmp.lt.s32.totalorder %s5481_s28, %s5546_s7 }
 0x3ca   : > { %p4237_p13 = scmp.lt.s32.totalorder %s4235_s18, %s4231_s13 }
 0x3cb   : > { %p4233_p10 = pnand %p4232_p9, %p4406_p3 }
 0x3cc   : > { %p4238_p0 = por %p4237_p13, %p4236_p12 }
 0x3cd   : > { %p4234_p11 = pneg %p4233_p10 }
 0x3cf   : > { %p4239_p1 = pnand %p4238_p0, %p4234_p11 }
 0x3d1   : > { %4242 = shalt.err (!%p4239_p1)
}
 0x3d2   : > { %s4313_s27 = smov 64   ;;  %s4314_s22 = smov 4  }
 0x3d3   : > { %4003 = dma.vmem_to_hbm [thread:$0]  (%p4406_p3), %s5483_s16, 1024, %s5481_s28, %s5488_s1, %s4313_s27, %s4313_s27, %s4314_s22  }
 0x3d4 PF: > { %p4009_p2 = scmp.ge.s32.totalorder %s4309_s8, 2  ;;  %s3158_s23 = sand.u32 1, %s4281_s24  }
 0x3d5   : > { %s3159_s17 = scalar_lea.sflag [#allocation4], %s3158_s23 }
 0x3d6   : > { %p4006_p4 = pnand %p4009_p2, %p4415_p8 }
 0x3d8   : > { %p4007_p5 = pneg %p4006_p4 }
 0x3da   : > { %4276 = dma.done.wait (%p4007_p5), %s3159_s17, 1024  }
 0x3db   : > { %4278 = vsyncadd (%p4007_p5), %s3159_s17, 4294966272  ;;  %s20_s8 = sadd.s32 1, %s4309_s8   ;;  %s5623_s14 = sld [smem:[#allocation6_spill]] }
 0x3dc   : > { %p17_p6 = scmp.ge.s32.totalorder %s20_s8, 6   ;;  %s5624_s24 = smov %s4285_s25 }
 0x3dd   : > { %s5625_s25 = smov %s4289_s26  ;;  %s5626_s26 = smov %s4424_s19 }
 0x3de   : > { %s5627_s27 = smov %s4301_s29  ;;  %s5628_s28 = smov %s4305_s30 }
 0x3df   : > { %s5629_s29 = smov %s5632_s11  ;;  %19 = sbr.rel (!%p17_p6) target bundleno = 8 (0x8), region = 91 }
 0x3e1   : > { %s5630_s30 = smov %s5623_s14 }
 0x3e4   :  { %3164 = vsyncpa [#allocation4], 1 }
 0x3e5   :  { %3166 = vsyncpa [#allocation4 + $0x1], 1 }

// kernel: _bottleneck_nhwc_jit.1
= control target key start
LH: loop header
LB: loop body
LE: loop exit
PB: predicated region body
PF: predicated region fallthrough
CT: control target
= control target key end

     0   :  { %s5539_s0 = inlined_call_operand.vmem [shape: bf16[2,256,128], index: 0, kind: input, shape index: {}]   ;;  %s5540_s1 = inlined_call_operand.vmem [shape: bf16[128,128], index: 1, kind: input, shape index: {}]   ;;  %s5541_s2 = inlined_call_operand.vmem [shape: f32[1,128], index: 2, kind: input, shape index: {}]   ;;  %s5542_s3 = inlined_call_operand.vmem [shape: bf16[1152,128], index: 3, kind: input, shape index: {}]   ;;  %s5543_s4 = inlined_call_operand.vmem [shape: f32[1,128], index: 4, kind: input, shape index: {}]   ;;  %s5544_s5 = inlined_call_operand.vmem [shape: bf16[256,128], index: 5, kind: input, shape index: {}]   ;;  %s5545_s6 = inlined_call_operand.vmem [shape: f32[1,128], index: 6, kind: input, shape index: {}]   ;;  %s5546_s7 = inlined_call_operand.hbm [shape: bf16[2,256,128], index: 7, kind: output, shape index: {}]  }
   0x1   :  { %5549 = sst [smem:[#allocation36_spill]] %s5539_s0 }
   0x2   :  { %5550 = sst [smem:[#allocation37_spill]] %s5540_s1 }
   0x3   :  { %12 = vsyncpa [#allocation4], 0 }
   0x4   :  { %14 = vsyncpa [#allocation4 + $0x1], 0  ;;  %s4355_s24 = smov 0   ;;  %s4357_s25 = smov 0  }
   0x5   :  { %s4359_s26 = smov 0   ;;  %s4361_s27 = smov 0  }
   0x6   :  { %s4363_s28 = smov 0   ;;  %s4365_s29 = smov 0  }
   0x7   :  { %s4367_s30 = smov 0   ;;  %s4369_s8 = smov 0  }
   0x8 LB: > { %s3223_s9 = sadd.s32 4294967295, %s4309_s8   ;;  %s3224_s10 = sadd.s32 4294967294, %s4309_s8   ;;  %s4309_s8 = sphi %s4369_s8, %s20_s8   ;;  %s4305_s30 = sphi %s4367_s30, %s5630_s30   ;;  %s4301_s29 = sphi %s4365_s29, %s5629_s29   ;;  %s4297_s28 = sphi %s4363_s28, %s5628_s28   ;;  %s4293_s27 = sphi %s4361_s27, %s5627_s27   ;;  %s4289_s26 = sphi %s4359_s26, %s5626_s26   ;;  %s4285_s25 = sphi %s4357_s25, %s5625_s25   ;;  %s4281_s24 = sphi %s4355_s24, %s5624_s24  }
   0x9   : > { %s29_s11 = sadd.s32 1, %s4301_s29  ;;  %s32_s12 = sadd.s32 1, %s4305_s30 }
   0xa   : > { %p30_p0 = scmp.ge.s32.totalorder %s29_s11, 2  ;;  %p203_p1 = scmp.ne.s32.totalorder %s4289_s26, %s4285_s25 }
   0xb   : > { %p204_p2 = scmp.eq.s32.totalorder %s3223_s9, 3  ;;  %p209_p5 = scmp.ne.s32.totalorder %s4285_s25, %s4281_s24 }
   0xc   : > { %s5632_s11 = smov (%p30_p0, %s29_s11), 0  ;;  %s5634_s12 = smov (!%p30_p0, %s32_s12), %s4305_s30 }
   0xd   : > { %s189_s13 = ssub.s32 %s4301_s29, %s5632_s11  ;;  %p4406_p3 = por %p204_p2, %p203_p1 }
   0xe   : > { %p34_p4 = scmp.ge.s32.totalorder %s5634_s12, 2  ;;  %p210_p6 = scmp.eq.s32.totalorder %s3224_s10, 3 }
   0xf   : > { %p3227_p7 = scmp.ge.s32.totalorder %s4309_s8, 1  ;;  %p254_p9 = scmp.lt.s32.totalorder %s4309_s8, 5 }
  0x10   : > { %s5636_s12 = smov (%p34_p4, %s5634_s12), 0  ;;  %p4415_p8 = por %p210_p6, %p209_p5 }
  0x11   : > { %5552 = sst [smem:[#allocation6_spill]] %s5636_s12  ;;  %s188_s16 = ssub.s32 %s4305_s30, %s5636_s12 }
  0x12   : > { %s193_s17 = sadd.s32 1, %s4289_s26  ;;  %s190_s18 = sor.u32 %s189_s13, %s188_s16 }
  0x13   : > { %p255_p10 = pnand %p3227_p7, %p254_p9  ;;  %p191_p11 = scmp.eq.s32.totalorder %s190_s18, 0 }
  0x15   : > { %s4424_s19 = scalar_select %p191_p11, %s4289_s26, %s193_s17  }
  0x16   : > { %258 = sbr.rel (%p255_p10) target bundleno = 980 (0x3d4), region = 48 }
  0x1b   : > { %s5548_s20 = sand.u32 1, %s4285_s25   ;;  %p286_p12 = scmp.lt.s32.totalorder %s4297_s28, 1 }
  0x1c   : > { %s3228_s21 = sshll.u32 %s5548_s20, 6  ;;  %s5554_s0 = sld [smem:[#allocation36_spill]] }
  0x1d   : > { %s287_s22 = scalar_select %p286_p12, %s4297_s28, 1 }
  0x1e   : > { %s4436_s13 = scalar_lea.vmem [#allocation3], %s3228_s21  ;;  %p3231_p13 = scmp.ne.s32.totalorder %s4293_s27, 0 }
  0x1f   : > { %s3434_s23 = sshll.u32 %s287_s22, 7  ;;  %s5555_s1 = sld [smem:[#allocation37_spill]] (!%p3231_p13) }
  0x20   : > { %296 = sbr.rel (%p3231_p13) target bundleno = 345 (0x159), region = 52 }
  0x22   : > { %s4434_s12 = scalar_lea.vmem %s5554_s0, %s3434_s23 }
  0x25   : > { %v4077_v0 = vld [vmem:[%s5555_s1 + $0x38] sm:$0xff]   ;;  %v4078_v1 = vld [vmem:[%s5555_s1 + $0x30] sm:$0xff]   ;;  %v4079_v2 = vld [vmem:[%s5555_s1 + $0x28] sm:$0xff]   ;;  %vm712_vm0 = vcmask 1040384   ;;  %vm713_vm1 = vsmask.f32 256 }
  0x26   : > { %3891 = vmatprep.subr.bf16.mxu0 %v4077_v0  ;;  %3971 = vmatprep.subr.bf16.mxu1 %v4077_v0  ;;  %v4080_v3 = vld [vmem:[%s5555_s1 + $0x20] sm:$0xff]   ;;  %v4081_v6 = vld [vmem:[%s5555_s1 + $0x18] sm:$0xff]   ;;  %v4082_v7 = vld [vmem:[%s5555_s1 + $0x10] sm:$0xff]   ;;  %vm769_vm3 = vsmask.f32 7938  ;;  %vm1228_vm5 = vcmask 1043456  }
  0x27   : > { %3892 = vmatpush3.bf16.msra.mxu0 %v4077_v0  ;;  %3979 = vmatpush3.bf16.msra.mxu1 %v4077_v0  ;;  %v4085_v4 = vld [vmem:[%s4434_s12] sm:$0xff]   ;;  %v4083_v8 = vld [vmem:[%s5555_s1 + $0x8] sm:$0xff]   ;;  %v4089_v12 = vld [vmem:[%s4434_s12 + $0x10] sm:$0xff]   ;;  %vm905_vm6 = vsmask.f32 4368 }
  0x28   : > { %3893 = vmatprep.subr.bf16.mxu0 %v4078_v1  ;;  %3972 = vmatprep.subr.bf16.mxu1 %v4078_v1  ;;  %v4086_v5 = vld [vmem:[%s4434_s12 + $0x40] sm:$0xff]   ;;  %v4087_v10 = vld [vmem:[%s4434_s12 + $0x8] sm:$0xff]   ;;  %v4090_v13 = vld [vmem:[%s4434_s12 + $0x50] sm:$0xff]  }
  0x29   : > { %3907 = vmatprep.mubr.bf16.mxu0 %v4085_v4  ;;  %3923 = vmatprep.mubr.bf16.mxu1 %v4086_v5  ;;  %v4084_v9 = vld [vmem:[%s5555_s1] sm:$0xff]   ;;  %v4088_v11 = vld [vmem:[%s4434_s12 + $0x48] sm:$0xff]   ;;  %v4091_v14 = vld [vmem:[%s4434_s12 + $0x18] sm:$0xff]  }
  0x2a   : > { %v4092_v15 = vld [vmem:[%s4434_s12 + $0x58] sm:$0xff]   ;;  %v4093_v16 = vld [vmem:[%s4434_s12 + $0x20] sm:$0xff]   ;;  %v4095_v18 = vld [vmem:[%s4434_s12 + $0x28] sm:$0xff]  }
  0x2b   : > { %3894 = vmatpush3.bf16.msra.mxu0 %v4078_v1  ;;  %3980 = vmatpush3.bf16.msra.mxu1 %v4078_v1  ;;  %v4094_v17 = vld [vmem:[%s4434_s12 + $0x60] sm:$0xff]   ;;  %v4096_v19 = vld [vmem:[%s4434_s12 + $0x68] sm:$0xff]   ;;  %v4097_v20 = vld [vmem:[%s4434_s12 + $0x30] sm:$0xff]  }
  0x2c   : > { %3895 = vmatprep.subr.bf16.mxu0 %v4079_v2  ;;  %3973 = vmatprep.subr.bf16.mxu1 %v4079_v2  ;;  %v4098_v21 = vld [vmem:[%s4434_s12 + $0x70] sm:$0xff]   ;;  %v4099_v22 = vld [vmem:[%s4434_s12 + $0x38] sm:$0xff]   ;;  %vm4480_vm2 = vmand %vm712_vm0, %vm713_vm1 }
  0x2d   : > { %v4100_v23 = vld [vmem:[%s4434_s12 + $0x78] sm:$0xff]   ;;  %v718_v29 = vld [vmem:[#allocation2 + $0xc] sm:$0x1]  ;;  %vm4489_vm4 = vmand %vm712_vm0, %vm769_vm3 }
  0x2e   : > { %v721_v25 = vld [vmem:[#allocation2 + $0x18] sm:$0x1]  ;;  %v719_v31 = vsel %vm4480_vm2, 0, %v718_v29  ;;  %v742_v32 = vld [vmem:[#allocation2 + $0x6c] sm:$0x1]  ;;  %vm4580_vm7 = vmand %vm1228_vm5, %vm769_vm3 }
  0x2f   : > { %3896 = vmatpush3.bf16.msra.mxu0 %v4079_v2  ;;  %3981 = vmatpush3.bf16.msra.mxu1 %v4079_v2  ;;  %v745_v26 = vld [vmem:[#allocation2 + $0x78] sm:$0x1]  ;;  %v722_v27 = vsel %vm4480_vm2, 0, %v721_v25  ;;  %720 = vst [vmem:[#allocation2 + $0xc] sm:$0x1] %v719_v31  ;;  %v743_v33 = vsel %vm4480_vm2, 0, %v742_v32  ;;  %vm4608_vm8 = vmor %vm713_vm1, %vm905_vm6 }
  0x30   : > { %3897 = vmatprep.subr.bf16.mxu0 %v4080_v3  ;;  %3974 = vmatprep.subr.bf16.mxu1 %v4080_v3  ;;  %v746_v28 = vsel %vm4480_vm2, 0, %v745_v26  ;;  %723 = vst [vmem:[#allocation2 + $0x18] sm:$0x1] %v722_v27  ;;  %744 = vst [vmem:[#allocation2 + $0x6c] sm:$0x1] %v743_v33  ;;  %v4311_v27 = vmov 0  }
  0x31   : > { %747 = vst [vmem:[#allocation2 + $0x78] sm:$0x1] %v746_v28  ;;  %v777_v34 = vld [vmem:[#allocation2 + $0x20] sm:$0x1]  ;;  %v774_v38 = vld [vmem:[#allocation2 + $0x14] sm:$0x1] }
  0x32   : > { %v778_v35 = vsel %vm4489_vm4, 0, %v777_v34  ;;  %v801_v36 = vld [vmem:[#allocation2 + $0x80] sm:$0x1]  ;;  %v775_v39 = vsel %vm4489_vm4, 0, %v774_v38  ;;  %v798_v40 = vld [vmem:[#allocation2 + $0x74] sm:$0x1] }
  0x33   : > { %3898 = vmatpush3.bf16.msra.mxu0 %v4080_v3  ;;  %3982 = vmatpush3.bf16.msra.mxu1 %v4080_v3  ;;  %779 = vst [vmem:[#allocation2 + $0x20] sm:$0x1] %v778_v35  ;;  %v802_v37 = vsel %vm4489_vm4, 0, %v801_v36  ;;  %776 = vst [vmem:[#allocation2 + $0x14] sm:$0x1] %v775_v39  ;;  %v799_v41 = vsel %vm4489_vm4, 0, %v798_v40 }
  0x34   : > { %3899 = vmatprep.subr.bf16.mxu0 %v4081_v6  ;;  %3975 = vmatprep.subr.bf16.mxu1 %v4081_v6  ;;  %803 = vst [vmem:[#allocation2 + $0x80] sm:$0x1] %v802_v37  ;;  %800 = vst [vmem:[#allocation2 + $0x74] sm:$0x1] %v799_v41  ;;  %v727_v42 = vld [vmem:[#allocation2 + $0x30] sm:$0x1] }
  0x35   : > { %v728_v43 = vsel %vm4480_vm2, 0, %v727_v42  ;;  %v751_v44 = vld [vmem:[#allocation2 + $0x90] sm:$0x1]  ;;  %v724_v46 = vld [vmem:[#allocation2 + $0x24] sm:$0x1] }
  0x36   : > { %729 = vst [vmem:[#allocation2 + $0x30] sm:$0x1] %v728_v43  ;;  %v752_v45 = vsel %vm4480_vm2, 0, %v751_v44  ;;  %v748_v47 = vld [vmem:[#allocation2 + $0x84] sm:$0x1]  ;;  %v725_v48 = vsel %vm4480_vm2, 0, %v724_v46 }
  0x37   : > { %3900 = vmatpush3.bf16.msra.mxu0 %v4081_v6  ;;  %3983 = vmatpush3.bf16.msra.mxu1 %v4081_v6  ;;  %753 = vst [vmem:[#allocation2 + $0x90] sm:$0x1] %v752_v45  ;;  %v749_v49 = vsel %vm4480_vm2, 0, %v748_v47  ;;  %726 = vst [vmem:[#allocation2 + $0x24] sm:$0x1] %v725_v48 }
  0x38   : > { %3901 = vmatprep.subr.bf16.mxu0 %v4082_v7  ;;  %3976 = vmatprep.subr.bf16.mxu1 %v4082_v7  ;;  %750 = vst [vmem:[#allocation2 + $0x84] sm:$0x1] %v749_v49  ;;  %v783_v50 = vld [vmem:[#allocation2 + $0x38] sm:$0x1]  ;;  %v780_v54 = vld [vmem:[#allocation2 + $0x2c] sm:$0x1] }
  0x39   : > { %v784_v51 = vsel %vm4489_vm4, 0, %v783_v50  ;;  %v807_v52 = vld [vmem:[#allocation2 + $0x98] sm:$0x1]  ;;  %v781_v55 = vsel %vm4489_vm4, 0, %v780_v54  ;;  %v804_v56 = vld [vmem:[#allocation2 + $0x8c] sm:$0x1] }
  0x3a   : > { %785 = vst [vmem:[#allocation2 + $0x38] sm:$0x1] %v784_v51  ;;  %v808_v53 = vsel %vm4489_vm4, 0, %v807_v52  ;;  %782 = vst [vmem:[#allocation2 + $0x2c] sm:$0x1] %v781_v55  ;;  %v805_v57 = vsel %vm4489_vm4, 0, %v804_v56 }
  0x3b   : > { %3902 = vmatpush3.bf16.msra.mxu0 %v4082_v7  ;;  %3984 = vmatpush3.bf16.msra.mxu1 %v4082_v7  ;;  %809 = vst [vmem:[#allocation2 + $0x98] sm:$0x1] %v808_v53  ;;  %806 = vst [vmem:[#allocation2 + $0x8c] sm:$0x1] %v805_v57  ;;  %v733_v58 = vld [vmem:[#allocation2 + $0x48] sm:$0x1] }
  0x3c   : > { %3903 = vmatprep.subr.bf16.mxu0 %v4083_v8  ;;  %3977 = vmatprep.subr.bf16.mxu1 %v4083_v8  ;;  %v734_v59 = vsel %vm4480_vm2, 0, %v733_v58  ;;  %v757_v60 = vld [vmem:[#allocation2 + $0xa8] sm:$0x1]  ;;  %v730_v62 = vld [vmem:[#allocation2 + $0x3c] sm:$0x1] }
  0x3d   : > { %735 = vst [vmem:[#allocation2 + $0x48] sm:$0x1] %v734_v59  ;;  %v758_v61 = vsel %vm4480_vm2, 0, %v757_v60  ;;  %v731_v63 = vsel %vm4480_vm2, 0, %v730_v62  ;;  %v754_v0 = vld [vmem:[#allocation2 + $0x9c] sm:$0x1] }
  0x3e   : > { %759 = vst [vmem:[#allocation2 + $0xa8] sm:$0x1] %v758_v61  ;;  %732 = vst [vmem:[#allocation2 + $0x3c] sm:$0x1] %v731_v63  ;;  %v755_v1 = vsel %vm4480_vm2, 0, %v754_v0 }
  0x3f   : > { %3904 = vmatpush3.bf16.msra.mxu0 %v4083_v8  ;;  %3985 = vmatpush3.bf16.msra.mxu1 %v4083_v8  ;;  %756 = vst [vmem:[#allocation2 + $0x9c] sm:$0x1] %v755_v1  ;;  %v789_v2 = vld [vmem:[#allocation2 + $0x50] sm:$0x1]  ;;  %v786_v6 = vld [vmem:[#allocation2 + $0x44] sm:$0x1] }
  0x40   : > { %3905 = vmatprep.subr.bf16.mxu0 %v4084_v9  ;;  %3978 = vmatprep.subr.bf16.mxu1 %v4084_v9  ;;  %v790_v3 = vsel %vm4489_vm4, 0, %v789_v2  ;;  %v813_v4 = vld [vmem:[#allocation2 + $0xb0] sm:$0x1]  ;;  %v787_v7 = vsel %vm4489_vm4, 0, %v786_v6  ;;  %v810_v8 = vld [vmem:[#allocation2 + $0xa4] sm:$0x1] }
  0x41   : > { %791 = vst [vmem:[#allocation2 + $0x50] sm:$0x1] %v790_v3  ;;  %v814_v5 = vsel %vm4489_vm4, 0, %v813_v4  ;;  %788 = vst [vmem:[#allocation2 + $0x44] sm:$0x1] %v787_v7 }
  0x42   : > { %815 = vst [vmem:[#allocation2 + $0xb0] sm:$0x1] %v814_v5  ;;  %v816_v25 = vld [vmem:[#allocation2 + $0xbc] sm:$0x1]  ;;  %705 = vst [vmem:[#allocation2] sm:$0xf] %v4311_v27 }
  0x43   : > { %3906 = vmatpush3.bf16.msra.mxu0 %v4084_v9  ;;  %3986 = vmatpush3.bf16.msra.mxu1 %v4084_v9  ;;  %v811_v9 = vsel %vm4489_vm4, 0, %v810_v8  ;;  %v817_v26 = vsel %vm4489_vm4, 0, %v816_v25  ;;  %706 = vst [vmem:[#allocation2 + $0x4] sm:$0xf] %v4311_v27  ;;  %707 = vst [vmem:[#allocation2 + $0x8] sm:$0x1] %v4311_v27 }
  0x44   : > { %812 = vst [vmem:[#allocation2 + $0xa4] sm:$0x1] %v811_v9  ;;  %818 = vst [vmem:[#allocation2 + $0xbc] sm:$0x1] %v817_v26  ;;  %v4564_v37 = vld [vmem:[%s5541_s2] ss:$0 sm:$0xff] }
  0x45   : > { %709 = vst [vmem:[#allocation2 + $0xcc] sm:$0xf] %v4311_v27  ;;  %710 = vst [vmem:[#allocation2 + $0xd0] sm:$0xf] %v4311_v27  ;;  %v1237_v2 = vld [vmem:[#allocation2 + $0x18] sm:$0xf] }
  0x46   : > { %3908 = vmatmul.mubr.bf16.vlgmr.msra.gmra.mxu0 %v4087_v10  ;;  %3924 = vmatmul.mubr.bf16.vlgmr.msra.gmra.mxu1 %v4088_v11  ;;  %v739_v10 = vld [vmem:[#allocation2 + $0x60] sm:$0x1]  ;;  %711 = vst [vmem:[#allocation2 + $0xd4] sm:$0x1] %v4311_v27  ;;  %v1293_v7 = vld [vmem:[#allocation2 + $0x78] sm:$0xf] }
  0x47   : > { %3911 = vmatprep.mubr.bf16.mxu0 %v4089_v12  ;;  %3927 = vmatprep.mubr.bf16.mxu1 %v4090_v13  ;;  %v740_v11 = vsel %vm4480_vm2, 0, %v739_v10  ;;  %v763_v12 = vld [vmem:[#allocation2 + $0xc0] sm:$0x1]  ;;  %v1230_v25 = vld [vmem:[#allocation2 + $0xc] sm:$0xf] }
  0x48   : > { %741 = vst [vmem:[#allocation2 + $0x60] sm:$0x1] %v740_v11  ;;  %v764_v13 = vsel %vm4480_vm2, 0, %v763_v12  ;;  %v1286_v26 = vld [vmem:[#allocation2 + $0x6c] sm:$0xf] }
  0x49   : > { %765 = vst [vmem:[#allocation2 + $0xc0] sm:$0x1] %v764_v13  ;;  %v715_v28 = vld [vmem:[#allocation2] sm:$0x1] }
  0x4a   : > { %v716_v29 = vsel %vm4480_vm2, 0, %v715_v28  ;;  %v771_v32 = vld [vmem:[#allocation2 + $0x8] sm:$0x1] }
  0x4b   : > { %717 = vst [vmem:[#allocation2] sm:$0x1] %v716_v29  ;;  %v772_v34 = vsel %vm4489_vm4, 0, %v771_v32 }
  0x4c   : > { %v766_v31 = vld [vmem:[#allocation2 + $0xcc] sm:$0x1]  ;;  %773 = vst [vmem:[#allocation2 + $0x8] sm:$0x1] %v772_v34 }
  0x4d   : > { %v767_v33 = vsel %vm4480_vm2, 0, %v766_v31  ;;  %v822_v35 = vld [vmem:[#allocation2 + $0xd4] sm:$0x1] }
  0x4e   : > { %3912 = vmatmul.mubr.bf16.gmra.mxu0 %v4091_v14  ;;  %3928 = vmatmul.mubr.bf16.gmra.mxu1 %v4092_v15  ;;  %v736_v14 = vld [vmem:[#allocation2 + $0x54] sm:$0x1]  ;;  %768 = vst [vmem:[#allocation2 + $0xcc] sm:$0x1] %v767_v33  ;;  %v823_v36 = vsel %vm4489_vm4, 0, %v822_v35 }
  0x4f   : > { %3915 = vmatprep.mubr.bf16.mxu0 %v4093_v16  ;;  %3931 = vmatprep.mubr.bf16.mxu1 %v4094_v17  ;;  %v760_v15 = vld [vmem:[#allocation2 + $0xb4] sm:$0x1]  ;;  %v737_v16 = vsel %vm4480_vm2, 0, %v736_v14  ;;  %824 = vst [vmem:[#allocation2 + $0xd4] sm:$0x1] %v823_v36 }
  0x50   : > { %v761_v17 = vsel %vm4480_vm2, 0, %v760_v15  ;;  %738 = vst [vmem:[#allocation2 + $0x54] sm:$0x1] %v737_v16 }
  0x51   : > { %762 = vst [vmem:[#allocation2 + $0xb4] sm:$0x1] %v761_v17 }
  0x56   : > { %3916 = vmatmul.mubr.bf16.gmra.mxu0 %v4095_v18  ;;  %3932 = vmatmul.mubr.bf16.gmra.mxu1 %v4096_v19  ;;  %v795_v18 = vld [vmem:[#allocation2 + $0x68] sm:$0x1] }
  0x57   : > { %3919 = vmatprep.mubr.bf16.mxu0 %v4097_v20  ;;  %3935 = vmatprep.mubr.bf16.mxu1 %v4098_v21  ;;  %v796_v19 = vsel %vm4489_vm4, 0, %v795_v18  ;;  %v819_v20 = vld [vmem:[#allocation2 + $0xc8] sm:$0x1] }
  0x58   : > { %797 = vst [vmem:[#allocation2 + $0x68] sm:$0x1] %v796_v19  ;;  %v820_v21 = vsel %vm4489_vm4, 0, %v819_v20 }
  0x59   : > { %821 = vst [vmem:[#allocation2 + $0xc8] sm:$0x1] %v820_v21 }
  0x5e   : > { %3920 = vmatmul.mubr.bf16.gmra.mxu0 %v4099_v22  ;;  %3936 = vmatmul.mubr.bf16.gmra.mxu1 %v4100_v23  ;;  %v792_v22 = vld [vmem:[#allocation2 + $0x5c] sm:$0x1] }
  0x5f   : > { %v793_v23 = vsel %vm4489_vm4, 0, %v792_v22 }
  0x60   : > { %794 = vst [vmem:[#allocation2 + $0x5c] sm:$0x1] %v793_v23 }
 0x106   : > { %v3909_v38 = vpop.f32.mrf.mxu0  ;;  %v3925_v39 = vpop.f32.mrf.mxu1 }
 0x107   : > { %v539_v40 = vadd.f32 %v3909_v38, %v4564_v37  ;;  %v603_v41 = vadd.f32 %v3925_v39, %v4564_v37 }
 0x108   : > { %v530_v42 = vpop.f32.mrf.mxu0  ;;  %v594_v43 = vpop.f32.mrf.mxu1 }
 0x109   : > { %v659_v44 = vmax.f32 %v539_v40, 0.0  ;;  %v675_v45 = vmax.f32 %v603_v41, 0.0  ;;  %v531_v46 = vadd.f32 %v4564_v37, %v530_v42  ;;  %v595_v30 = vadd.f32 %v4564_v37, %v594_v43 }
 0x10a   : > { %v3910_v47 = vpop.f32.mrf.mxu0  ;;  %v3926_v48 = vpop.f32.mrf.mxu1 }
 0x10b   : > { %v3437_v49 = vpack.c.bf16 %v659_v44, %v659_v44  ;;  %v3453_v50 = vpack.c.bf16 %v675_v45, %v675_v45  ;;  %v657_v51 = vmax.f32 %v531_v46, 0.0  ;;  %v673_v52 = vmax.f32 %v595_v30, 0.0  ;;  %v1241_v46 = vld [vmem:[#allocation2 + $0x20] sm:$0x1] }
 0x10c   : > { %v542_v53 = vadd.f32 %v3910_v47, %v4564_v37  ;;  %v606_v54 = vadd.f32 %v3926_v48, %v4564_v37  ;;  %v533_v55 = vpop.f32.mrf.mxu0  ;;  %v597_v56 = vpop.f32.mrf.mxu1 }
 0x10d   : > { %v925_v57 = vshrl.u32 %v3437_v49, 16  ;;  %v928_v58 = vshll.u32 %v3437_v49, 16  ;;  %v1061_v59 = vshrl.u32 %v3453_v50, 16  ;;  %v1064_v60 = vshll.u32 %v3453_v50, 16  ;;  %v1297_v50 = vld [vmem:[#allocation2 + $0x80] sm:$0x1] }
 0x10e   : > { %v3435_v61 = vpack.c.bf16 %v657_v51, %v657_v51  ;;  %v3451_v62 = vpack.c.bf16 %v673_v52, %v673_v52  ;;  %v660_v63 = vmax.f32 %v542_v53, 0.0  ;;  %v676_v0 = vmax.f32 %v606_v54, 0.0  ;;  %v3913_v20 = vpop.f32.mrf.mxu0  ;;  %v3929_v21 = vpop.f32.mrf.mxu1 }
 0x10f   : > { %v4572_v1 = vrot.slane %v925_v57, 7  ;;  %v4574_v3 = vrot.slane %v1061_v59, 7  ;;  %v534_v4 = vadd.f32 %v4564_v37, %v533_v55  ;;  %v598_v5 = vadd.f32 %v4564_v37, %v597_v56 }
 0x110   : > { %v908_v8 = vshrl.u32 %v3435_v61, 16  ;;  %v911_v9 = vshll.u32 %v3435_v61, 16  ;;  %v1044_v10 = vshrl.u32 %v3451_v62, 16  ;;  %v1047_v11 = vshll.u32 %v3451_v62, 16  ;;  %v546_v43 = vpop.f32.mrf.mxu0  ;;  %v610_v44 = vpop.f32.mrf.mxu1 }
 0x111   : > { %v930_v12 = vor.u32 %v928_v58, %v4572_v1  ;;  %v931_v13 = vrot.slane %v4572_v1, 4  ;;  %v1066_v14 = vor.u32 %v1064_v60, %v4574_v3  ;;  %v1067_v15 = vrot.slane %v4574_v3, 4 }
 0x112   : > { %v4588_v16 = vrot.slane %v908_v8, 7  ;;  %v4590_v17 = vrot.slane %v1044_v10, 7  ;;  %v3438_v18 = vpack.c.bf16 %v660_v63, %v660_v63  ;;  %v3454_v19 = vpack.c.bf16 %v676_v0, %v676_v0  ;;  %v3914_v63 = vpop.f32.mrf.mxu0  ;;  %v3930_v0 = vpop.f32.mrf.mxu1 }
 0x113   : > { %v1238_v22 = vsel %vm4580_vm7, %v930_v12, %v1237_v2  ;;  %v1294_v23 = vsel %vm4580_vm7, %v1066_v14, %v1293_v7  ;;  %v658_v27 = vmax.f32 %v534_v4, 0.0  ;;  %v674_v28 = vmax.f32 %v598_v5, 0.0  ;;  %v1234_v5 = vld [vmem:[#allocation2 + $0x14] sm:$0x1] }
 0x114   : > { %1239 = vst [vmem:[#allocation2 + $0x18] sm:$0xf] %v1238_v22  ;;  %1295 = vst [vmem:[#allocation2 + $0x78] sm:$0xf] %v1294_v23  ;;  %v913_v29 = vor.u32 %v911_v9, %v4588_v16  ;;  %v914_v31 = vrot.slane %v4588_v16, 4  ;;  %v1049_v32 = vor.u32 %v1047_v11, %v4590_v17  ;;  %v1050_v33 = vrot.slane %v4590_v17, 4 }
 0x115   : > { %v933_v34 = vshrl.u32 %v3438_v18, 16  ;;  %v936_v35 = vshll.u32 %v3438_v18, 16  ;;  %v1069_v36 = vshrl.u32 %v3454_v19, 16  ;;  %v1072_v38 = vshll.u32 %v3454_v19, 16  ;;  %v1290_v7 = vld [vmem:[#allocation2 + $0x74] sm:$0x1] }
 0x116   : > { %v1231_v39 = vsel %vm4580_vm7, %v913_v29, %v1230_v25  ;;  %v1287_v40 = vsel %vm4580_vm7, %v1049_v32, %v1286_v26  ;;  %v3436_v41 = vpack.c.bf16 %v658_v27, %v658_v27  ;;  %v3452_v42 = vpack.c.bf16 %v674_v28, %v674_v28 }
 0x117   : > { %1232 = vst [vmem:[#allocation2 + $0xc] sm:$0xf] %v1231_v39  ;;  %1288 = vst [vmem:[#allocation2 + $0x6c] sm:$0xf] %v1287_v40  ;;  %v935_v45 = vrot.slane %v933_v34, 7  ;;  %v1071_v30 = vrot.slane %v1069_v36, 7  ;;  %v555_v47 = vadd.f32 %v3913_v20, %v4564_v37  ;;  %v619_v48 = vadd.f32 %v3929_v21, %v4564_v37  ;;  %v549_v20 = vpop.f32.mrf.mxu0  ;;  %v613_v21 = vpop.f32.mrf.mxu1 }
 0x118   : > { %v916_v51 = vshrl.u32 %v3436_v41, 16  ;;  %v919_v52 = vshll.u32 %v3436_v41, 16  ;;  %v1052_v53 = vshrl.u32 %v3452_v42, 16  ;;  %v1055_v54 = vshll.u32 %v3452_v42, 16  ;;  %v1251_v36 = vld [vmem:[#allocation2 + $0x30] sm:$0xf] }
 0x119   : > { %v938_v55 = vor.u32 %v936_v35, %v935_v45  ;;  %v940_v56 = vrot.slane %v935_v45, 4  ;;  %v1074_v57 = vor.u32 %v1072_v38, %v1071_v30  ;;  %v1076_v58 = vrot.slane %v1071_v30, 4  ;;  %v1307_v38 = vld [vmem:[#allocation2 + $0x90] sm:$0xf] }
 0x11a   : > { %v918_v59 = vrot.slane %v916_v51, 7  ;;  %v1054_v60 = vrot.slane %v1052_v53, 7  ;;  %v663_v61 = vmax.f32 %v555_v47, 0.0  ;;  %v679_v62 = vmax.f32 %v619_v48, 0.0  ;;  %v3917_v51 = vpop.f32.mrf.mxu0 }
 0x11b   : > { %v939_v1 = vsel %vm4608_vm8, %v931_v13, %v938_v55  ;;  %v1242_v2 = vsel %vm4480_vm2, %v940_v56, %v1241_v46  ;;  %v1075_v3 = vsel %vm4608_vm8, %v1067_v15, %v1074_v57  ;;  %v1298_v4 = vsel %vm4480_vm2, %v1076_v58, %v1297_v50  ;;  %v1244_v58 = vld [vmem:[#allocation2 + $0x24] sm:$0xf] }
 0x11c   : > { %1240 = vst [vmem:[#allocation2 + $0x1c] sm:$0xf] %v939_v1  ;;  %1243 = vst [vmem:[#allocation2 + $0x20] sm:$0x1] %v1242_v2  ;;  %v921_v8 = vor.u32 %v919_v52, %v918_v59  ;;  %v923_v9 = vrot.slane %v918_v59, 4  ;;  %v1057_v10 = vor.u32 %v1055_v54, %v1054_v60  ;;  %v1059_v11 = vrot.slane %v1054_v60, 4  ;;  %v3933_v52 = vpop.f32.mrf.mxu1 }
 0x11d   : > { %1296 = vst [vmem:[#allocation2 + $0x7c] sm:$0xf] %v1075_v3  ;;  %1299 = vst [vmem:[#allocation2 + $0x80] sm:$0x1] %v1298_v4  ;;  %v3441_v12 = vpack.c.bf16 %v663_v61, %v663_v61  ;;  %v3457_v13 = vpack.c.bf16 %v679_v62, %v679_v62  ;;  %v547_v14 = vadd.f32 %v4564_v37, %v546_v43  ;;  %v1300_v62 = vld [vmem:[#allocation2 + $0x84] sm:$0xf] }
 0x11e   : > { %v611_v16 = vadd.f32 %v4564_v37, %v610_v44  ;;  %v922_v15 = vsel %vm4608_vm8, %v914_v31, %v921_v8  ;;  %v1235_v17 = vsel %vm4480_vm2, %v923_v9, %v1234_v5  ;;  %v1058_v18 = vsel %vm4608_vm8, %v1050_v33, %v1057_v10  ;;  %v562_v8 = vpop.f32.mrf.mxu0  ;;  %v626_v9 = vpop.f32.mrf.mxu1 }
 0x11f   : > { %v1291_v19 = vsel %vm4480_vm2, %v1059_v11, %v1290_v7  ;;  %1233 = vst [vmem:[#allocation2 + $0x10] sm:$0xf] %v922_v15  ;;  %1236 = vst [vmem:[#allocation2 + $0x14] sm:$0x1] %v1235_v17  ;;  %v959_v22 = vshrl.u32 %v3441_v12, 16  ;;  %v962_v23 = vshll.u32 %v3441_v12, 16  ;;  %v558_v29 = vadd.f32 %v3914_v63, %v4564_v37 }
 0x120   : > { %1289 = vst [vmem:[#allocation2 + $0x70] sm:$0xf] %v1058_v18  ;;  %1292 = vst [vmem:[#allocation2 + $0x74] sm:$0x1] %v1291_v19  ;;  %v1095_v25 = vshrl.u32 %v3457_v13, 16  ;;  %v1098_v26 = vshll.u32 %v3457_v13, 16  ;;  %v622_v31 = vadd.f32 %v3930_v0, %v4564_v37  ;;  %v550_v34 = vadd.f32 %v4564_v37, %v549_v20 }
 0x121   : > { %v661_v27 = vmax.f32 %v547_v14, 0.0  ;;  %v677_v28 = vmax.f32 %v611_v16, 0.0  ;;  %v4632_v32 = vrot.slane %v959_v22, 7  ;;  %v614_v35 = vadd.f32 %v4564_v37, %v613_v21  ;;  %v1255_v15 = vld [vmem:[#allocation2 + $0x38] sm:$0x1] }
 0x122   : > { %v4634_v33 = vrot.slane %v1095_v25, 7  ;;  %v664_v41 = vmax.f32 %v558_v29, 0.0  ;;  %v680_v42 = vmax.f32 %v622_v31, 0.0  ;;  %v662_v60 = vmax.f32 %v550_v34, 0.0  ;;  %v1311_v17 = vld [vmem:[#allocation2 + $0x98] sm:$0x1]  ;;  %v3918_v29 = vpop.f32.mrf.mxu0  ;;  %v3934_v31 = vpop.f32.mrf.mxu1 }
 0x123   : > { %v3439_v39 = vpack.c.bf16 %v661_v27, %v661_v27  ;;  %v3455_v40 = vpack.c.bf16 %v677_v28, %v677_v28  ;;  %v964_v43 = vor.u32 %v962_v23, %v4632_v32  ;;  %v965_v44 = vrot.slane %v4632_v32, 4 }
 0x124   : > { %v1100_v45 = vor.u32 %v1098_v26, %v4634_v33  ;;  %v1101_v46 = vrot.slane %v4634_v33, 4  ;;  %v3442_v55 = vpack.c.bf16 %v664_v41, %v664_v41  ;;  %v3458_v56 = vpack.c.bf16 %v680_v42, %v680_v42  ;;  %v1248_v41 = vld [vmem:[#allocation2 + $0x2c] sm:$0x1] }
 0x125   : > { %v942_v30 = vshrl.u32 %v3439_v39, 16  ;;  %v945_v47 = vshll.u32 %v3439_v39, 16  ;;  %v1078_v48 = vshrl.u32 %v3455_v40, 16  ;;  %v1081_v50 = vshll.u32 %v3455_v40, 16  ;;  %v1304_v42 = vld [vmem:[#allocation2 + $0x8c] sm:$0x1] }
 0x126   : > { %v1252_v53 = vsel %vm4580_vm7, %v964_v43, %v1251_v36  ;;  %v1308_v54 = vsel %vm4580_vm7, %v1100_v45, %v1307_v38  ;;  %v678_v61 = vmax.f32 %v614_v35, 0.0  ;;  %v967_v63 = vshrl.u32 %v3442_v55, 16 }
 0x127   : > { %1253 = vst [vmem:[#allocation2 + $0x30] sm:$0xf] %v1252_v53  ;;  %1309 = vst [vmem:[#allocation2 + $0x90] sm:$0xf] %v1308_v54  ;;  %v4646_v57 = vrot.slane %v942_v30, 7  ;;  %v4648_v59 = vrot.slane %v1078_v48, 7  ;;  %v3440_v12 = vpack.c.bf16 %v662_v60, %v662_v60  ;;  %v571_v18 = vadd.f32 %v3917_v51, %v4564_v37  ;;  %v629_v60 = vpop.f32.mrf.mxu1 }
 0x128   : > { %v970_v0 = vshll.u32 %v3442_v55, 16  ;;  %v1103_v1 = vshrl.u32 %v3458_v56, 16  ;;  %v1106_v2 = vshll.u32 %v3458_v56, 16  ;;  %v969_v10 = vrot.slane %v967_v63, 7 }
 0x129   : > { %v947_v3 = vor.u32 %v945_v47, %v4646_v57  ;;  %v948_v4 = vrot.slane %v4646_v57, 4  ;;  %v1083_v5 = vor.u32 %v1081_v50, %v4648_v59  ;;  %v1084_v7 = vrot.slane %v4648_v59, 4  ;;  %v565_v59 = vpop.f32.mrf.mxu0 }
 0x12a   : > { %v1105_v11 = vrot.slane %v1103_v1, 7  ;;  %v3456_v13 = vpack.c.bf16 %v678_v61, %v678_v61  ;;  %v635_v19 = vadd.f32 %v3933_v52, %v4564_v37  ;;  %v972_v20 = vor.u32 %v970_v0, %v969_v10 }
 0x12b   : > { %v1245_v14 = vsel %vm4580_vm7, %v947_v3, %v1244_v58  ;;  %v1301_v16 = vsel %vm4580_vm7, %v1083_v5, %v1300_v62  ;;  %v974_v21 = vrot.slane %v969_v10, 4  ;;  %v950_v25 = vshrl.u32 %v3440_v12, 16 }
 0x12c   : > { %1246 = vst [vmem:[#allocation2 + $0x24] sm:$0xf] %v1245_v14  ;;  %1302 = vst [vmem:[#allocation2 + $0x84] sm:$0xf] %v1301_v16  ;;  %v1108_v22 = vor.u32 %v1106_v2, %v1105_v11  ;;  %v1110_v23 = vrot.slane %v1105_v11, 4  ;;  %v953_v26 = vshll.u32 %v3440_v12, 16  ;;  %v973_v32 = vsel %vm4608_vm8, %v965_v44, %v972_v20 }
 0x12d   : > { %v1086_v27 = vshrl.u32 %v3456_v13, 16  ;;  %v1089_v28 = vshll.u32 %v3456_v13, 16  ;;  %v1256_v33 = vsel %vm4480_vm2, %v974_v21, %v1255_v15  ;;  %1254 = vst [vmem:[#allocation2 + $0x34] sm:$0xf] %v973_v32  ;;  %v952_v36 = vrot.slane %v950_v25, 7  ;;  %v3921_v25 = vpop.f32.mrf.mxu0 }
 0x12e   : > { %v1109_v34 = vsel %vm4608_vm8, %v1101_v46, %v1108_v22  ;;  %v1312_v35 = vsel %vm4480_vm2, %v1110_v23, %v1311_v17  ;;  %1257 = vst [vmem:[#allocation2 + $0x38] sm:$0x1] %v1256_v33  ;;  %v667_v39 = vmax.f32 %v571_v18, 0.0  ;;  %v683_v40 = vmax.f32 %v635_v19, 0.0  ;;  %v1321_v11 = vld [vmem:[#allocation2 + $0xa8] sm:$0xf] }
 0x12f   : > { %1310 = vst [vmem:[#allocation2 + $0x94] sm:$0xf] %v1109_v34  ;;  %1313 = vst [vmem:[#allocation2 + $0x98] sm:$0x1] %v1312_v35  ;;  %v1088_v38 = vrot.slane %v1086_v27, 7  ;;  %v563_v43 = vadd.f32 %v4564_v37, %v562_v8  ;;  %v627_v44 = vadd.f32 %v4564_v37, %v626_v9  ;;  %v574_v45 = vadd.f32 %v3918_v29, %v4564_v37 }
 0x130   : > { %v638_v46 = vadd.f32 %v3934_v31, %v4564_v37  ;;  %v955_v30 = vor.u32 %v953_v26, %v952_v36  ;;  %v957_v47 = vrot.slane %v952_v36, 4  ;;  %v3445_v51 = vpack.c.bf16 %v667_v39, %v667_v39  ;;  %v3937_v26 = vpop.f32.mrf.mxu1  ;;  %v1258_v29 = vld [vmem:[#allocation2 + $0x3c] sm:$0xf] }
 0x131   : > { %v1091_v48 = vor.u32 %v1089_v28, %v1088_v38  ;;  %v1093_v50 = vrot.slane %v1088_v38, 4  ;;  %v3461_v52 = vpack.c.bf16 %v683_v40, %v683_v40  ;;  %v665_v53 = vmax.f32 %v563_v43, 0.0  ;;  %v1314_v31 = vld [vmem:[#allocation2 + $0x9c] sm:$0xf] }
 0x132   : > { %v681_v54 = vmax.f32 %v627_v44, 0.0  ;;  %v956_v55 = vsel %vm4608_vm8, %v948_v4, %v955_v30  ;;  %v1249_v56 = vsel %vm4480_vm2, %v957_v47, %v1248_v41  ;;  %v993_v61 = vshrl.u32 %v3445_v51, 16  ;;  %v578_v30 = vpop.f32.mrf.mxu0  ;;  %v642_v47 = vpop.f32.mrf.mxu1 }
 0x133   : > { %v1092_v57 = vsel %vm4608_vm8, %v1084_v7, %v1091_v48  ;;  %v1305_v58 = vsel %vm4480_vm2, %v1093_v50, %v1304_v42  ;;  %1247 = vst [vmem:[#allocation2 + $0x28] sm:$0xf] %v956_v55  ;;  %1250 = vst [vmem:[#allocation2 + $0x2c] sm:$0x1] %v1249_v56  ;;  %v996_v62 = vshll.u32 %v3445_v51, 16  ;;  %v1129_v63 = vshrl.u32 %v3461_v52, 16 }
 0x134   : > { %1303 = vst [vmem:[#allocation2 + $0x88] sm:$0xf] %v1092_v57  ;;  %1306 = vst [vmem:[#allocation2 + $0x8c] sm:$0x1] %v1305_v58  ;;  %v1132_v0 = vshll.u32 %v3461_v52, 16  ;;  %v3443_v1 = vpack.c.bf16 %v665_v53, %v665_v53  ;;  %v3459_v2 = vpack.c.bf16 %v681_v54, %v681_v54  ;;  %v668_v3 = vmax.f32 %v574_v45, 0.0 }
 0x135   : > { %v684_v4 = vmax.f32 %v638_v46, 0.0  ;;  %v4680_v5 = vrot.slane %v993_v61, 7  ;;  %v1265_v7 = vld [vmem:[#allocation2 + $0x48] sm:$0xf]  ;;  %v4682_v8 = vrot.slane %v1129_v63, 7  ;;  %v566_v9 = vadd.f32 %v4564_v37, %v565_v59 }
 0x136   : > { %v630_v10 = vadd.f32 %v4564_v37, %v629_v60  ;;  %v976_v12 = vshrl.u32 %v3443_v1, 16  ;;  %v979_v13 = vshll.u32 %v3443_v1, 16  ;;  %v1112_v14 = vshrl.u32 %v3459_v2, 16  ;;  %v1269_v50 = vld [vmem:[#allocation2 + $0x50] sm:$0x1] }
 0x137   : > { %v1115_v16 = vshll.u32 %v3459_v2, 16  ;;  %v998_v15 = vor.u32 %v996_v62, %v4680_v5  ;;  %v999_v17 = vrot.slane %v4680_v5, 4  ;;  %v1134_v18 = vor.u32 %v1132_v0, %v4682_v8  ;;  %v1325_v54 = vld [vmem:[#allocation2 + $0xb0] sm:$0x1] }
 0x138   : > { %v1135_v19 = vrot.slane %v4682_v8, 4  ;;  %v4690_v20 = vrot.slane %v976_v12, 7  ;;  %v4692_v21 = vrot.slane %v1112_v14, 7  ;;  %v3446_v22 = vpack.c.bf16 %v668_v3, %v668_v3  ;;  %v3922_v3 = vpop.f32.mrf.mxu0 }
 0x139   : > { %v3462_v23 = vpack.c.bf16 %v684_v4, %v684_v4  ;;  %v1266_v27 = vsel %vm4580_vm7, %v998_v15, %v1265_v7  ;;  %v1322_v28 = vsel %vm4580_vm7, %v1134_v18, %v1321_v11  ;;  %v666_v32 = vmax.f32 %v566_v9, 0.0  ;;  %v3938_v4 = vpop.f32.mrf.mxu1  ;;  %v1318_v11 = vld [vmem:[#allocation2 + $0xa4] sm:$0x1] }
 0x13a   : > { %v682_v33 = vmax.f32 %v630_v10, 0.0  ;;  %1267 = vst [vmem:[#allocation2 + $0x48] sm:$0xf] %v1266_v27  ;;  %1323 = vst [vmem:[#allocation2 + $0xa8] sm:$0xf] %v1322_v28  ;;  %v981_v34 = vor.u32 %v979_v13, %v4690_v20  ;;  %v982_v35 = vrot.slane %v4690_v20, 4  ;;  %v1117_v36 = vor.u32 %v1115_v16, %v4692_v21 }
 0x13b   : > { %v1118_v38 = vrot.slane %v4692_v21, 4  ;;  %v1001_v39 = vshrl.u32 %v3446_v22, 16  ;;  %v1004_v40 = vshll.u32 %v3446_v22, 16  ;;  %v1137_v41 = vshrl.u32 %v3462_v23, 16  ;;  %v1262_v10 = vld [vmem:[#allocation2 + $0x44] sm:$0x1] }
 0x13c   : > { %v1140_v42 = vshll.u32 %v3462_v23, 16  ;;  %v1259_v43 = vsel %vm4580_vm7, %v981_v34, %v1258_v29  ;;  %v1315_v44 = vsel %vm4580_vm7, %v1117_v36, %v1314_v31  ;;  %v3444_v45 = vpack.c.bf16 %v666_v32, %v666_v32 }
 0x13d   : > { %v3460_v46 = vpack.c.bf16 %v682_v33, %v682_v33  ;;  %1260 = vst [vmem:[#allocation2 + $0x3c] sm:$0xf] %v1259_v43  ;;  %1316 = vst [vmem:[#allocation2 + $0x9c] sm:$0xf] %v1315_v44  ;;  %v1003_v48 = vrot.slane %v1001_v39, 7  ;;  %v1139_v51 = vrot.slane %v1137_v41, 7  ;;  %v587_v52 = vadd.f32 %v3921_v25, %v4564_v37  ;;  %v581_v25 = vpop.f32.mrf.mxu0 }
 0x13e   : > { %v651_v53 = vadd.f32 %v3937_v26, %v4564_v37  ;;  %v984_v55 = vshrl.u32 %v3444_v45, 16  ;;  %v987_v56 = vshll.u32 %v3444_v45, 16  ;;  %v579_v18 = vadd.f32 %v4564_v37, %v578_v30  ;;  %v645_v26 = vpop.f32.mrf.mxu1  ;;  %v1279_v41 = vld [vmem:[#allocation2 + $0x60] sm:$0xf] }
 0x13f   : > { %v1120_v57 = vshrl.u32 %v3460_v46, 16  ;;  %v1123_v58 = vshll.u32 %v3460_v46, 16  ;;  %v1006_v59 = vor.u32 %v1004_v40, %v1003_v48  ;;  %v1008_v60 = vrot.slane %v1003_v48, 4 }
 0x140   : > { %v1142_v61 = vor.u32 %v1140_v42, %v1139_v51  ;;  %v1144_v62 = vrot.slane %v1139_v51, 4  ;;  %v986_v63 = vrot.slane %v984_v55, 7  ;;  %v671_v1 = vmax.f32 %v587_v52, 0.0  ;;  %v1335_v42 = vld [vmem:[#allocation2 + $0xc0] sm:$0xf] }
 0x141   : > { %v1122_v0 = vrot.slane %v1120_v57, 7  ;;  %v687_v2 = vmax.f32 %v651_v53, 0.0  ;;  %v1007_v5 = vsel %vm4608_vm8, %v999_v17, %v1006_v59  ;;  %v1270_v7 = vsel %vm4480_vm2, %v1008_v60, %v1269_v50  ;;  %v1272_v60 = vld [vmem:[#allocation2 + $0x54] sm:$0xf] }
 0x142   : > { %v1143_v8 = vsel %vm4608_vm8, %v1135_v19, %v1142_v61  ;;  %v1326_v9 = vsel %vm4480_vm2, %v1144_v62, %v1325_v54  ;;  %1268 = vst [vmem:[#allocation2 + $0x4c] sm:$0xf] %v1007_v5  ;;  %1271 = vst [vmem:[#allocation2 + $0x50] sm:$0x1] %v1270_v7  ;;  %v989_v12 = vor.u32 %v987_v56, %v986_v63  ;;  %v991_v13 = vrot.slane %v986_v63, 4 }
 0x143   : > { %1324 = vst [vmem:[#allocation2 + $0xac] sm:$0xf] %v1143_v8  ;;  %1327 = vst [vmem:[#allocation2 + $0xb0] sm:$0x1] %v1326_v9  ;;  %v1125_v14 = vor.u32 %v1123_v58, %v1122_v0  ;;  %v1127_v16 = vrot.slane %v1122_v0, 4  ;;  %v3449_v15 = vpack.c.bf16 %v671_v1, %v671_v1  ;;  %v3465_v17 = vpack.c.bf16 %v687_v2, %v687_v2 }
 0x144   : > { %v643_v20 = vadd.f32 %v4564_v37, %v642_v47  ;;  %v990_v19 = vsel %vm4608_vm8, %v982_v35, %v989_v12  ;;  %v1263_v21 = vsel %vm4480_vm2, %v991_v13, %v1262_v10  ;;  %v669_v32 = vmax.f32 %v579_v18, 0.0  ;;  %v1328_v61 = vld [vmem:[#allocation2 + $0xb4] sm:$0xf]  ;;  %v1283_v13 = vld [vmem:[#allocation2 + $0x68] sm:$0x1] }
 0x145   : > { %v1126_v22 = vsel %vm4608_vm8, %v1118_v38, %v1125_v14  ;;  %v1319_v23 = vsel %vm4480_vm2, %v1127_v16, %v1318_v11  ;;  %1261 = vst [vmem:[#allocation2 + $0x40] sm:$0xf] %v990_v19  ;;  %1264 = vst [vmem:[#allocation2 + $0x44] sm:$0x1] %v1263_v21  ;;  %v1027_v27 = vshrl.u32 %v3449_v15, 16  ;;  %v1030_v28 = vshll.u32 %v3449_v15, 16 }
 0x146   : > { %1317 = vst [vmem:[#allocation2 + $0xa0] sm:$0xf] %v1126_v22  ;;  %1320 = vst [vmem:[#allocation2 + $0xa4] sm:$0x1] %v1319_v23  ;;  %v1163_v29 = vshrl.u32 %v3465_v17, 16  ;;  %v1166_v31 = vshll.u32 %v3465_v17, 16  ;;  %v590_v34 = vadd.f32 %v3922_v3, %v4564_v37  ;;  %v654_v35 = vadd.f32 %v3938_v4, %v4564_v37 }
 0x147   : > { %v685_v33 = vmax.f32 %v643_v20, 0.0  ;;  %v1029_v36 = vrot.slane %v1027_v27, 7  ;;  %v582_v39 = vadd.f32 %v4564_v37, %v581_v25  ;;  %v646_v40 = vadd.f32 %v4564_v37, %v645_v26  ;;  %v1339_v14 = vld [vmem:[#allocation2 + $0xc8] sm:$0x1] }
 0x148   : > { %v1165_v38 = vrot.slane %v1163_v29, 7  ;;  %v3447_v43 = vpack.c.bf16 %v669_v32, %v669_v32  ;;  %v672_v45 = vmax.f32 %v590_v34, 0.0  ;;  %v688_v46 = vmax.f32 %v654_v35, 0.0  ;;  %v1276_v32 = vld [vmem:[#allocation2 + $0x5c] sm:$0x1] }
 0x149   : > { %v3463_v44 = vpack.c.bf16 %v685_v33, %v685_v33  ;;  %v1032_v30 = vor.u32 %v1030_v28, %v1029_v36  ;;  %v670_v58 = vmax.f32 %v582_v39, 0.0  ;;  %v686_v59 = vmax.f32 %v646_v40, 0.0  ;;  %v1332_v33 = vld [vmem:[#allocation2 + $0xbc] sm:$0x1] }
 0x14a   : > { %v1168_v47 = vor.u32 %v1166_v31, %v1165_v38  ;;  %v1010_v48 = vshrl.u32 %v3447_v43, 16  ;;  %v1013_v50 = vshll.u32 %v3447_v43, 16  ;;  %v3450_v55 = vpack.c.bf16 %v672_v45, %v672_v45 }
 0x14b   : > { %v1146_v51 = vshrl.u32 %v3463_v44, 16  ;;  %v1149_v52 = vshll.u32 %v3463_v44, 16  ;;  %v1280_v53 = vsel %vm4580_vm7, %v1032_v30, %v1279_v41  ;;  %v3466_v37 = vpack.c.bf16 %v688_v46, %v688_v46 }
 0x14c   : > { %v1336_v54 = vsel %vm4580_vm7, %v1168_v47, %v1335_v42  ;;  %1281 = vst [vmem:[#allocation2 + $0x60] sm:$0xf] %v1280_v53  ;;  %v1012_v56 = vrot.slane %v1010_v48, 7  ;;  %v1035_v62 = vshrl.u32 %v3450_v55, 16  ;;  %v1038_v2 = vshll.u32 %v3450_v55, 16 }
 0x14d   : > { %1337 = vst [vmem:[#allocation2 + $0xc0] sm:$0xf] %v1336_v54  ;;  %v1148_v57 = vrot.slane %v1146_v51, 7  ;;  %v1171_v63 = vshrl.u32 %v3466_v37, 16  ;;  %v1174_v3 = vshll.u32 %v3466_v37, 16  ;;  %v3448_v7 = vpack.c.bf16 %v670_v58, %v670_v58 }
 0x14e   : > { %v1015_v0 = vor.u32 %v1013_v50, %v1012_v56  ;;  %v1037_v4 = vrot.slane %v1035_v62, 7  ;;  %v3464_v8 = vpack.c.bf16 %v686_v59, %v686_v59  ;;  %v1033_v9 = vrot.slane %v1029_v36, 4 }
 0x14f   : > { %v1151_v1 = vor.u32 %v1149_v52, %v1148_v57  ;;  %v1173_v5 = vrot.slane %v1171_v63, 7  ;;  %v1169_v10 = vrot.slane %v1165_v38, 4  ;;  %v1018_v20 = vshrl.u32 %v3448_v7, 16 }
 0x150   : > { %v1273_v11 = vsel %vm4580_vm7, %v1015_v0, %v1272_v60  ;;  %v1040_v16 = vor.u32 %v1038_v2, %v1037_v4  ;;  %v1042_v15 = vrot.slane %v1037_v4, 4  ;;  %v1154_v19 = vshrl.u32 %v3464_v8, 16 }
 0x151   : > { %v1329_v12 = vsel %vm4580_vm7, %v1151_v1, %v1328_v61  ;;  %1274 = vst [vmem:[#allocation2 + $0x54] sm:$0xf] %v1273_v11  ;;  %v1176_v17 = vor.u32 %v1174_v3, %v1173_v5  ;;  %v1178_v18 = vrot.slane %v1173_v5, 4  ;;  %v1020_v25 = vrot.slane %v1018_v20, 7 }
 0x152   : > { %1330 = vst [vmem:[#allocation2 + $0xb4] sm:$0xf] %v1329_v12  ;;  %v1041_v21 = vsel %vm4608_vm8, %v1033_v9, %v1040_v16  ;;  %v1284_v22 = vsel %vm4480_vm2, %v1042_v15, %v1283_v13  ;;  %v1021_v26 = vshll.u32 %v3448_v7, 16  ;;  %v1156_v27 = vrot.slane %v1154_v19, 7 }
 0x153   : > { %v1177_v6 = vsel %vm4608_vm8, %v1169_v10, %v1176_v17  ;;  %v1340_v23 = vsel %vm4480_vm2, %v1178_v18, %v1339_v14  ;;  %1282 = vst [vmem:[#allocation2 + $0x64] sm:$0xf] %v1041_v21  ;;  %1285 = vst [vmem:[#allocation2 + $0x68] sm:$0x1] %v1284_v22  ;;  %v1157_v28 = vshll.u32 %v3464_v8, 16  ;;  %v1016_v29 = vrot.slane %v1012_v56, 4 }
 0x154   : > { %1338 = vst [vmem:[#allocation2 + $0xc4] sm:$0xf] %v1177_v6  ;;  %1341 = vst [vmem:[#allocation2 + $0xc8] sm:$0x1] %v1340_v23  ;;  %v1152_v31 = vrot.slane %v1148_v57, 4  ;;  %v1023_v34 = vor.u32 %v1021_v26, %v1020_v25  ;;  %v1025_v35 = vrot.slane %v1020_v25, 4 }
 0x155   : > { %v1159_v36 = vor.u32 %v1157_v28, %v1156_v27  ;;  %v1161_v38 = vrot.slane %v1156_v27, 4 }
 0x156   : > { %v1024_v39 = vsel %vm4608_vm8, %v1016_v29, %v1023_v34  ;;  %v1277_v40 = vsel %vm4480_vm2, %v1025_v35, %v1276_v32 }
 0x157   : > { %v1160_v41 = vsel %vm4608_vm8, %v1152_v31, %v1159_v36  ;;  %v1333_v42 = vsel %vm4480_vm2, %v1161_v38, %v1332_v33  ;;  %1275 = vst [vmem:[#allocation2 + $0x58] sm:$0xf] %v1024_v39  ;;  %1278 = vst [vmem:[#allocation2 + $0x5c] sm:$0x1] %v1277_v40 }
 0x158   : > { %1331 = vst [vmem:[#allocation2 + $0xb8] sm:$0xf] %v1160_v41  ;;  %1334 = vst [vmem:[#allocation2 + $0xbc] sm:$0x1] %v1333_v42 }
 0x159 PF: > { %v4101_v43 = vld [vmem:[%s5542_s3 + $0x78] sm:$0xff]   ;;  %v4105_v45 = vld [vmem:[%s5542_s3 + $0x70] sm:$0xff]   ;;  %v4109_v48 = vld [vmem:[%s5542_s3 + $0x68] sm:$0xff]   ;;  %s3467_s17 = smul.u32 96, %s4293_s27  ;;  %vm1448_vm9 = vsmask.f32 7424 }
 0x15a   : > { %v4102_v44 = vld [vmem:[%s5542_s3 + $0x38] sm:$0xff]   ;;  %3555 = vmatprep.subr.bf16.mxu0 %v4101_v43  ;;  %v4106_v46 = vld [vmem:[%s5542_s3 + $0x30] sm:$0xff]   ;;  %v4110_v50 = vld [vmem:[%s5542_s3 + $0x28] sm:$0xff]   ;;  %vm1553_vm10 = vcmask 1046528   ;;  %s3429_s0 = sshll.u32 %s4293_s27, 4  ;;  %s3430_s20 = sshll.u32 %s4297_s28, 5 }
 0x15b   : > { %v4103_v49 = vld [vmem:[%s5542_s3 + $0xf8] sm:$0xff]   ;;  %3556 = vmatpush3.bf16.msra.mxu0 %v4102_v44  ;;  %v4107_v30 = vld [vmem:[%s5542_s3 + $0xf0] sm:$0xff]   ;;  %v4111_v51 = vld [vmem:[%s5542_s3 + $0xe8] sm:$0xff]   ;;  %s4848_s18 = scalar_lea.vmem [#allocation2], %s3467_s17  ;;  %s3143_s16 = sshll.u32 %s4436_s13, 4  ;;  %s5483_s16 = int_to_ptr.vmem [resolvable:$true] %s3143_s16 }
 0x15c   : > { %v4104_v24 = vld [vmem:[%s5542_s3 + $0xb8] sm:$0xff]   ;;  %3619 = vmatprep.subr.bf16.mxu1 %v4103_v49  ;;  %3557 = vmatprep.subr.bf16.mxu0 %v4105_v45  ;;  %v4108_v47 = vld [vmem:[%s5542_s3 + $0xb0] sm:$0xff]   ;;  %v4112_v52 = vld [vmem:[%s5542_s3 + $0xa8] sm:$0xff]   ;;  %s5622_s22 = sand.u32 1, %s4285_s25  }
 0x15d   : > { %3620 = vmatpush3.bf16.msra.mxu1 %v4104_v24  ;;  %v4113_v53 = vld [vmem:[%s5542_s3 + $0x60] sm:$0xff]   ;;  %v4117_v56 = vld [vmem:[%s5542_s3 + $0x58] sm:$0xff]   ;;  %v4121_v60 = vld [vmem:[%s5542_s3 + $0x50] sm:$0xff]   ;;  %s5488_s1 = scalar_lea.sflag [#allocation4], %s5622_s22 }
 0x15e   : > { %3621 = vmatprep.subr.bf16.mxu1 %v4107_v30  ;;  %v4114_v54 = vld [vmem:[%s5542_s3 + $0x20] sm:$0xff]   ;;  %v4118_v57 = vld [vmem:[%s5542_s3 + $0x18] sm:$0xff]   ;;  %v4122_v61 = vld [vmem:[%s5542_s3 + $0x10] sm:$0xff]  }
 0x15f   : > { %3558 = vmatpush3.bf16.msra.mxu0 %v4106_v46  ;;  %v4115_v55 = vld [vmem:[%s5542_s3 + $0xe0] sm:$0xff]   ;;  %v4119_v58 = vld [vmem:[%s5542_s3 + $0xd8] sm:$0xff]   ;;  %v4123_v62 = vld [vmem:[%s5542_s3 + $0xd0] sm:$0xff]  }
 0x160   : > { %3559 = vmatprep.subr.bf16.mxu0 %v4109_v48  ;;  %v4116_v37 = vld [vmem:[%s5542_s3 + $0xa0] sm:$0xff]   ;;  %v4120_v59 = vld [vmem:[%s5542_s3 + $0x98] sm:$0xff]   ;;  %v4124_v63 = vld [vmem:[%s5542_s3 + $0x90] sm:$0xff]  }
 0x161   : > { %3622 = vmatpush3.bf16.msra.mxu1 %v4108_v47  ;;  %v4125_v0 = vld [vmem:[%s5542_s3 + $0x48] sm:$0xff]   ;;  %v4129_v4 = vld [vmem:[%s5542_s3 + $0x40] sm:$0xff]   ;;  %v4135_v14 = vld [vmem:[%s5542_s3 + $0x178] sm:$0xff]  }
 0x162   : > { %3623 = vmatprep.subr.bf16.mxu1 %v4111_v51  ;;  %v4126_v1 = vld [vmem:[%s5542_s3 + $0x8] sm:$0xff]   ;;  %v4130_v5 = vld [vmem:[%s5542_s3] sm:$0xff]   ;;  %v4137_v21 = vld [vmem:[%s5542_s3 + $0x138] sm:$0xff]  }
 0x163   : > { %3560 = vmatpush3.bf16.msra.mxu0 %v4110_v50  ;;  %v4127_v2 = vld [vmem:[%s5542_s3 + $0xc8] sm:$0xff]   ;;  %v4131_v7 = vld [vmem:[%s5542_s3 + $0xc0] sm:$0xff]   ;;  %v4138_v22 = vld [vmem:[%s4848_s18 + $0x14] ss:$0 sps:$4 sm:$0x11]  }
 0x164   : > { %3561 = vmatprep.subr.bf16.mxu0 %v4113_v53  ;;  %v4128_v3 = vld [vmem:[%s5542_s3 + $0x88] sm:$0xff]   ;;  %v4132_v8 = vld [vmem:[%s4848_s18] sm:$0xff]   ;;  %v1469_v28 = vshll.u32 %v4138_v22, 16  ;;  %v4139_v29 = vld [vmem:[%s5542_s3 + $0x170] sm:$0xff]   ;;  %v1558_v34 = vrot.slane %v4138_v22, 1 }
 0x165   : > { %3624 = vmatpush3.bf16.msra.mxu1 %v4112_v52  ;;  %v4133_v9 = vld [vmem:[%s4848_s18 + $0x8] ss:$0 sps:$4 sm:$0x11]   ;;  %v4134_v10 = vld [vmem:[%s5542_s3 + $0x80] sm:$0xff]   ;;  %v1450_v11 = vshrl.u32 %v4132_v8, 16  ;;  %v1452_v12 = vshll.u32 %v4132_v8, 16 }
 0x166   : > { %3625 = vmatprep.subr.bf16.mxu1 %v4115_v55  ;;  %v1457_v13 = vshll.u32 %v4133_v9, 16  ;;  %v4136_v17 = vld [vmem:[%s4848_s18 + $0xc] sm:$0xff]   ;;  %v1554_v18 = vrot.slane %v4132_v8, 1  ;;  %v1555_v20 = vrot.slane %v4133_v9, 1  ;;  %v4869_v31 = vld [vmem:[%s4848_s18 + $0x18] sm:$0xff]   ;;  %v1471_v36 = vrot.slane %v1469_v28, 1 }
 0x167   : > { %3562 = vmatpush3.bf16.msra.mxu0 %v4114_v54  ;;  %v1454_v16 = vrot.slane %v1452_v12, 1  ;;  %2350 = vmatprep.mubr.bf16.mxu1 %v4136_v17  ;;  %v1462_v6 = vshrl.u32 %v4136_v17, 16  ;;  %v1464_v23 = vshll.u32 %v4136_v17, 16  ;;  %v4141_v32 = vld [vmem:[%s5542_s3 + $0x130] sm:$0xff]   ;;  %v1557_v33 = vrot.slane %v4136_v17, 1  ;;  %v4143_v43 = vld [vmem:[%s5542_s3 + $0x168] sm:$0xff]  }
 0x168   : > { %3563 = vmatprep.subr.bf16.mxu0 %v4117_v56  ;;  %v1459_v15 = vrot.slane %v1457_v13, 1  ;;  %v1556_v25 = vsel %vm1553_vm10, %v1554_v18, %v1555_v20  ;;  %v4142_v38 = vld [vmem:[%s4848_s18 + $0x20] ss:$0 sps:$4 sm:$0x11]   ;;  %v1474_v39 = vshrl.u32 %v4869_v31, 16  ;;  %v1476_v40 = vshll.u32 %v4869_v31, 16 }
 0x169   : > { %3626 = vmatpush3.bf16.msra.mxu1 %v4116_v37  ;;  %v1455_v19 = vor.u32 %v1454_v16, %v1450_v11  ;;  %v1466_v27 = vrot.slane %v1464_v23, 1  ;;  %v1481_v42 = vshll.u32 %v4142_v38, 16  ;;  %v4886_v44 = vsel %vm1553_vm10, %v1557_v33, %v1558_v34  ;;  %v4889_v24 = vld [vmem:[%s4848_s18 + $0x24] sm:$0xff]   ;;  %v4146_v48 = vld [vmem:[%s4848_s18 + $0x2c] ss:$0 sps:$4 sm:$0x11]  }
 0x16a   : > { %3627 = vmatprep.subr.bf16.mxu1 %v4119_v58  ;;  %v1478_v49 = vrot.slane %v1476_v40, 1  ;;  %v4145_v46 = vld [vmem:[%s5542_s3 + $0x128] sm:$0xff]   ;;  %v1560_v30 = vrot.slane %v4869_v31, 1  ;;  %v1486_v50 = vshrl.u32 %v4889_v24, 16  ;;  %v1488_v51 = vshll.u32 %v4889_v24, 16  ;;  %v4147_v52 = vld [vmem:[%s5542_s3 + $0x160] sm:$0xff]  }
 0x16b   : > { %3564 = vmatpush3.bf16.msra.mxu0 %v4118_v57  ;;  %v1460_v26 = vsel %vm1448_vm9, %v1455_v19, %v1459_v15  ;;  %v1467_v35 = vor.u32 %v1466_v27, %v1462_v6  ;;  %v1483_v45 = vrot.slane %v1481_v42, 1  ;;  %v1561_v54 = vrot.slane %v4142_v38, 1  ;;  %v4907_v56 = vld [vmem:[%s4848_s18 + $0x30] sm:$0xff]   ;;  %v4149_v57 = vld [vmem:[%s5542_s3 + $0x120] sm:$0xff]   ;;  %v4163_v28 = vld [vmem:[%s5542_s3 + $0x1a8] sm:$0xff]  }
 0x16c   : > { %3565 = vmatprep.subr.bf16.mxu0 %v4121_v60  ;;  %2253 = vmatprep.mubr.bf16.mxu0 %v1460_v26  ;;  %v1479_v47 = vor.u32 %v1478_v49, %v1474_v39  ;;  %v1490_v55 = vrot.slane %v1488_v51, 1  ;;  %v1493_v37 = vshll.u32 %v4146_v48, 16  ;;  %v4150_v58 = vld [vmem:[%s4848_s18 + $0x38] ss:$0 sps:$4 sm:$0x11]   ;;  %v1564_v9 = vrot.slane %v4146_v48, 1 }
 0x16d   : > { %3628 = vmatpush3.bf16.msra.mxu1 %v4120_v59  ;;  %v4879_v41 = vsel %vm1448_vm9, %v1467_v35, %v1471_v36  ;;  %v4156_v11 = vld [vmem:[%s5542_s3 + $0x1f0] sm:$0xff]   ;;  %v4946_v12 = vld [vmem:[%s4848_s18 + $0x44] ss:$0 sps:$4 sm:$0x11]   ;;  %v1566_v18 = vrot.slane %v4907_v56, 1  ;;  %v4162_v26 = vld [vmem:[%s5542_s3 + $0x1e8] sm:$0xff]  }
 0x16e   : > { %3629 = vmatprep.subr.bf16.mxu1 %v4123_v62  ;;  %v4903_v53 = vsel %vm1448_vm9, %v1479_v47, %v1483_v45  ;;  %v1491_v59 = vor.u32 %v1490_v55, %v1486_v50  ;;  %v1495_v60 = vrot.slane %v1493_v37, 1  ;;  %v4916_v62 = vsel %vm1553_vm10, %v1560_v30, %v1561_v54  ;;  %v4158_v15 = vld [vmem:[%s5542_s3 + $0x1b0] sm:$0xff]   ;;  %v4166_v36 = vld [vmem:[%s5542_s3 + $0x1a0] sm:$0xff]   ;;  %v4167_v40 = vld [vmem:[%s5542_s3 + $0x148] sm:$0xff]  }
 0x16f   : > { %3566 = vmatpush3.bf16.msra.mxu0 %v4122_v61  ;;  %v1500_v61 = vshll.u32 %v4907_v56, 16  ;;  %v4159_v20 = vld [vmem:[%s5542_s3 + $0x150] sm:$0xff]   ;;  %v1567_v27 = vrot.slane %v4150_v58, 1  ;;  %v4169_v45 = vld [vmem:[%s5542_s3 + $0x108] sm:$0xff]   ;;  %v4170_v47 = vld [vmem:[%s5542_s3 + $0x1d8] sm:$0xff]   ;;  %v1570_v48 = vrot.slane %v4946_v12, 1 }
 0x170   : > { %3567 = vmatprep.subr.bf16.mxu0 %v4125_v0  ;;  %v1563_v0 = vrot.slane %v4889_v24, 1  ;;  %v4161_v6 = vld [vmem:[%s5542_s3 + $0x110] sm:$0xff]   ;;  %v4171_v50 = vld [vmem:[%s5542_s3 + $0x198] sm:$0xff]  }
 0x171   : > { %3630 = vmatpush3.bf16.msra.mxu1 %v4124_v63  ;;  %v4151_v63 = vld [vmem:[%s5542_s3 + $0x158] sm:$0xff]   ;;  %v4989_v38 = vsel %vm1553_vm10, %v1566_v18, %v1567_v27  ;;  %v4172_v51 = vld [vmem:[%s5542_s3 + $0x1d0] sm:$0xff]  }
 0x172   : > { %3631 = vmatprep.subr.bf16.mxu1 %v4127_v2  ;;  %v1505_v2 = vshll.u32 %v4150_v58, 16 }
 0x173   : > { %3568 = vmatpush3.bf16.msra.mxu0 %v4126_v1  ;;  %v1498_v1 = vshrl.u32 %v4907_v56, 16 }
 0x174   : > { %3569 = vmatprep.subr.bf16.mxu0 %v4129_v4  ;;  %v4153_v4 = vld [vmem:[%s5542_s3 + $0x118] sm:$0xff]   ;;  %v1507_v16 = vrot.slane %v1505_v2, 1 }
 0x175   : > { %3632 = vmatpush3.bf16.msra.mxu1 %v4128_v3  ;;  %v4924_v3 = vld [vmem:[%s4848_s18 + $0x3c] sm:$0xff]  }
 0x176   : > { %3633 = vmatprep.subr.bf16.mxu1 %v4131_v7  ;;  %v1502_v7 = vrot.slane %v1500_v61, 1  ;;  %v1512_v13 = vshll.u32 %v4924_v3, 16  ;;  %v1510_v19 = vshrl.u32 %v4924_v3, 16  ;;  %v1569_v39 = vrot.slane %v4924_v3, 1 }
 0x177   : > { %3570 = vmatpush3.bf16.msra.mxu0 %v4130_v5  ;;  %v4931_v5 = vsel %vm1448_vm9, %v1491_v59, %v1495_v60  ;;  %v4175_v59 = vld [vmem:[%s5542_s3 + $0x140] sm:$0xff]  }
 0x178   : > { %3683 = vmatprep.subr.bf16.mxu0 %v4135_v14  ;;  %v1503_v14 = vor.u32 %v1502_v7, %v1498_v1  ;;  %v1514_v22 = vrot.slane %v1512_v13, 1  ;;  %v5025_v58 = vsel %vm1553_vm10, %v1569_v39, %v1570_v48  ;;  %v4182_v13 = vld [vmem:[%s5542_s3 + $0x238] sm:$0xff]  }
 0x179   : > { %3634 = vmatpush3.bf16.msra.mxu1 %v4134_v10  ;;  %v4155_v10 = vld [vmem:[%s5542_s3 + $0x1b8] sm:$0xff]  }
 0x17a   : > { %2254 = vmatmul.mubr.bf16.vlgmr.msra.gmra.mxu0 %v4132_v8  ;;  %v4154_v8 = vld [vmem:[%s5542_s3 + $0x1f8] sm:$0xff]   ;;  %v4968_v23 = vsel %vm1448_vm9, %v1503_v14, %v1507_v16  ;;  %v1515_v34 = vor.u32 %v1514_v22, %v1510_v19  ;;  %v4181_v16 = vld [vmem:[%s5542_s3 + $0x180] sm:$0xff]  }
 0x17b   : > { %3684 = vmatpush3.bf16.msra.mxu0 %v4137_v21  ;;  %2261 = vmatprep.mubr.bf16.mxu0 %v4879_v41  ;;  %v4961_v21 = vld [vmem:[%s4848_s18 + $0x48] sm:$0xff]  }
 0x17c   : > { %2351 = vmatmul.mubr.bf16.vlgmr.msra.gmra.mxu1 %v1556_v25  ;;  %3685 = vmatprep.subr.bf16.mxu0 %v4139_v29  ;;  %v1517_v25 = vshll.u32 %v4946_v12, 16  ;;  %v4164_v29 = vld [vmem:[%s5542_s3 + $0x1e0] sm:$0xff]   ;;  %v1524_v33 = vshll.u32 %v4961_v21, 16  ;;  %v1522_v42 = vshrl.u32 %v4961_v21, 16  ;;  %v1572_v60 = vrot.slane %v4961_v21, 1 }
 0x17d   : > { %2358 = vmatprep.mubr.bf16.mxu1 %v4869_v31  ;;  %3747 = vmatprep.subr.bf16.mxu1 %v4154_v8  ;;  %v4179_v8 = vld [vmem:[%s5542_s3 + $0x188] sm:$0xff]  }
 0x17e   : > { %3748 = vmatpush3.bf16.msra.mxu1 %v4155_v10  ;;  %v1519_v35 = vrot.slane %v1517_v25, 1  ;;  %v1526_v49 = vrot.slane %v1524_v33, 1  ;;  %v5052_v10 = vld [vmem:[%s4848_s18 + $0x60] sm:$0xff]   ;;  %v4189_v25 = vld [vmem:[%s4848_s18 + $0x68] ss:$0 sps:$4 sm:$0x11]  }
 0x17f   : > { %3686 = vmatpush3.bf16.msra.mxu0 %v4141_v32  ;;  %3749 = vmatprep.subr.bf16.mxu1 %v4156_v11  ;;  %v4165_v32 = vld [vmem:[%s4848_s18 + $0x50] ss:$0 sps:$4 sm:$0x11]   ;;  %v1596_v22 = vshrl.u32 %v5052_v10, 16 }
 0x180   : > { %3687 = vmatprep.subr.bf16.mxu0 %v4143_v43  ;;  %v4997_v43 = vld [vmem:[%s4848_s18 + $0x54] sm:$0xff]   ;;  %v1529_v30 = vshll.u32 %v4165_v32, 16  ;;  %v1527_v55 = vor.u32 %v1526_v49, %v1522_v42  ;;  %v1573_v7 = vrot.slane %v4165_v32, 1  ;;  %v1609_v32 = vrot.slane %v4189_v25, 1  ;;  %v5079_v33 = vld [vmem:[%s4848_s18 + $0x6c] sm:$0xff]  }
 0x181   : > { %v1536_v54 = vshll.u32 %v4997_v43, 16  ;;  %v1534_v61 = vshrl.u32 %v4997_v43, 16  ;;  %v1622_v39 = vshrl.u32 %v5079_v33, 16  ;;  %v1634_v49 = vrot.slane %v5079_v33, 1 }
 0x182   : > { %2262 = vmatmul.mubr.bf16.gmra.mxu0 %v4136_v17  ;;  %v4953_v17 = vsel %vm1553_vm10, %v1563_v0, %v1564_v9  ;;  %3750 = vmatpush3.bf16.msra.mxu1 %v4158_v15  ;;  %v1531_v37 = vrot.slane %v1529_v30, 1  ;;  %v4177_v0 = vld [vmem:[%s5542_s3 + $0x100] sm:$0xff]   ;;  %v5058_v14 = vsel %vm1553_vm10, %v1572_v60, %v1573_v7  ;;  %v1598_v15 = vshll.u32 %v5052_v10, 16  ;;  %v4204_v60 = vld [vmem:[%s5544_s5 + $0x10] sm:$0xff]  }
 0x183   : > { %2269 = vmatprep.mubr.bf16.mxu0 %v4903_v53  ;;  %3688 = vmatpush3.bf16.msra.mxu0 %v4145_v46  ;;  %v5004_v46 = vsel %vm1448_vm9, %v1515_v34, %v1519_v35  ;;  %v4180_v9 = vld [vmem:[%s5542_s3 + $0x1c0] sm:$0xff]   ;;  %v4192_v34 = vld [vmem:[%s4848_s18 + $0x74] ss:$0 sps:$4 sm:$0x11]  }
 0x184   : > { %2359 = vmatmul.mubr.bf16.gmra.mxu1 %v4886_v44  ;;  %3689 = vmatprep.subr.bf16.mxu0 %v4147_v52  ;;  %v4173_v52 = vld [vmem:[%s4848_s18 + $0x5c] ss:$0 sps:$4 sm:$0x11]   ;;  %v5037_v1 = vsel %vm1448_vm9, %v1527_v55, %v1531_v37  ;;  %v1629_v42 = vshll.u32 %v4192_v34, 16  ;;  %v4203_v37 = vld [vmem:[%s5544_s5 + $0x50] sm:$0xff]   ;;  %s3385_s18 = sshll.u32 %s4293_s27, 7 }
 0x185   : > { %2366 = vmatprep.mubr.bf16.mxu1 %v4889_v24  ;;  %3751 = vmatprep.subr.bf16.mxu1 %v4162_v26  ;;  %v1541_v2 = vshll.u32 %v4173_v52, 16  ;;  %v1576_v19 = vrot.slane %v4173_v52, 1  ;;  %v1608_v26 = vrot.slane %v5052_v10, 1  ;;  %v4202_v55 = vld [vmem:[%s5544_s5 + $0x18] sm:$0xff]   ;;  %s2731_s21 = sshra.s32 %s3385_s18, 3  ;;  %s3140_s18 = sadd.s32 %s3430_s20, %s3429_s0 }
 0x186   : > { %3752 = vmatpush3.bf16.msra.mxu1 %v4163_v28  ;;  %v1631_v48 = vrot.slane %v1629_v42, 1  ;;  %s3386_s23 = sshll.u32 %s2731_s21, 2  ;;  %s3431_s10 = sshll.u32 %s3140_s18, 6 }
 0x187   : > { %3690 = vmatpush3.bf16.msra.mxu0 %v4149_v57  ;;  %3753 = vmatprep.subr.bf16.mxu1 %v4164_v29  ;;  %v4174_v57 = vld [vmem:[%s5542_s3 + $0x190] sm:$0xff]   ;;  %v1543_v12 = vrot.slane %v1541_v2, 1  ;;  %v1603_v29 = vshll.u32 %v4189_v25, 16  ;;  %s5212_s17 = scalar_lea.vmem %s4434_s12, %s3386_s23  ;;  %s5481_s28 = scalar_lea.hbm %s5546_s7, %s3431_s10 }
 0x188   : > { %3691 = vmatprep.subr.bf16.mxu0 %v4151_v63  ;;  %v1538_v63 = vrot.slane %v1536_v54, 1  ;;  %v4183_v54 = vld [vmem:[%s5542_s3 + $0x230] sm:$0xff]   ;;  %s4217_s23 = scalar_lea.vmem %s5483_s16, 1024 }
 0x189   : > { %v1605_v35 = vrot.slane %v1603_v29, 1  ;;  %p4218_p0 = scmp.ne.s32.totalorder %s5483_s16, %s4217_s23 }
 0x18a   : > { %2270 = vmatmul.mubr.bf16.gmra.mxu0 %v4869_v31  ;;  %3754 = vmatpush3.bf16.msra.mxu1 %v4166_v36  ;;  %v1539_v11 = vor.u32 %v1538_v63, %v1534_v61  ;;  %v5083_v36 = vsel %vm1553_vm10, %v1608_v26, %v1609_v32  ;;  %v5192_v63 = vld [vmem:[%s5543_s4] ss:$0 sm:$0xff] }
 0x18b   : > { %2277 = vmatprep.mubr.bf16.mxu0 %v4931_v5  ;;  %3692 = vmatpush3.bf16.msra.mxu0 %v4153_v4  ;;  %v4178_v4 = vld [vmem:[%s5542_s3 + $0x1c8] sm:$0xff]   ;;  %p4219_p1 = pnand %p4218_p0, %p4406_p3 }
 0x18c   : > { %2367 = vmatmul.mubr.bf16.gmra.mxu1 %v4916_v62  ;;  %3693 = vmatprep.subr.bf16.mxu0 %v4159_v20  ;;  %v5066_v18 = vsel %vm1448_vm9, %v1539_v11, %v1543_v12  ;;  %v1575_v20 = vrot.slane %v4997_v43, 1 }
 0x18d   : > { %2374 = vmatprep.mubr.bf16.mxu1 %v4907_v56  ;;  %3755 = vmatprep.subr.bf16.mxu1 %v4170_v47  ;;  %p4220_p2 = pneg %p4219_p1 }
 0x18e   : > { %3756 = vmatpush3.bf16.msra.mxu1 %v4171_v50  ;;  %v5076_v27 = vsel %vm1553_vm10, %v1575_v20, %v1576_v19  ;;  %v4208_v19 = vld [vmem:[%s5544_s5] sm:$0xff]  }
 0x18f   : > { %3694 = vmatpush3.bf16.msra.mxu0 %v4161_v6  ;;  %3757 = vmatprep.subr.bf16.mxu1 %v4172_v51  ;;  %v1600_v6 = vrot.slane %v1598_v15, 1  ;;  %v4207_v15 = vld [vmem:[%s5544_s5 + $0x40] sm:$0xff]  }
 0x190   : > { %3695 = vmatprep.subr.bf16.mxu0 %v4167_v40  ;;  %v1624_v40 = vshll.u32 %v5079_v33, 16 }
 0x191   : > { %v1601_v28 = vor.u32 %v1600_v6, %v1596_v22 }
 0x192   : > { %2278 = vmatmul.mubr.bf16.gmra.mxu0 %v4889_v24  ;;  %3758 = vmatpush3.bf16.msra.mxu1 %v4174_v57  ;;  %v1626_v47 = vrot.slane %v1624_v40, 1 }
 0x193   : > { %2285 = vmatprep.mubr.bf16.mxu0 %v4968_v23  ;;  %3696 = vmatpush3.bf16.msra.mxu0 %v4169_v45  ;;  %v1635_v45 = vrot.slane %v4192_v34, 1  ;;  %v1606_v30 = vsel %vm1448_vm9, %v1601_v28, %v1605_v35 }
 0x194   : > { %2375 = vmatmul.mubr.bf16.gmra.mxu1 %v4953_v17  ;;  %3697 = vmatprep.subr.bf16.mxu0 %v4175_v59  ;;  %v1627_v51 = vor.u32 %v1626_v47, %v1622_v39 }
 0x195   : > { %2382 = vmatprep.mubr.bf16.mxu1 %v4924_v3  ;;  %3759 = vmatprep.subr.bf16.mxu1 %v4178_v4  ;;  %v5093_v50 = vsel %vm1553_vm10, %v1634_v49, %v1635_v45  ;;  %v4205_v4 = vld [vmem:[%s5544_s5 + $0x48] sm:$0xff]  }
 0x196   : > { %3760 = vmatpush3.bf16.msra.mxu1 %v4179_v8  ;;  %v1632_v52 = vsel %vm1448_vm9, %v1627_v51, %v1631_v48  ;;  %v4211_v51 = vld [vmem:[%s5212_s17 + $0x10] sm:$0xff]  }
 0x197   : > { %3698 = vmatpush3.bf16.msra.mxu0 %v4177_v0  ;;  %3761 = vmatprep.subr.bf16.mxu1 %v4180_v9  ;;  %v4206_v9 = vld [vmem:[%s5544_s5 + $0x8] sm:$0xff]  }
 0x198   : > { %3939 = vmatprep.subr.bf16.mxu0 %v4182_v13 }
 0x19a   : > { %2286 = vmatmul.mubr.bf16.gmra.mxu0 %v4907_v56  ;;  %3762 = vmatpush3.bf16.msra.mxu1 %v4181_v16 }
 0x19b   : > { %2293 = vmatprep.mubr.bf16.mxu0 %v5004_v46 }
 0x19c   : > { %2383 = vmatmul.mubr.bf16.gmra.mxu1 %v4989_v38 }
 0x19d   : > { %2390 = vmatprep.mubr.bf16.mxu1 %v4961_v21 }
 0x1a2   : > { %2294 = vmatmul.mubr.bf16.gmra.mxu0 %v4924_v3 }
 0x1a3   : > { %2301 = vmatprep.mubr.bf16.mxu0 %v5037_v1 }
 0x1a4   : > { %2391 = vmatmul.mubr.bf16.gmra.mxu1 %v5025_v58 }
 0x1a5   : > { %2398 = vmatprep.mubr.bf16.mxu1 %v4997_v43 }
 0x1aa   : > { %2302 = vmatmul.mubr.bf16.gmra.mxu0 %v4961_v21 }
 0x1ab   : > { %2309 = vmatprep.mubr.bf16.mxu0 %v5066_v18 }
 0x1ac   : > { %2399 = vmatmul.mubr.bf16.gmra.mxu1 %v5058_v14 }
 0x1ad   : > { %2406 = vmatprep.mubr.bf16.mxu1 %v5052_v10 }
 0x1b2   : > { %2310 = vmatmul.mubr.bf16.gmra.mxu0 %v4997_v43 }
 0x1b3   : > { %2447 = vmatprep.mubr.bf16.mxu0 %v4886_v44  ;;  %v4184_v44 = vld [vmem:[%s5542_s3 + $0x228] sm:$0xff]  }
 0x1b4   : > { %2407 = vmatmul.mubr.bf16.gmra.mxu1 %v5076_v27 }
 0x1b5   : > { %2544 = vmatprep.mubr.bf16.mxu1 %v4903_v53 }
 0x1ba   : > { %2448 = vmatmul.mubr.bf16.vlgmr.msra.gmra.mxu0 %v4879_v41  ;;  %v4186_v41 = vld [vmem:[%s5542_s3 + $0x218] sm:$0xff]  }
 0x1bb   : > { %3940 = vmatpush3.bf16.msra.mxu0 %v4182_v13  ;;  %2455 = vmatprep.mubr.bf16.mxu0 %v4916_v62 }
 0x1bc   : > { %2545 = vmatmul.mubr.bf16.vlgmr.msra.gmra.mxu1 %v4869_v31  ;;  %3941 = vmatprep.subr.bf16.mxu0 %v4183_v54  ;;  %v4185_v31 = vld [vmem:[%s5542_s3 + $0x220] sm:$0xff]  }
 0x1bd   : > { %2552 = vmatprep.mubr.bf16.mxu1 %v4931_v5 }
 0x1bf   : > { %3942 = vmatpush3.bf16.msra.mxu0 %v4183_v54 }
 0x1c0   : > { %3943 = vmatprep.subr.bf16.mxu0 %v4184_v44 }
 0x1c2   : > { %2456 = vmatmul.mubr.bf16.gmra.mxu0 %v4903_v53  ;;  %v4188_v53 = vld [vmem:[%s5542_s3 + $0x208] sm:$0xff]  }
 0x1c3   : > { %2463 = vmatprep.mubr.bf16.mxu0 %v4953_v17  ;;  %3944 = vmatpush3.bf16.msra.mxu0 %v4184_v44 }
 0x1c4   : > { %2553 = vmatmul.mubr.bf16.gmra.mxu1 %v4889_v24  ;;  %3945 = vmatprep.subr.bf16.mxu0 %v4185_v31  ;;  %v4187_v24 = vld [vmem:[%s5542_s3 + $0x210] sm:$0xff]  }
 0x1c5   : > { %2560 = vmatprep.mubr.bf16.mxu1 %v4968_v23 }
 0x1c7   : > { %3946 = vmatpush3.bf16.msra.mxu0 %v4185_v31 }
 0x1c8   : > { %3947 = vmatprep.subr.bf16.mxu0 %v4186_v41 }
 0x1ca   : > { %2464 = vmatmul.mubr.bf16.gmra.mxu0 %v4931_v5  ;;  %v4195_v5 = vld [vmem:[%s5544_s5 + $0x70] sm:$0xff]  }
 0x1cb   : > { %2471 = vmatprep.mubr.bf16.mxu0 %v4989_v38  ;;  %3948 = vmatpush3.bf16.msra.mxu0 %v4186_v41 }
 0x1cc   : > { %2561 = vmatmul.mubr.bf16.gmra.mxu1 %v4907_v56  ;;  %3949 = vmatprep.subr.bf16.mxu0 %v4187_v24  ;;  %v4190_v56 = vld [vmem:[%s5542_s3 + $0x200] sm:$0xff]  }
 0x1cd   : > { %2568 = vmatprep.mubr.bf16.mxu1 %v5004_v46 }
 0x1cf   : > { %3950 = vmatpush3.bf16.msra.mxu0 %v4187_v24 }
 0x1d0   : > { %3951 = vmatprep.subr.bf16.mxu0 %v4188_v53 }
 0x1d2   : > { %2472 = vmatmul.mubr.bf16.gmra.mxu0 %v4968_v23  ;;  %v4198_v23 = vld [vmem:[%s5544_s5 + $0x28] sm:$0xff]  }
 0x1d3   : > { %2479 = vmatprep.mubr.bf16.mxu0 %v5025_v58  ;;  %3952 = vmatpush3.bf16.msra.mxu0 %v4188_v53 }
 0x1d4   : > { %2569 = vmatmul.mubr.bf16.gmra.mxu1 %v4924_v3  ;;  %3953 = vmatprep.subr.bf16.mxu0 %v4190_v56  ;;  %v4193_v3 = vld [vmem:[%s5544_s5 + $0x78] sm:$0xff]  }
 0x1d5   : > { %2576 = vmatprep.mubr.bf16.mxu1 %v5037_v1  ;;  %3987 = vmatprep.subr.bf16.mxu1 %v4193_v3 }
 0x1d7   : > { %3954 = vmatpush3.bf16.msra.mxu0 %v4190_v56 }
 0x1d8   : > { %3827 = vmatprep.subr.bf16.mxu0 %v4193_v3 }
 0x1da   : > { %2480 = vmatmul.mubr.bf16.gmra.mxu0 %v5004_v46  ;;  %v4201_v46 = vld [vmem:[%s5544_s5 + $0x58] sm:$0xff]  }
 0x1db   : > { %2487 = vmatprep.mubr.bf16.mxu0 %v5058_v14 }
 0x1dc   : > { %2577 = vmatmul.mubr.bf16.gmra.mxu1 %v4961_v21  ;;  %v4197_v21 = vld [vmem:[%s5544_s5 + $0x68] sm:$0xff]  }
 0x1dd   : > { %2584 = vmatprep.mubr.bf16.mxu1 %v5066_v18 }
 0x1e2   : > { %2488 = vmatmul.mubr.bf16.gmra.mxu0 %v5037_v1 }
 0x1e3   : > { %2495 = vmatprep.mubr.bf16.mxu0 %v5076_v27 }
 0x1e4   : > { %2585 = vmatmul.mubr.bf16.gmra.mxu1 %v4997_v43  ;;  %v4200_v43 = vld [vmem:[%s5544_s5 + $0x20] sm:$0xff]  }
 0x1e5   : > { %2592 = vmatprep.mubr.bf16.mxu1 %v1606_v30 }
 0x1ea   : > { %2496 = vmatmul.mubr.bf16.gmra.mxu0 %v5066_v18 }
 0x1eb   : > { %2503 = vmatprep.mubr.bf16.mxu0 %v5083_v36 }
 0x1ec   : > { %2593 = vmatmul.mubr.bf16.gmra.mxu1 %v5052_v10 }
 0x1ed   : > { %2600 = vmatprep.mubr.bf16.mxu1 %v1632_v52 }
 0x1f2   : > { %2504 = vmatmul.mubr.bf16.gmra.mxu0 %v1606_v30 }
 0x1f3   : > { %3955 = vmatprep.mubr.bf16.mxu0 %v4916_v62  ;;  %v4194_v62 = vld [vmem:[%s5544_s5 + $0x38] sm:$0xff]  }
 0x1f4   : > { %2601 = vmatmul.mubr.bf16.gmra.mxu1 %v5079_v33 }
 0x1f5   : > { %3995 = vmatpush3.bf16.msra.mxu1 %v4194_v62  ;;  %2982 = vmatprep.mubr.bf16.mxu1 %v4211_v51 }
 0x1f6   : > { %3988 = vmatprep.subr.bf16.mxu1 %v4195_v5 }
 0x1fa   : > { %3956 = vmatmul.mubr.bf16.vlgmr.msra.gmra.mxu0 %v4953_v17  ;;  %v4196_v17 = vld [vmem:[%s5544_s5 + $0x30] sm:$0xff]  }
 0x1fb   : > { %3959 = vmatprep.mubr.bf16.mxu0 %v4989_v38  ;;  %3828 = vmatpush3.bf16.msra.mxu0 %v4194_v62  ;;  %v4199_v38 = vld [vmem:[%s5544_s5 + $0x60] sm:$0xff]  }
 0x1fc   : > { %3829 = vmatprep.subr.bf16.mxu0 %v4195_v5  ;;  %3996 = vmatpush3.bf16.msra.mxu1 %v4196_v17 }
 0x1fd   : > { %3989 = vmatprep.subr.bf16.mxu1 %v4197_v21 }
 0x1ff   : > { %3830 = vmatpush3.bf16.msra.mxu0 %v4196_v17 }
 0x200   : > { %3831 = vmatprep.subr.bf16.mxu0 %v4197_v21  ;;  %3997 = vmatpush3.bf16.msra.mxu1 %v4198_v23 }
 0x201   : > { %3990 = vmatprep.subr.bf16.mxu1 %v4199_v38 }
 0x202   : > { %3960 = vmatmul.mubr.bf16.gmra.mxu0 %v5025_v58 }
 0x203   : > { %3963 = vmatprep.mubr.bf16.mxu0 %v5058_v14  ;;  %3832 = vmatpush3.bf16.msra.mxu0 %v4198_v23 }
 0x204   : > { %3833 = vmatprep.subr.bf16.mxu0 %v4199_v38  ;;  %3998 = vmatpush3.bf16.msra.mxu1 %v4200_v43 }
 0x205   : > { %3991 = vmatprep.subr.bf16.mxu1 %v4201_v46 }
 0x207   : > { %3834 = vmatpush3.bf16.msra.mxu0 %v4200_v43 }
 0x208   : > { %3835 = vmatprep.subr.bf16.mxu0 %v4201_v46  ;;  %3999 = vmatpush3.bf16.msra.mxu1 %v4202_v55 }
 0x209   : > { %3992 = vmatprep.subr.bf16.mxu1 %v4203_v37 }
 0x20a   : > { %3964 = vmatmul.mubr.bf16.gmra.mxu0 %v5076_v27  ;;  %v4209_v27 = vld [vmem:[%s5212_s17] sm:$0xff]  }
 0x20b   : > { %3967 = vmatprep.mubr.bf16.mxu0 %v5083_v36  ;;  %3836 = vmatpush3.bf16.msra.mxu0 %v4202_v55 }
 0x20c   : > { %3837 = vmatprep.subr.bf16.mxu0 %v4203_v37  ;;  %4000 = vmatpush3.bf16.msra.mxu1 %v4204_v60 }
 0x20d   : > { %3993 = vmatprep.subr.bf16.mxu1 %v4205_v4 }
 0x20f   : > { %3838 = vmatpush3.bf16.msra.mxu0 %v4204_v60 }
 0x210   : > { %3839 = vmatprep.subr.bf16.mxu0 %v4205_v4  ;;  %4001 = vmatpush3.bf16.msra.mxu1 %v4206_v9 }
 0x211   : > { %3994 = vmatprep.subr.bf16.mxu1 %v4207_v15 }
 0x212   : > { %3968 = vmatmul.mubr.bf16.gmra.mxu0 %v5093_v50 }
 0x213   : > { %3840 = vmatpush3.bf16.msra.mxu0 %v4206_v9  ;;  %2966 = vmatprep.mubr.bf16.mxu0 %v4209_v27 }
 0x214   : > { %3841 = vmatprep.subr.bf16.mxu0 %v4207_v15  ;;  %4002 = vmatpush3.bf16.msra.mxu1 %v4208_v19 }
 0x217   : > { %3842 = vmatpush3.bf16.msra.mxu0 %v4208_v19 }
 0x23a   : > { %v3571_v58 = vpop.f32.mrf.mxu0 }
 0x23c   : > { %v3635_v57 = vpop.f32.mrf.mxu1  ;;  %v3572_v0 = vpop.f32.mrf.mxu0 }
 0x23d   : > { %v3573_v2 = vadd.f32 %v3572_v0, %v3571_v58 }
 0x23e   : > { %v3636_v59 = vpop.f32.mrf.mxu1  ;;  %v3574_v7 = vpop.f32.mrf.mxu0 }
 0x23f   : > { %v3637_v61 = vadd.f32 %v3636_v59, %v3635_v57  ;;  %v2256_v10 = vadd.f32 %v3573_v2, %v5192_v63 }
 0x240   : > { %v3638_v1 = vpop.f32.mrf.mxu1  ;;  %v3575_v12 = vpop.f32.mrf.mxu0 }
 0x241   : > { %v5202_v14 = vadd.f32 %v3637_v61, %v2256_v10  ;;  %v3576_v16 = vadd.f32 %v3575_v12, %v3574_v7 }
 0x242   : > { %v3639_v8 = vpop.f32.mrf.mxu1  ;;  %v3577_v18 = vpop.f32.mrf.mxu0 }
 0x243   : > { %v3640_v11 = vadd.f32 %v3639_v8, %v3638_v1  ;;  %v2259_v22 = vadd.f32 %v3576_v16, %v5192_v63 }
 0x244   : > { %v3641_v13 = vpop.f32.mrf.mxu1  ;;  %v3578_v25 = vpop.f32.mrf.mxu0 }
 0x245   : > { %v5215_v28 = vadd.f32 %v3640_v11, %v2259_v22  ;;  %v3579_v29 = vadd.f32 %v3578_v25, %v3577_v18 }
 0x246   : > { %v3642_v20 = vpop.f32.mrf.mxu1  ;;  %v3580_v32 = vpop.f32.mrf.mxu0 }
 0x247   : > { %v3643_v6 = vadd.f32 %v3642_v20, %v3641_v13  ;;  %v2264_v34 = vadd.f32 %v3579_v29, %v5192_v63 }
 0x248   : > { %v3644_v26 = vpop.f32.mrf.mxu1  ;;  %v3581_v36 = vpop.f32.mrf.mxu0 }
 0x249   : > { %v5218_v40 = vadd.f32 %v3643_v6, %v2264_v34  ;;  %v3582_v42 = vadd.f32 %v3581_v36, %v3580_v32 }
 0x24a   : > { %v3645_v33 = vpop.f32.mrf.mxu1  ;;  %v3583_v49 = vpop.f32.mrf.mxu0 }
 0x24b   : > { %v3646_v35 = vadd.f32 %v3645_v33, %v3644_v26  ;;  %v2267_v30 = vadd.f32 %v3582_v42, %v5192_v63 }
 0x24c   : > { %v3647_v39 = vpop.f32.mrf.mxu1  ;;  %v3584_v48 = vpop.f32.mrf.mxu0 }
 0x24d   : > { %v5224_v52 = vadd.f32 %v3646_v35, %v2267_v30  ;;  %v3585_v54 = vadd.f32 %v3584_v48, %v3583_v49 }
 0x24e   : > { %v3648_v45 = vpop.f32.mrf.mxu1  ;;  %v3586_v44 = vpop.f32.mrf.mxu0 }
 0x24f   : > { %v3649_v47 = vadd.f32 %v3648_v45, %v3647_v39  ;;  %v2272_v41 = vadd.f32 %v3585_v54, %v5192_v63 }
 0x250   : > { %v5221_v50 = vpop.f32.mrf.mxu1  ;;  %v3587_v24 = vpop.f32.mrf.mxu0 }
 0x251   : > { %v5229_v56 = vadd.f32 %v3649_v47, %v2272_v41  ;;  %v5231_v3 = vadd.f32 %v3587_v24, %v3586_v44 }
 0x252   : > { %v5226_v31 = vpop.f32.mrf.mxu1  ;;  %v3589_v62 = vpop.f32.mrf.mxu0 }
 0x254   : > { %v3653_v53 = vpop.f32.mrf.mxu1  ;;  %v3590_v21 = vpop.f32.mrf.mxu0 }
 0x255   : > { %v3591_v38 = vadd.f32 %v3590_v21, %v3589_v62 }
 0x256   : > { %v3654_v5 = vpop.f32.mrf.mxu1  ;;  %v3592_v43 = vpop.f32.mrf.mxu0 }
 0x257   : > { %v3655_v17 = vadd.f32 %v3654_v5, %v3653_v53  ;;  %v2280_v55 = vadd.f32 %v3591_v38, %v5192_v63 }
 0x258   : > { %v5233_v23 = vpop.f32.mrf.mxu1  ;;  %v3593_v37 = vpop.f32.mrf.mxu0 }
 0x259   : > { %v5238_v58 = vadd.f32 %v3655_v17, %v2280_v55  ;;  %v5240_v59 = vadd.f32 %v3593_v37, %v3592_v43 }
 0x25a   : > { %v5235_v46 = vpop.f32.mrf.mxu1  ;;  %v3595_v60 = vpop.f32.mrf.mxu0 }
 0x25c   : > { %v3659_v57 = vpop.f32.mrf.mxu1  ;;  %v3596_v1 = vpop.f32.mrf.mxu0 }
 0x25d   : > { %v3597_v4 = vadd.f32 %v3596_v1, %v3595_v60 }
 0x25e   : > { %v3660_v61 = vpop.f32.mrf.mxu1  ;;  %v3598_v7 = vpop.f32.mrf.mxu0 }
 0x25f   : > { %v3661_v0 = vadd.f32 %v3660_v61, %v3659_v57  ;;  %v2288_v9 = vadd.f32 %v3597_v4, %v5192_v63 }
 0x260   : > { %v5242_v2 = vpop.f32.mrf.mxu1  ;;  %v3599_v10 = vpop.f32.mrf.mxu0 }
 0x261   : > { %v5247_v12 = vadd.f32 %v3661_v0, %v2288_v9  ;;  %v5249_v13 = vadd.f32 %v3599_v10, %v3598_v7 }
 0x262   : > { %v5244_v8 = vpop.f32.mrf.mxu1  ;;  %v3601_v16 = vpop.f32.mrf.mxu0 }
 0x263   : > { %5564 = vst [vmem:[#allocation7_spill] sm:$0xff] %v5247_v12 }
 0x264   : > { %v3665_v11 = vpop.f32.mrf.mxu1  ;;  %v3602_v20 = vpop.f32.mrf.mxu0 }
 0x265   : > { %v3603_v22 = vadd.f32 %v3602_v20, %v3601_v16 }
 0x266   : > { %v3666_v15 = vpop.f32.mrf.mxu1  ;;  %v3604_v6 = vpop.f32.mrf.mxu0 }
 0x267   : > { %v3667_v18 = vadd.f32 %v3666_v15, %v3665_v11  ;;  %v2296_v26 = vadd.f32 %v3603_v22, %v5192_v63 }
 0x268   : > { %v5251_v19 = vpop.f32.mrf.mxu1  ;;  %v3605_v27 = vpop.f32.mrf.mxu0 }
 0x269   : > { %v5256_v32 = vadd.f32 %v3667_v18, %v2296_v26  ;;  %v5258_v33 = vadd.f32 %v3605_v27, %v3604_v6 }
 0x26a   : > { %v5253_v25 = vpop.f32.mrf.mxu1  ;;  %v3607_v34 = vpop.f32.mrf.mxu0 }
 0x26b   : > { %5565 = vst [vmem:[#allocation8_spill] sm:$0xff] %v5256_v32 }
 0x26c   : > { %v3671_v29 = vpop.f32.mrf.mxu1  ;;  %v3608_v39 = vpop.f32.mrf.mxu0 }
 0x26d   : > { %v3609_v49 = vadd.f32 %v3608_v39, %v3607_v34 }
 0x26e   : > { %v3672_v35 = vpop.f32.mrf.mxu1  ;;  %v3610_v45 = vpop.f32.mrf.mxu0 }
 0x26f   : > { %v3673_v36 = vadd.f32 %v3672_v35, %v3671_v29  ;;  %v2304_v47 = vadd.f32 %v3609_v49, %v5192_v63 }
 0x270   : > { %v5260_v42 = vpop.f32.mrf.mxu1  ;;  %v3611_v48 = vpop.f32.mrf.mxu0 }
 0x271   : > { %5566 = vst [vmem:[#allocation9_spill] sm:$0xff] %v5260_v42  ;;  %v5265_v54 = vadd.f32 %v3673_v36, %v2304_v47  ;;  %v5267_v44 = vadd.f32 %v3611_v48, %v3610_v45 }
 0x272   : > { %v5262_v30 = vpop.f32.mrf.mxu1  ;;  %v3613_v41 = vpop.f32.mrf.mxu0 }
 0x273   : > { %5567 = vst [vmem:[#allocation10_spill] sm:$0xff] %v5262_v30  ;;  %5568 = vst [vmem:[#allocation11_spill] sm:$0xff] %v5265_v54 }
 0x274   : > { %v3677_v51 = vpop.f32.mrf.mxu1  ;;  %5569 = vst [vmem:[#allocation12_spill] sm:$0xff] %v5267_v44  ;;  %v3614_v62 = vpop.f32.mrf.mxu0 }
 0x275   : > { %v3615_v17 = vadd.f32 %v3614_v62, %v3613_v41 }
 0x276   : > { %v3678_v24 = vpop.f32.mrf.mxu1  ;;  %v3616_v21 = vpop.f32.mrf.mxu0 }
 0x277   : > { %v3679_v53 = vadd.f32 %v3678_v24, %v3677_v51  ;;  %v2312_v43 = vadd.f32 %v3615_v17, %v5192_v63 }
 0x278   : > { %v5269_v5 = vpop.f32.mrf.mxu1  ;;  %v3617_v55 = vpop.f32.mrf.mxu0 }
 0x279   : > { %5570 = vst [vmem:[#allocation13_spill] sm:$0xff] %v5269_v5  ;;  %v5276_v57 = vadd.f32 %v3679_v53, %v2312_v43  ;;  %v5278_v60 = vadd.f32 %v3617_v55, %v3616_v21 }
 0x27a   : > { %v5271_v38 = vpop.f32.mrf.mxu1  ;;  %v3699_v61 = vpop.f32.mrf.mxu0 }
 0x27b   : > { %5571 = vst [vmem:[#allocation14_spill] sm:$0xff] %v5271_v38  ;;  %5572 = vst [vmem:[#allocation15_spill] sm:$0xff] %v5276_v57 }
 0x27c   : > { %v5274_v37 = vpop.f32.mrf.mxu1  ;;  %5573 = vst [vmem:[#allocation16_spill] sm:$0xff] %v5278_v60  ;;  %v3700_v1 = vpop.f32.mrf.mxu0 }
 0x27d   : > { %v3701_v7 = vadd.f32 %v3700_v1, %v3699_v61 }
 0x27e   : > { %v5280_v0 = vpop.f32.mrf.mxu1  ;;  %v3702_v9 = vpop.f32.mrf.mxu0 }
 0x27f   : > { %v5287_v11 = vadd.f32 %v3701_v7, %v5202_v14 }
 0x280   : > { %v5282_v4 = vpop.f32.mrf.mxu1  ;;  %v3703_v16 = vpop.f32.mrf.mxu0 }
 0x282   : > { %v5284_v10 = vpop.f32.mrf.mxu1  ;;  %v3705_v18 = vpop.f32.mrf.mxu0 }
 0x284   : > { %v3769_v15 = vpop.f32.mrf.mxu1  ;;  %v3706_v22 = vpop.f32.mrf.mxu0 }
 0x285   : > { %v3707_v26 = vadd.f32 %v3706_v22, %v3705_v18 }
 0x286   : > { %v3770_v20 = vpop.f32.mrf.mxu1  ;;  %v3708_v27 = vpop.f32.mrf.mxu0 }
 0x287   : > { %v2458_v34 = vadd.f32 %v3707_v26, %v5218_v40 }
 0x288   : > { %v3772_v6 = vpop.f32.mrf.mxu1  ;;  %v3709_v35 = vpop.f32.mrf.mxu0 }
 0x28a   : > { %v3773_v29 = vpop.f32.mrf.mxu1  ;;  %v3711_v39 = vpop.f32.mrf.mxu0 }
 0x28c   : > { %v5290_v36 = vpop.f32.mrf.mxu1  ;;  %v3712_v45 = vpop.f32.mrf.mxu0 }
 0x28e   : > { %v5292_v49 = vpop.f32.mrf.mxu1  ;;  %v5296_v47 = vpop.f32.mrf.mxu0 }
 0x290   : > { %v5294_v14 = vpop.f32.mrf.mxu1  ;;  %v3715_v51 = vpop.f32.mrf.mxu0 }
 0x292   : > { %v5298_v48 = vpop.f32.mrf.mxu1  ;;  %v3717_v24 = vpop.f32.mrf.mxu0 }
 0x294   : > { %v5300_v41 = vpop.f32.mrf.mxu1  ;;  %v3718_v40 = vpop.f32.mrf.mxu0 }
 0x296   : > { %v5302_v53 = vpop.f32.mrf.mxu1  ;;  %v3720_v17 = vpop.f32.mrf.mxu0 }
 0x298   : > { %v5304_v62 = vpop.f32.mrf.mxu1  ;;  %v3721_v43 = vpop.f32.mrf.mxu0 }
 0x29a   : > { %v5306_v21 = vpop.f32.mrf.mxu1  ;;  %v5310_v61 = vpop.f32.mrf.mxu0 }
 0x29c   : > { %v5308_v55 = vpop.f32.mrf.mxu1  ;;  %v5314_v7 = vpop.f32.mrf.mxu0 }
 0x29d   : > { %5574 = vst [vmem:[#allocation17_spill] sm:$0xff] %v5308_v55 }
 0x29e   : > { %v5312_v1 = vpop.f32.mrf.mxu1  ;;  %v5318_v22 = vpop.f32.mrf.mxu0 }
 0x29f   : > { %5575 = vst [vmem:[#allocation18_spill] sm:$0xff] %v5312_v1  ;;  %5577 = vst [vmem:[#allocation20_spill] sm:$0xff] %v5318_v22 }
 0x2a0   : > { %v5316_v18 = vpop.f32.mrf.mxu1  ;;  %v5322_v54 = vpop.f32.mrf.mxu0 }
 0x2a1   : > { %5576 = vst [vmem:[#allocation19_spill] sm:$0xff] %v5316_v18  ;;  %5579 = vst [vmem:[#allocation22_spill] sm:$0xff] %v5322_v54  ;;  %v3710_v54 = vadd.f32 %v3709_v35, %v3708_v27 }
 0x2a2   : > { %v5320_v26 = vpop.f32.mrf.mxu1  ;;  %v5326_v30 = vpop.f32.mrf.mxu0 }
 0x2a3   : > { %5578 = vst [vmem:[#allocation21_spill] sm:$0xff] %v5320_v26 }
 0x2a4   : > { %v5324_v57 = vpop.f32.mrf.mxu1  ;;  %v5328_v42 = vpop.f32.mrf.mxu0 }
 0x2a5   : > { %5580 = vst [vmem:[#allocation23_spill] sm:$0xff] %v5324_v57 }
 0x2a6   : > { %v5330_v44 = vpop.f32.mrf.mxu1  ;;  %v5332_v60 = vpop.f32.mrf.mxu0 }
 0x2a7   : > { %5581 = vst [vmem:[#allocation24_spill] sm:$0xff] %v5330_v44 }
 0x2a8   : > { %v5334_v1 = vpop.f32.mrf.mxu0  ;;  %v5336_v55 = vpop.f32.mrf.mxu1 }
 0x2a9   : > { %5582 = vst [vmem:[#allocation25_spill] sm:$0xff] %v5334_v1  ;;  %5583 = vst [vmem:[#allocation26_spill] sm:$0xff] %v5336_v55  ;;  %v3704_v55 = vadd.f32 %v3703_v16, %v3702_v9  ;;  %v3765_v9 = vadd.f32 %v5280_v0, %v5274_v37  ;;  %v2461_v16 = vadd.f32 %v3710_v54, %v5224_v52 }
 0x2aa   : > { %v5338_v18 = vpop.f32.mrf.mxu0  ;;  %v5342_v26 = vpop.f32.mrf.mxu1  ;;  %v3664_v0 = vadd.f32 %v5244_v8, %v5242_v2  ;;  %v3786_v2 = vadd.f32 %v5306_v21, %v5304_v62 }
 0x2ab   : > { %5584 = vst [vmem:[#allocation27_spill] sm:$0xff] %v5338_v18  ;;  %v3771_v18 = vadd.f32 %v3770_v20, %v3769_v15  ;;  %v3774_v15 = vadd.f32 %v3773_v29, %v3772_v6  ;;  %v2547_v52 = vadd.f32 %v3765_v9, %v5287_v11  ;;  %v3670_v11 = vadd.f32 %v5253_v25, %v5251_v19  ;;  %v5596_v9 = vld [vmem:[#allocation8_spill] sm:$0xff] }
 0x2ac   : > { %v5340_v12 = vpop.f32.mrf.mxu0  ;;  %v5348_v57 = vpop.f32.mrf.mxu1  ;;  %v3731_v25 = vadd.f32 %v5328_v42, %v5326_v30  ;;  %v5594_v42 = vld [vmem:[#allocation20_spill] sm:$0xff]  ;;  %v5595_v30 = vld [vmem:[#allocation22_spill] sm:$0xff] }
 0x2ad   : > { %5585 = vst [vmem:[#allocation28_spill] sm:$0xff] %v5340_v12  ;;  %5588 = vst [vmem:[#allocation31_spill] sm:$0xff] %v5348_v57  ;;  %v2275_v12 = vadd.f32 %v5231_v3, %v5192_v63  ;;  %v2283_v57 = vadd.f32 %v5240_v59, %v5192_v63  ;;  %v2453_v3 = vadd.f32 %v3704_v55, %v5215_v28 }
 0x2ae   : > { %v5344_v38 = vpop.f32.mrf.mxu0  ;;  %v5354_v22 = vpop.f32.mrf.mxu1  ;;  %v3719_v59 = vadd.f32 %v3718_v40, %v3717_v24  ;;  %v2555_v27 = vadd.f32 %v3771_v18, %v2458_v34  ;;  %v2558_v54 = vadd.f32 %v3774_v15, %v2461_v16  ;;  %v2291_v28 = vadd.f32 %v5249_v13, %v5192_v63  ;;  %v5597_v15 = vld [vmem:[#allocation23_spill] sm:$0xff] }
 0x2af   : > { %5586 = vst [vmem:[#allocation29_spill] sm:$0xff] %v5344_v38  ;;  %5590 = vst [vmem:[#allocation33_spill] sm:$0xff] %v5354_v22  ;;  %v3652_v38 = vadd.f32 %v5226_v31, %v5221_v50  ;;  %v3768_v50 = vadd.f32 %v5284_v10, %v5282_v4  ;;  %v3716_v4 = vadd.f32 %v3715_v51, %v5296_v47 }
 0x2b0   : > { %v5346_v5 = vpop.f32.mrf.mxu0  ;;  %v5371_v20 = vpop.f32.mrf.mxu1  ;;  %v3777_v13 = vadd.f32 %v5292_v49, %v5290_v36  ;;  %v2299_v51 = vadd.f32 %v5258_v33, %v5192_v63  ;;  %v5593_v33 = vld [vmem:[#allocation25_spill] sm:$0xff]  ;;  %v2388_v18 = vadd.f32 %v3664_v0, %v2291_v28  ;;  %v2490_v16 = vadd.f32 %v3731_v25, %v5596_v9  ;;  %v5604_v0 = vld [vmem:[#allocation26_spill] sm:$0xff]  ;;  %v5609_v25 = vld [vmem:[#allocation12_spill] sm:$0xff] }
 0x2b1   : > { %5587 = vst [vmem:[#allocation30_spill] sm:$0xff] %v5346_v5  ;;  %v3658_v5 = vadd.f32 %v5235_v46, %v5233_v23  ;;  %v2372_v35 = vadd.f32 %v3652_v38, %v2275_v12  ;;  %v3713_v46 = vadd.f32 %v3712_v45, %v3711_v39  ;;  %v2550_v12 = vadd.f32 %v3768_v50, %v2453_v3  ;;  %v5598_v3 = vld [vmem:[#allocation24_spill] sm:$0xff] }
 0x2b2   : > { %v5350_v32 = vpop.f32.mrf.mxu0  ;;  %v3783_v38 = vadd.f32 %v5302_v53, %v5300_v41  ;;  %v3725_v53 = vadd.f32 %v5314_v7, %v5310_v61  ;;  %v3734_v21 = vadd.f32 %v5593_v33, %v5332_v60  ;;  %v3795_v50 = vadd.f32 %v5598_v3, %v5597_v15  ;;  %v5599_v60 = vld [vmem:[#allocation13_spill] sm:$0xff] }
 0x2b3   : > { %v2380_v23 = vadd.f32 %v3658_v5, %v2283_v57  ;;  %v2474_v5 = vadd.f32 %v3719_v59, %v5238_v58  ;;  %v2466_v29 = vadd.f32 %v3713_v46, %v5229_v56  ;;  %v2469_v19 = vadd.f32 %v3716_v4, %v2372_v35  ;;  %v5600_v35 = vld [vmem:[#allocation14_spill] sm:$0xff]  ;;  %v5601_v46 = vld [vmem:[#allocation7_spill] sm:$0xff] }
 0x2b4   : > { %v5352_v44 = vpop.f32.mrf.mxu0  ;;  %v3780_v56 = vadd.f32 %v5298_v48, %v5294_v14  ;;  %v2396_v7 = vadd.f32 %v3670_v11, %v2299_v51  ;;  %v3798_v4 = vadd.f32 %v5342_v26, %v5604_v0  ;;  %v5605_v11 = vld [vmem:[#allocation16_spill] sm:$0xff] }
 0x2b5   : > { %5589 = vst [vmem:[#allocation32_spill] sm:$0xff] %v5352_v44  ;;  %v2571_v24 = vadd.f32 %v3783_v38, %v2474_v5  ;;  %v2563_v40 = vadd.f32 %v3777_v13, %v2466_v29  ;;  %v2315_v29 = vadd.f32 %v5605_v11, %v5192_v63 }
 0x2b6   : > { %v5356_v1 = vpop.f32.mrf.mxu0  ;;  %v5616_v9 = vld [vmem:[#allocation29_spill] sm:$0xff] }
 0x2b7   : > { %5591 = vst [vmem:[#allocation34_spill] sm:$0xff] %v5356_v1  ;;  %v5376_v1 = vpop.f32.mrf.mxu1 }
 0x2b8   : > { %v5366_v44 = vpop.f32.mrf.mxu0 }
 0x2b9   : > { %5592 = vst [vmem:[#allocation35_spill] sm:$0xff] %v5366_v44  ;;  %v3722_v44 = vadd.f32 %v3721_v43, %v3720_v17  ;;  %v5394_v39 = vpop.f32.mrf.mxu1  ;;  %v4210_v17 = vld [vmem:[%s5212_s17 + $0x8] sm:$0xff]  }
 0x2ba   : > { %v3957_v31 = vpop.f32.mrf.mxu0 }
 0x2bb   : > { %v2652_v37 = vadd.f32 %v3957_v31, %v2555_v27  ;;  %v2477_v34 = vadd.f32 %v3722_v44, %v2380_v23  ;;  %v3806_v43 = vpop.f32.mrf.mxu1  ;;  %v2566_v27 = vadd.f32 %v3780_v56, %v2469_v19  ;;  %v3682_v23 = vadd.f32 %v5600_v35, %v5599_v60  ;;  %v5619_v60 = vld [vmem:[#allocation11_spill] sm:$0xff] }
 0x2bc   : > { %v2643_v22 = vpop.f32.mrf.mxu0  ;;  %v3807_v15 = vadd.f32 %v3806_v43, %v5394_v39 }
 0x2bd   : > { %v2644_v57 = vadd.f32 %v2643_v22, %v2547_v52  ;;  %v2708_v58 = vmax.f32 %v2652_v37, 0.0  ;;  %v2574_v48 = vadd.f32 %v3786_v2, %v2477_v34  ;;  %v3728_v22 = vadd.f32 %v5595_v30, %v5594_v42  ;;  %v5602_v52 = vld [vmem:[#allocation17_spill] sm:$0xff]  ;;  %v3808_v5 = vpop.f32.mrf.mxu1  ;;  %v5606_v2 = vld [vmem:[#allocation19_spill] sm:$0xff] }
 0x2be   : > { %v3958_v10 = vpop.f32.mrf.mxu0  ;;  %v2482_v37 = vadd.f32 %v3725_v53, %v5601_v46  ;;  %v5612_v53 = vld [vmem:[#allocation27_spill] sm:$0xff] }
 0x2bf   : > { %v2655_v6 = vadd.f32 %v3958_v10, %v2558_v54  ;;  %v2706_v49 = vmax.f32 %v2644_v57, 0.0  ;;  %v5603_v54 = vld [vmem:[#allocation18_spill] sm:$0xff]  ;;  %v2485_v13 = vadd.f32 %v3728_v22, %v2388_v18  ;;  %v3809_v18 = vpop.f32.mrf.mxu1  ;;  %v2412_v22 = vadd.f32 %v3682_v23, %v2315_v29  ;;  %v5620_v46 = vld [vmem:[#allocation31_spill] sm:$0xff]  ;;  %v4213_v29 = vld [vmem:[%s5212_s17 + $0x20] sm:$0xff]  }
 0x2c0   : > { %v2646_v8 = vpop.f32.mrf.mxu0  ;;  %v3789_v28 = vadd.f32 %v5603_v54, %v5602_v52  ;;  %v3810_v23 = vadd.f32 %v3809_v18, %v3808_v5 }
 0x2c1   : > { %v2709_v45 = vmax.f32 %v2655_v6, 0.0  ;;  %v2647_v47 = vadd.f32 %v2646_v8, %v2550_v12  ;;  %v2493_v12 = vadd.f32 %v3734_v21, %v2396_v7  ;;  %v5607_v8 = vld [vmem:[#allocation21_spill] sm:$0xff]  ;;  %v4212_v21 = vld [vmem:[%s5212_s17 + $0x18] sm:$0xff]  }
 0x2c2   : > { %v3961_v36 = vpop.f32.mrf.mxu0  ;;  %v3792_v34 = vadd.f32 %v5607_v8, %v5606_v2 }
 0x2c3   : > { %v2723_v41 = vpack.c.bf16 %v2709_v45, %v2708_v58  ;;  %v2707_v44 = vmax.f32 %v2647_v47, 0.0  ;;  %v2668_v14 = vadd.f32 %v3961_v36, %v2571_v24  ;;  %v2587_v58 = vadd.f32 %v3795_v50, %v2490_v16  ;;  %v5608_v47 = vld [vmem:[#allocation32_spill] sm:$0xff]  ;;  %v5617_v16 = vld [vmem:[#allocation30_spill] sm:$0xff] }
 0x2c4   : > { %v2659_v62 = vpop.f32.mrf.mxu0  ;;  %v3743_v26 = vadd.f32 %v5608_v47, %v5350_v32  ;;  %v2307_v36 = vadd.f32 %v5609_v25, %v5192_v63  ;;  %v2590_v30 = vadd.f32 %v3798_v4, %v2493_v12  ;;  %v3740_v63 = vadd.f32 %v5617_v16, %v5616_v9 }
 0x2c5   : > { %v2722_v55 = vpack.c.bf16 %v2707_v44, %v2706_v49  ;;  %v2660_v31 = vadd.f32 %v2659_v62, %v2563_v40  ;;  %v2712_v38 = vmax.f32 %v2668_v14, 0.0  ;;  %v5610_v49 = vld [vmem:[#allocation9_spill] sm:$0xff]  ;;  %v5611_v44 = vld [vmem:[#allocation10_spill] sm:$0xff]  ;;  %v5613_v40 = vld [vmem:[#allocation28_spill] sm:$0xff]  ;;  %v2582_v50 = vadd.f32 %v3792_v34, %v2485_v13 }
 0x2c6   : > { %v3962_v61 = vpop.f32.mrf.mxu0  ;;  %v3676_v24 = vadd.f32 %v5611_v44, %v5610_v49  ;;  %v3737_v62 = vadd.f32 %v5613_v40, %v5612_v53  ;;  %v5615_v14 = vld [vmem:[#allocation35_spill] sm:$0xff]  ;;  %v4214_v49 = vld [vmem:[%s5212_s17 + $0x28] sm:$0xff]  }
 0x2c7   : > { %v2671_v59 = vadd.f32 %v3962_v61, %v2574_v48  ;;  %2967 = vmatmul.mubr.bf16.vlgmr.msra.gmra.mxu0 %v2722_v55  ;;  %v2710_v51 = vmax.f32 %v2660_v31, 0.0  ;;  %v5614_v55 = vld [vmem:[#allocation34_spill] sm:$0xff]  ;;  %v5618_v61 = vld [vmem:[#allocation15_spill] sm:$0xff] }
 0x2c8   : > { %v2662_v10 = vpop.f32.mrf.mxu0  ;;  %2974 = vmatprep.mubr.bf16.mxu0 %v4210_v17  ;;  %v2579_v17 = vadd.f32 %v3789_v28, %v2482_v37  ;;  %v3746_v48 = vadd.f32 %v5615_v14, %v5614_v55  ;;  %v2506_v7 = vadd.f32 %v3743_v26, %v5618_v61  ;;  %v2498_v35 = vadd.f32 %v3737_v62, %v5619_v60  ;;  %v5621_v37 = vld [vmem:[#allocation33_spill] sm:$0xff]  ;;  %v4216_v53 = vld [vmem:[%s5212_s17 + $0x38] sm:$0xff]  }
 0x2c9   : > { %v2713_v57 = vmax.f32 %v2671_v59, 0.0  ;;  %v2663_v6 = vadd.f32 %v2662_v10, %v2566_v27  ;;  %v2404_v27 = vadd.f32 %v3676_v24, %v2307_v36  ;;  %v3801_v52 = vadd.f32 %v5621_v37, %v5620_v46  ;;  %v4215_v24 = vld [vmem:[%s5212_s17 + $0x30] sm:$0xff]   ;;  %s4312_s17 = smov [#allocation3]  }
 0x2ca   : > { %v3965_v45 = vpop.f32.mrf.mxu0  ;;  %v2509_v28 = vadd.f32 %v3746_v48, %v2412_v22  ;;  %v3804_v10 = vadd.f32 %v5376_v1, %v5371_v20  ;;  %s4221_s12 = sshll.u32 %s4312_s17, 4  ;;  %s4222_s12 = int_to_ptr.vmem [resolvable:$false] %s4221_s12 }
 0x2cb   : > { %v2725_v19 = vpack.c.bf16 %v2713_v57, %v2712_v38  ;;  %v2711_v56 = vmax.f32 %v2663_v6, 0.0  ;;  %v2684_v42 = vadd.f32 %v3965_v45, %v2587_v58  ;;  %v2501_v4 = vadd.f32 %v3740_v63, %v2404_v27  ;;  %s4223_s9 = scalar_lea.vmem %s4222_s12, 2048  ;;  %p4224_p4 = scmp.lt.s32.totalorder %s5483_s16, %s4222_s12 }
 0x2cc   : > { %v2675_v33 = vpop.f32.mrf.mxu0  ;;  %v2603_v6 = vadd.f32 %v3807_v15, %v2506_v7  ;;  %v2595_v5 = vadd.f32 %v3801_v52, %v2498_v35  ;;  %v2606_v8 = vadd.f32 %v3810_v23, %v2509_v28  ;;  %p4225_p5 = scmp.lt.s32.totalorder %s4223_s9, %s4217_s23 }
 0x2cd   : > { %v2724_v32 = vpack.c.bf16 %v2711_v56, %v2710_v51  ;;  %v2676_v31 = vadd.f32 %v2675_v33, %v2579_v17  ;;  %v2716_v39 = vmax.f32 %v2684_v42, 0.0  ;;  %v2598_v47 = vadd.f32 %v3804_v10, %v2501_v4  ;;  %v5450_v17 = vld [vmem:[%s5545_s6] ss:$0 sm:$0xff] }
 0x2ce   : > { %v3966_v3 = vpop.f32.mrf.mxu0  ;;  %p4226_p6 = por %p4225_p5, %p4224_p4 }
 0x2cf   : > { %v2687_v59 = vadd.f32 %v3966_v3, %v2590_v30  ;;  %2975 = vmatmul.mubr.bf16.gmra.mxu0 %v2723_v41  ;;  %2983 = vmatmul.mubr.bf16.vlgmr.msra.gmra.mxu1 %v2724_v32  ;;  %v2714_v12 = vmax.f32 %v2676_v31, 0.0 }
 0x2d0   : > { %v2678_v54 = vpop.f32.mrf.mxu0  ;;  %2990 = vmatprep.mubr.bf16.mxu1 %v4212_v21  ;;  %p4227_p7 = pnand %p4226_p6, %p4220_p2 }
 0x2d1   : > { %v2717_v43 = vmax.f32 %v2687_v59, 0.0  ;;  %v2679_v0 = vadd.f32 %v2678_v54, %v2582_v50 }
 0x2d2   : > { %v3969_v41 = vpop.f32.mrf.mxu0 }
 0x2d3   : > { %v2727_v38 = vpack.c.bf16 %v2717_v43, %v2716_v39  ;;  %v2715_v57 = vmax.f32 %v2679_v0, 0.0  ;;  %v2700_v2 = vadd.f32 %v3969_v41, %v2603_v6 }
 0x2d4   : > { %v2691_v11 = vpop.f32.mrf.mxu0 }
 0x2d5   : > { %v2726_v13 = vpack.c.bf16 %v2715_v57, %v2714_v12  ;;  %v2692_v58 = vadd.f32 %v2691_v11, %v2595_v5  ;;  %v2720_v20 = vmax.f32 %v2700_v2, 0.0 }
 0x2d6   : > { %v3970_v34 = vpop.f32.mrf.mxu0 }
 0x2d7   : > { %v2703_v45 = vadd.f32 %v3970_v34, %v2606_v8  ;;  %2991 = vmatmul.mubr.bf16.gmra.mxu1 %v2725_v19  ;;  %v2718_v56 = vmax.f32 %v2692_v58, 0.0 }
 0x2d8   : > { %v2694_v1 = vpop.f32.mrf.mxu0  ;;  %2998 = vmatprep.mubr.bf16.mxu1 %v4213_v29 }
 0x2d9   : > { %v2721_v26 = vmax.f32 %v2703_v45, 0.0  ;;  %v2695_v51 = vadd.f32 %v2694_v1, %v2598_v47 }
 0x2db   : > { %v2729_v25 = vpack.c.bf16 %v2721_v26, %v2720_v20  ;;  %v2719_v36 = vmax.f32 %v2695_v51, 0.0 }
 0x2dd   : > { %v2728_v44 = vpack.c.bf16 %v2719_v36, %v2718_v56 }
 0x2df   : > { %2999 = vmatmul.mubr.bf16.gmra.mxu1 %v2726_v13 }
 0x2e0   : > { %3006 = vmatprep.mubr.bf16.mxu1 %v4214_v49 }
 0x2e7   : > { %3007 = vmatmul.mubr.bf16.gmra.mxu1 %v2727_v38 }
 0x2e8   : > { %3014 = vmatprep.mubr.bf16.mxu1 %v4215_v24 }
 0x2ef   : > { %3015 = vmatmul.mubr.bf16.gmra.mxu1 %v2728_v44 }
 0x2f0   : > { %3022 = vmatprep.mubr.bf16.mxu1 %v4216_v53 }
 0x2f7   : > { %3023 = vmatmul.mubr.bf16.gmra.mxu1 %v2729_v25 }
 0x387   : > { %v3843_v19 = vpop.f32.mrf.mxu0 }
 0x389   : > { %v3844_v40 = vpop.f32.mrf.mxu0 }
 0x38a   : > { %v3845_v62 = vadd.f32 %v3844_v40, %v3843_v19 }
 0x38b   : > { %v3846_v33 = vpop.f32.mrf.mxu0 }
 0x38c   : > { %v2969_v55 = vadd.f32 %v3845_v62, %v5450_v17 }
 0x38d   : > { %v3847_v21 = vpop.f32.mrf.mxu0 }
 0x38e   : > { %v3848_v14 = vadd.f32 %v3847_v21, %v3846_v33  ;;  %v3031_v22 = vmax.f32 %v2969_v55, 0.0 }
 0x38f   : > { %v3849_v48 = vpop.f32.mrf.mxu0  ;;  %v3855_v18 = vpop.f32.mrf.mxu1 }
 0x390   : > { %v2972_v32 = vadd.f32 %v3848_v14, %v5450_v17 }
 0x391   : > { %v3850_v42 = vpop.f32.mrf.mxu0  ;;  %v3856_v30 = vpop.f32.mrf.mxu1 }
 0x392   : > { %v3032_v9 = vmax.f32 %v2972_v32, 0.0  ;;  %v3851_v16 = vadd.f32 %v3850_v42, %v3849_v48  ;;  %v3857_v63 = vadd.f32 %v3856_v30, %v3855_v18 }
 0x393   : > { %v3852_v15 = vpop.f32.mrf.mxu0  ;;  %v3858_v3 = vpop.f32.mrf.mxu1 }
 0x394   : > { %v3487_v50 = vpack.c.bf16 %v3032_v9, %v3031_v22  ;;  %v2977_v61 = vadd.f32 %v3851_v16, %v5450_v17  ;;  %v2985_v59 = vadd.f32 %v3857_v63, %v5450_v17 }
 0x395   : > { %v3853_v7 = vpop.f32.mrf.mxu0  ;;  %v3859_v31 = vpop.f32.mrf.mxu1 }
 0x396   : > { %3488 = vst [vmem:[%s4436_s13] sm:$0xff] %v3487_v50   ;;  %v3854_v27 = vadd.f32 %v3853_v7, %v3852_v15  ;;  %v3860_v60 = vadd.f32 %v3859_v31, %v3858_v3  ;;  %v3033_v52 = vmax.f32 %v2977_v61, 0.0  ;;  %v3035_v54 = vmax.f32 %v2985_v59, 0.0 }
 0x397   : > { %v3861_v35 = vpop.f32.mrf.mxu1 }
 0x398   : > { %v2980_v46 = vadd.f32 %v3854_v27, %v5450_v17  ;;  %v2988_v37 = vadd.f32 %v3860_v60, %v5450_v17 }
 0x399   : > { %v3862_v23 = vpop.f32.mrf.mxu1 }
 0x39a   : > { %v3034_v28 = vmax.f32 %v2980_v46, 0.0  ;;  %v3036_v39 = vmax.f32 %v2988_v37, 0.0  ;;  %v3863_v43 = vadd.f32 %v3862_v23, %v3861_v35 }
 0x39b   : > { %v3864_v0 = vpop.f32.mrf.mxu1 }
 0x39c   : > { %v3492_v4 = vpack.c.bf16 %v3034_v28, %v3033_v52  ;;  %v3497_v10 = vpack.c.bf16 %v3036_v39, %v3035_v54  ;;  %v2993_v12 = vadd.f32 %v3863_v43, %v5450_v17 }
 0x39d   : > { %v3865_v41 = vpop.f32.mrf.mxu1 }
 0x39e   : > { %3524 = vst [vmem:[%s4436_s13 + $0x8] sm:$0xff] %v3492_v4   ;;  %3525 = vst [vmem:[%s4436_s13 + $0x10] sm:$0xff] %v3497_v10   ;;  %v3866_v38 = vadd.f32 %v3865_v41, %v3864_v0  ;;  %v3037_v29 = vmax.f32 %v2993_v12, 0.0 }
 0x39f   : > { %v3867_v57 = vpop.f32.mrf.mxu1 }
 0x3a0   : > { %v2996_v6 = vadd.f32 %v3866_v38, %v5450_v17 }
 0x3a1   : > { %v3868_v11 = vpop.f32.mrf.mxu1 }
 0x3a2   : > { %v3038_v13 = vmax.f32 %v2996_v6, 0.0  ;;  %v3869_v2 = vadd.f32 %v3868_v11, %v3867_v57 }
 0x3a3   : > { %v3870_v5 = vpop.f32.mrf.mxu1 }
 0x3a4   : > { %v3502_v8 = vpack.c.bf16 %v3038_v13, %v3037_v29  ;;  %v3001_v58 = vadd.f32 %v3869_v2, %v5450_v17 }
 0x3a5   : > { %v3871_v34 = vpop.f32.mrf.mxu1 }
 0x3a6   : > { %3526 = vst [vmem:[%s4436_s13 + $0x18] sm:$0xff] %v3502_v8   ;;  %v3872_v45 = vadd.f32 %v3871_v34, %v3870_v5  ;;  %v3039_v26 = vmax.f32 %v3001_v58, 0.0 }
 0x3a7   : > { %v3873_v47 = vpop.f32.mrf.mxu1 }
 0x3a8   : > { %v3004_v1 = vadd.f32 %v3872_v45, %v5450_v17 }
 0x3a9   : > { %v3874_v20 = vpop.f32.mrf.mxu1 }
 0x3aa   : > { %v3040_v51 = vmax.f32 %v3004_v1, 0.0  ;;  %v3875_v56 = vadd.f32 %v3874_v20, %v3873_v47 }
 0x3ab   : > { %v3876_v25 = vpop.f32.mrf.mxu1 }
 0x3ac   : > { %v3507_v36 = vpack.c.bf16 %v3040_v51, %v3039_v26  ;;  %v3009_v44 = vadd.f32 %v3875_v56, %v5450_v17 }
 0x3ad   : > { %v3877_v49 = vpop.f32.mrf.mxu1 }
 0x3ae   : > { %3527 = vst [vmem:[%s4436_s13 + $0x20] sm:$0xff] %v3507_v36   ;;  %v3878_v24 = vadd.f32 %v3877_v49, %v3876_v25  ;;  %v3041_v62 = vmax.f32 %v3009_v44, 0.0 }
 0x3af   : > { %v3879_v53 = vpop.f32.mrf.mxu1 }
 0x3b0   : > { %v3012_v19 = vadd.f32 %v3878_v24, %v5450_v17 }
 0x3b1   : > { %v3880_v40 = vpop.f32.mrf.mxu1 }
 0x3b2   : > { %v3042_v33 = vmax.f32 %v3012_v19, 0.0  ;;  %v3881_v21 = vadd.f32 %v3880_v40, %v3879_v53 }
 0x3b3   : > { %v3882_v55 = vpop.f32.mrf.mxu1 }
 0x3b4   : > { %v3512_v14 = vpack.c.bf16 %v3042_v33, %v3041_v62  ;;  %v3017_v18 = vadd.f32 %v3881_v21, %v5450_v17 }
 0x3b5   : > { %v3883_v48 = vpop.f32.mrf.mxu1 }
 0x3b6   : > { %3528 = vst [vmem:[%s4436_s13 + $0x28] sm:$0xff] %v3512_v14   ;;  %v3884_v32 = vadd.f32 %v3883_v48, %v3882_v55  ;;  %v3043_v9 = vmax.f32 %v3017_v18, 0.0 }
 0x3b7   : > { %v3885_v42 = vpop.f32.mrf.mxu1 }
 0x3b8   : > { %v3020_v30 = vadd.f32 %v3884_v32, %v5450_v17 }
 0x3b9   : > { %v3886_v22 = vpop.f32.mrf.mxu1 }
 0x3ba   : > { %v3044_v16 = vmax.f32 %v3020_v30, 0.0  ;;  %v3887_v63 = vadd.f32 %v3886_v22, %v3885_v42 }
 0x3bb   : > { %v3888_v15 = vpop.f32.mrf.mxu1 }
 0x3bc   : > { %v3517_v3 = vpack.c.bf16 %v3044_v16, %v3043_v9  ;;  %v3025_v61 = vadd.f32 %v3887_v63, %v5450_v17 }
 0x3bd   : > { %v3889_v50 = vpop.f32.mrf.mxu1 }
 0x3be   : > { %3529 = vst [vmem:[%s4436_s13 + $0x30] sm:$0xff] %v3517_v3   ;;  %v3890_v7 = vadd.f32 %v3889_v50, %v3888_v15  ;;  %v3045_v59 = vmax.f32 %v3025_v61, 0.0 }
 0x3c0   : > { %v3028_v31 = vadd.f32 %v3890_v7, %v5450_v17 }
 0x3c2   : > { %v3046_v27 = vmax.f32 %v3028_v31, 0.0 }
 0x3c4   : > { %v3522_v60 = vpack.c.bf16 %v3046_v27, %v3045_v59 }
 0x3c6   : > { %3530 = vst [vmem:[%s4436_s13 + $0x38] sm:$0xff] %v3522_v60  }
 0x3c7   : > { %4230 = shalt.err (!%p4227_p7)
}
 0x3c8   : > { %s4231_s13 = scalar_lea.hbm %s5481_s28, 1024  ;;  %s4235_s18 = scalar_lea.hbm %s5546_s7, 4096 }
 0x3c9   : > { %p4232_p9 = scmp.ne.s32.totalorder %s5481_s28, %s4231_s13  ;;  %p4236_p12 = scmp.lt.s32.totalorder %s5481_s28, %s5546_s7 }
 0x3ca   : > { %p4237_p13 = scmp.lt.s32.totalorder %s4235_s18, %s4231_s13 }
 0x3cb   : > { %p4233_p10 = pnand %p4232_p9, %p4406_p3 }
 0x3cc   : > { %p4238_p0 = por %p4237_p13, %p4236_p12 }
 0x3cd   : > { %p4234_p11 = pneg %p4233_p10 }
 0x3cf   : > { %p4239_p1 = pnand %p4238_p0, %p4234_p11 }
 0x3d1   : > { %4242 = shalt.err (!%p4239_p1)
}
 0x3d2   : > { %s4313_s27 = smov 64   ;;  %s4314_s22 = smov 4  }
 0x3d3   : > { %4003 = dma.vmem_to_hbm [thread:$0]  (%p4406_p3), %s5483_s16, 1024, %s5481_s28, %s5488_s1, %s4313_s27, %s4313_s27, %s4314_s22  }
 0x3d4 PF: > { %p4009_p2 = scmp.ge.s32.totalorder %s4309_s8, 2  ;;  %s3158_s23 = sand.u32 1, %s4281_s24  }
 0x3d5   : > { %s3159_s17 = scalar_lea.sflag [#allocation4], %s3158_s23 }
 0x3d6   : > { %p4006_p4 = pnand %p4009_p2, %p4415_p8 }
 0x3d8   : > { %p4007_p5 = pneg %p4006_p4 }
 0x3da   : > { %4276 = dma.done.wait (%p4007_p5), %s3159_s17, 1024  }
 0x3db   : > { %4278 = vsyncadd (%p4007_p5), %s3159_s17, 4294966272  ;;  %s20_s8 = sadd.s32 1, %s4309_s8   ;;  %s5623_s14 = sld [smem:[#allocation6_spill]] }
 0x3dc   : > { %p17_p6 = scmp.ge.s32.totalorder %s20_s8, 6   ;;  %s5624_s24 = smov %s4285_s25 }
 0x3dd   : > { %s5625_s25 = smov %s4289_s26  ;;  %s5626_s26 = smov %s4424_s19 }
 0x3de   : > { %s5627_s27 = smov %s4301_s29  ;;  %s5628_s28 = smov %s4305_s30 }
 0x3df   : > { %s5629_s29 = smov %s5632_s11  ;;  %19 = sbr.rel (!%p17_p6) target bundleno = 8 (0x8), region = 91 }
 0x3e1   : > { %s5630_s30 = smov %s5623_s14 }
 0x3e4   :  { %3164 = vsyncpa [#allocation4], 1 }
 0x3e5   :  { %3166 = vsyncpa [#allocation4 + $0x1], 1 }

</bundles_post_ra>
